<compile_context>
chip_gen: v7x
topology: tpu7x:2x2x1
jax: 0.10.0
libtpu: 0.0.40
codegen_flags: <defaults>
</compile_context>

<pallas_src>
import functools
import math

import jax
import jax.numpy as jnp
import numpy as np
from jax.experimental import pallas as pl
from jax.experimental.pallas import tpu as pltpu


def _round_up(x, m):
    return (x + m - 1) // m * m


# ----------------------------- fused Pallas kernel ------------------------------

def _down_fused_kernel(x_ref, w0_ref, b0_ref, w1_ref, b1_ref, g1_ref, bt1_ref,
                       w2_ref, b2_ref, g2_ref, bt2_ref, o_ref, y0_s, y1_s, *,
                       Ho, Wo, S, L, P, C, Cp, groups, eps):
    HW = Ho * Wo
    cg = C // groups
    inv_count = 1.0 / float(HW * cg)

    # flattened position -> real pixel (col < Wo) or the per-row zero-halo column?
    col = jax.lax.broadcasted_iota(jnp.int32, (L, 1), 0) % S
    is_valid = col < Wo                                   # (L, 1), broadcasts over lanes
    ch = jax.lax.broadcasted_iota(jnp.int32, (1, Cp), 1)  # channel index (lane dim)

    # Zero only the 2*P pad rows of the staging buffers (stores below only touch rows
    # [P, P+L)).  Kept per-grid-step (cheap) and therefore megacore-safe on v7x.
    for y_s in (y0_s, y1_s):
        y_s[0:P, :] = jnp.zeros((P, Cp), y_s.dtype)
        y_s[P + L:P + L + P, :] = jnp.zeros((P, Cp), y_s.dtype)

    def conv3x3(load, w_ref, b_ref):
        # `load(q)` is a plain windowed Ref load of the (L, K) bf16 slab starting at
        # padded row q.  Thanks to the zero halo column + P zero end rows there is no
        # per-tap masking: a pure dot+add chain the MXU can keep on its accumulate path.
        acc = jnp.zeros((L, Cp), jnp.float32)
        for dh in range(3):
            for dw in range(3):
                q = P + (dh - 1) * S + (dw - 1)           # static offset
                acc = acc + jnp.dot(load(q), w_ref[dh * 3 + dw],
                                    preferred_element_type=jnp.float32)
        return acc + b_ref[...]

    def group_norm(y, gamma, beta, *, silu):
        # PyTorch GroupNorm (biased variance) over (spatial, channels-in-group).
        # Spatial-first reductions at full lane width; per-group combine on (1, Cp)
        # vectors; centered variance with an analytic correction for the Ho halo rows
        # of the masked slab (which hold exactly -mean after centering).
        # Padded lanes [C:Cp) stay exactly zero: weights/bias/gamma/beta are zero-padded
        # and mean/inv default to 0 outside the real groups.
        ym = jnp.where(is_valid, y, 0.0)
        s_c = jnp.sum(ym, axis=0, keepdims=True)               # (1, Cp)
        means = []
        mean_c = jnp.zeros((1, Cp), jnp.float32)
        for g in range(groups):
            in_g = (ch >= g * cg) & (ch < (g + 1) * cg)
            m_g = jnp.sum(s_c[:, g * cg:(g + 1) * cg]) * inv_count
            means.append(m_g)
            mean_c = jnp.where(in_g, m_g, mean_c)
        d = ym - mean_c                                         # halo rows hold -mean_c
        ss_c = jnp.sum(d * d, axis=0, keepdims=True)            # (1, Cp)
        inv_c = jnp.zeros((1, Cp), jnp.float32)
        for g in range(groups):
            in_g = (ch >= g * cg) & (ch < (g + 1) * cg)
            var_g = (jnp.sum(ss_c[:, g * cg:(g + 1) * cg])
                     - float(Ho * cg) * means[g] * means[g]) * inv_count
            inv_g = jax.lax.rsqrt(jnp.maximum(var_g, 0.0) + eps)
            inv_c = jnp.where(in_g, inv_g, inv_c)
        out = d * (inv_c * gamma) + beta
        if silu:
            out = out * jax.nn.sigmoid(out)
        return out

    # conv0: Conv2d(cin, C, k=4, s=2, p=1) re-expressed as a 3x3/s1 conv over the
    # space-to-depth input (pure layout transform in the wrapper).  No norm/activation.
    y0 = conv3x3(lambda q: x_ref[0, pl.ds(q, L), :], w0_ref, b0_ref)
    y0_s[P:P + L, :] = jnp.where(is_valid, y0, 0.0).astype(y0_s.dtype)

    # DoubleConv stage 1: conv3x3 + GroupNorm + SiLU (intermediate stays on-chip, bf16).
    y1 = conv3x3(lambda q: y0_s[pl.ds(q, L), :], w1_ref, b1_ref)
    y1 = group_norm(y1, g1_ref[...], bt1_ref[...], silu=True)
    y1_s[P:P + L, :] = jnp.where(is_valid, y1, 0.0).astype(y1_s.dtype)

    # DoubleConv stage 2: conv3x3 + GroupNorm (no activation; residual=False).
    y2 = conv3x3(lambda q: y1_s[pl.ds(q, L), :], w2_ref, b2_ref)
    y2 = group_norm(y2, g2_ref[...], bt2_ref[...], silu=False)

    # bf16 output in the flattened / halo / Cp-padded layout (halo columns are garbage;
    # the wrapper -- or the next fused block -- strips / re-zeroes them).
    o_ref[0] = y2.astype(o_ref.dtype)


# ------------------------------ weight / layout packing --------------------------

def _pack_w0_s2d(w0, cin, cout, cp):
    # (4,4,cin,cout) stride-2 pad-1 kernel  ->  (9, 4*cin, cp): the equivalent 3x3
    # stride-1 kernel over the space-to-depth input (channel order = (ph, pw, cin)).
    w6 = jnp.pad(w0, ((1, 1), (1, 1), (0, 0), (0, 0)))                 # (6,6,cin,cout)
    w = w6.reshape(3, 2, 3, 2, cin, cout).transpose(0, 2, 1, 3, 4, 5)  # (dh,dw,ph,pw,ci,co)
    w = w.reshape(9, 4 * cin, cout)
    wp = jnp.zeros((9, 4 * cin, cp), jnp.float32).at[:, :, :cout].set(w)
    return wp.astype(jnp.bfloat16)


def _pack_w3(w, c, cp):
    # (3,3,c,c) -> (9, cp, cp): zero-padded to the lane-aligned channel count, bf16.
    wp = jnp.zeros((9, cp, cp), jnp.float32).at[:, :c, :c].set(w.reshape(9, c, c))
    return wp.astype(jnp.bfloat16)


def _pad_vec(v, cp):
    return jnp.zeros((1, cp), jnp.float32).at[0, :v.shape[0]].set(v)


# ------------------------------ wrapper -------------------------------------------

def down_forward(x_nchw, params, *, out_channels):
    # public layout: NCHW in -> NCHW out; internally NHWC, flattened spatial with a
    # 1-pixel zero halo column per row, bf16, channels padded to a multiple of 128.
    x = jnp.transpose(x_nchw, (0, 2, 3, 1)).astype(jnp.float32)
    N, H, W, Cin = x.shape
    assert H % 2 == 0 and W % 2 == 0
    C = out_channels
    Ho, Wo = H // 2, W // 2
    S = Wo + 1                         # row stride = Wo pixels + 1 zero halo column
    L = Ho * S                         # flattened spatial extent (incl. halo columns)
    groups = min(8, C // 4) if C >= 4 else 1
    Cp = _round_up(C, 128)             # lane-dense channel dim (MXU / unmasked vst)
    K0 = 4 * Cin                       # space-to-depth channel count for conv0
    P = _round_up(S + 1, 16)           # bf16-tile-aligned zero end padding (>= S+1)
    Lp = L + 2 * P
    eps = 1e-5

    # space-to-depth (pure layout, no read amplification): a 4x4/s2/p1 conv is exactly a
    # 3x3/s1/p1 conv over (Ho, Wo, 4*Cin); append the halo column, flatten, pad P rows.
    xs = x.reshape(N, Ho, 2, Wo, 2, Cin).transpose(0, 1, 3, 2, 4, 5)
    xs = xs.reshape(N, Ho, Wo, K0)
    xs = jnp.pad(xs, ((0, 0), (0, 0), (0, 1), (0, 0))).reshape(N, L, K0)
    xs = jnp.pad(xs, ((0, 0), (P, P), (0, 0))).astype(jnp.bfloat16)

    w0p = _pack_w0_s2d(params["w0"], Cin, C, Cp)
    w1p = _pack_w3(params["w1"], C, Cp)
    w2p = _pack_w3(params["w2"], C, Cp)
    b0p = _pad_vec(params["b0"], Cp)
    b1p = _pad_vec(params["b1"], Cp)
    b2p = _pad_vec(params["b2"], Cp)
    g1p = _pad_vec(params["g1"], Cp)
    g2p = _pad_vec(params["g2"], Cp)
    bt1p = _pad_vec(params["bt1"], Cp)
    bt2p = _pad_vec(params["bt2"], Cp)

    kern = functools.partial(_down_fused_kernel, Ho=Ho, Wo=Wo, S=S, L=L, P=P,
                             C=C, Cp=Cp, groups=groups, eps=eps)
    vec_spec = pl.BlockSpec((1, Cp), lambda n: (0, 0))

    out = pl.pallas_call(
        kern,
        out_shape=jax.ShapeDtypeStruct((N, L, Cp), jnp.bfloat16),   # bf16 HBM writeback
        grid=(N,),
        in_specs=[
            pl.BlockSpec((1, Lp, K0), lambda n: (n, 0, 0)),      # x (s2d, halo, padded)
            pl.BlockSpec((9, K0, Cp), lambda n: (0, 0, 0)),      # w0
            vec_spec,                                            # b0
            pl.BlockSpec((9, Cp, Cp), lambda n: (0, 0, 0)),      # w1
            vec_spec, vec_spec, vec_spec,                        # b1, g1, bt1
            pl.BlockSpec((9, Cp, Cp), lambda n: (0, 0, 0)),      # w2
            vec_spec, vec_spec, vec_spec,                        # b2, g2, bt2
        ],
        out_specs=pl.BlockSpec((1, L, Cp), lambda n: (n, 0, 0)),
        scratch_shapes=[pltpu.VMEM((Lp, Cp), jnp.bfloat16),      # y0 staged on-chip
                        pltpu.VMEM((Lp, Cp), jnp.bfloat16)],     # y1 staged on-chip
        compiler_params=pltpu.CompilerParams(
            dimension_semantics=("parallel",),   # shards the batch across v7x's 2 TCs
            vmem_limit_bytes=48 * 1024 * 1024),  # <= ~48 MB keeps v7x (64 MiB) happy
    )(xs, w0p, b0p, w1p, b1p, g1p, bt1p, w2p, b2p, g2p, bt2p)

    # Strip halo columns / channel padding only for the NCHW comparison; a production
    # pipeline would keep the (N, L, Cp) bf16 layout for the next fused block.
    y = out.reshape(N, Ho, S, Cp)[:, :, :Wo, :C].astype(jnp.float32)
    return jnp.transpose(y, (0, 3, 1, 2))


# ------------------------------ params & pure-JAX reference -----------------------

def init_down_params(key, cin, cout):
    ks = jax.random.split(key, 6)

    def conv_w(k, kh, kw, ci, co):
        bound = 1.0 / math.sqrt(kh * kw * ci)
        return jax.random.uniform(k, (kh, kw, ci, co), jnp.float32, -bound, bound)

    def conv_b(k, kh, kw, ci, co):
        bound = 1.0 / math.sqrt(kh * kw * ci)
        return jax.random.uniform(k, (co,), jnp.float32, -bound, bound)

    return {
        "w0": conv_w(ks[0], 4, 4, cin, cout), "b0": conv_b(ks[1], 4, 4, cin, cout),
        "w1": conv_w(ks[2], 3, 3, cout, cout), "b1": conv_b(ks[3], 3, 3, cout, cout),
        "g1": jnp.ones((cout,), jnp.float32), "bt1": jnp.zeros((cout,), jnp.float32),
        "w2": conv_w(ks[4], 3, 3, cout, cout), "b2": conv_b(ks[5], 3, 3, cout, cout),
        "g2": jnp.ones((cout,), jnp.float32), "bt2": jnp.zeros((cout,), jnp.float32),
    }


def ref_forward(x_nchw, params, out_channels):
    x = jnp.transpose(x_nchw, (0, 2, 3, 1)).astype(jnp.float32)
    groups = min(8, out_channels // 4) if out_channels >= 4 else 1
    dn = ("NHWC", "HWIO", "NHWC")

    def gn(y, gamma, beta):
        n, h, w, c = y.shape
        yg = y.reshape(n, h, w, groups, c // groups)
        mean = yg.mean(axis=(1, 2, 4), keepdims=True)
        var = ((yg - mean) ** 2).mean(axis=(1, 2, 4), keepdims=True)
        yn = (yg - mean) / jnp.sqrt(var + 1e-5)
        return yn.reshape(n, h, w, c) * gamma + beta

    y = jax.lax.conv_general_dilated(x, params["w0"], (2, 2), ((1, 1), (1, 1)),
                                     dimension_numbers=dn) + params["b0"]
    y1 = jax.lax.conv_general_dilated(y, params["w1"], (1, 1), ((1, 1), (1, 1)),
                                      dimension_numbers=dn) + params["b1"]
    y1 = gn(y1, params["g1"], params["bt1"])
    y1 = y1 * jax.nn.sigmoid(y1)
    y2 = jax.lax.conv_general_dilated(y1, params["w2"], (1, 1), ((1, 1), (1, 1)),
                                      dimension_numbers=dn) + params["b2"]
    y2 = gn(y2, params["g2"], params["bt2"])
    return jnp.transpose(y2, (0, 3, 1, 2))


# ------------------------------ main ----------------------------------------------

if __name__ == "__main__":
    key = jax.random.PRNGKey(0)
    kx, kp = jax.random.split(key)

    N, Cin, H, W = 2, 4, 16, 16
    Cout = 8
    x = jax.random.normal(kx, (N, Cin, H, W), jnp.float32)
    params = init_down_params(kp, Cin, Cout)

    fwd = jax.jit(functools.partial(down_forward, out_channels=Cout))
    out = jax.block_until_ready(fwd(x, params))
    assert out.shape == (N, Cout, H // 2, W // 2), out.shape

    ref = ref_forward(x, params, Cout)
    # bf16 MXU inputs / bf16 staged intermediates / bf16 output (f32 accumulation and
    # f32 GN/SiLU math) vs. a pure-f32 reference -> relaxed tolerance.
    np.testing.assert_allclose(np.asarray(out), np.asarray(ref),
                               atol=5e-2, rtol=5e-2)
    print("KERNEL_OK")
</pallas_src>

<mosaic_0001>
module attributes {stable_mosaic.version = 11 : i64} {
  func.func @_down_fused_kernel(%arg0: i32, %arg1: memref<1x104x16xbf16, #tpu.memory_space<vmem>>, %arg2: memref<9x16x128xbf16, #tpu.memory_space<vmem>>, %arg3: memref<1x128xf32, #tpu.memory_space<vmem>>, %arg4: memref<9x128x128xbf16, #tpu.memory_space<vmem>>, %arg5: memref<1x128xf32, #tpu.memory_space<vmem>>, %arg6: memref<1x128xf32, #tpu.memory_space<vmem>>, %arg7: memref<1x128xf32, #tpu.memory_space<vmem>>, %arg8: memref<9x128x128xbf16, #tpu.memory_space<vmem>>, %arg9: memref<1x128xf32, #tpu.memory_space<vmem>>, %arg10: memref<1x128xf32, #tpu.memory_space<vmem>>, %arg11: memref<1x128xf32, #tpu.memory_space<vmem>>, %arg12: memref<1x72x128xbf16, #tpu.memory_space<vmem>>, %arg13: memref<104x128xbf16, #tpu.memory_space<vmem>>, %arg14: memref<104x128xbf16, #tpu.memory_space<vmem>>) attributes {dimension_semantics = [#tpu.dimension_semantics<parallel>], iteration_bounds = array<i64: 2>, scalar_prefetch = 0 : i64, scratch_operands = 2 : i64, tpu.core_type = #tpu.core_type<tc>, window_params = [{transform_indices = @transform_0, window_bounds = array<i64: 1, 104, 16>}, {pipeline_mode = #tpu.pipeline_mode<synchronous>, transform_indices = @transform_1, window_bounds = array<i64: 9, 16, 128>}, {pipeline_mode = #tpu.pipeline_mode<synchronous>, transform_indices = @transform_2, window_bounds = array<i64: 1, 128>}, {pipeline_mode = #tpu.pipeline_mode<synchronous>, transform_indices = @transform_3, window_bounds = array<i64: 9, 128, 128>}, {pipeline_mode = #tpu.pipeline_mode<synchronous>, transform_indices = @transform_4, window_bounds = array<i64: 1, 128>}, {pipeline_mode = #tpu.pipeline_mode<synchronous>, transform_indices = @transform_5, window_bounds = array<i64: 1, 128>}, {pipeline_mode = #tpu.pipeline_mode<synchronous>, transform_indices = @transform_6, window_bounds = array<i64: 1, 128>}, {pipeline_mode = #tpu.pipeline_mode<synchronous>, transform_indices = @transform_7, window_bounds = array<i64: 9, 128, 128>}, {pipeline_mode = #tpu.pipeline_mode<synchronous>, transform_indices = @transform_8, window_bounds = array<i64: 1, 128>}, {pipeline_mode = #tpu.pipeline_mode<synchronous>, transform_indices = @transform_9, window_bounds = array<i64: 1, 128>}, {pipeline_mode = #tpu.pipeline_mode<synchronous>, transform_indices = @transform_10, window_bounds = array<i64: 1, 128>}, {transform_indices = @transform_11, window_bounds = array<i64: 1, 72, 128>}]} {
    %0 = tpu.iota {dimensions = array<i32: 0>} : vector<72x1xi32>
    %c9_i32 = arith.constant 9 : i32
    %c0_i32 = arith.constant 0 : i32
    %1 = arith.cmpi eq, %c9_i32, %c0_i32 : i32
    %c1_i32 = arith.constant 1 : i32
    %2 = arith.select %1, %c1_i32, %c9_i32 : i32
    %3 = vector.broadcast %2 : i32 to vector<72x1xi32>
    %4 = arith.remsi %0, %3 : vector<72x1xi32>
    %c0_i32_0 = arith.constant 0 : i32
    %5 = vector.broadcast %c0_i32_0 : i32 to vector<72x1xi32>
    %6 = arith.cmpi ne, %4, %5 : vector<72x1xi32>
    %c0_i32_1 = arith.constant 0 : i32
    %7 = vector.broadcast %c0_i32_1 : i32 to vector<72x1xi32>
    %8 = arith.cmpi slt, %4, %7 : vector<72x1xi32>
    %c0_i32_2 = arith.constant 0 : i32
    %9 = arith.cmpi slt, %2, %c0_i32_2 : i32
    %10 = vector.broadcast %9 : i1 to vector<72x1xi1>
    %11 = vector.broadcast %10 : vector<72x1xi1> to vector<72x1xi1>
    %12 = arith.xori %8, %11 : vector<72x1xi1>
    %13 = arith.andi %12, %6 : vector<72x1xi1>
    %14 = vector.broadcast %2 : i32 to vector<72x1xi32>
    %15 = arith.addi %4, %14 : vector<72x1xi32>
    %16 = arith.select %13, %15, %4 : vector<72x1xi1>, vector<72x1xi32>
    %c8_i32 = arith.constant 8 : i32
    %17 = vector.broadcast %c8_i32 : i32 to vector<72x1xi32>
    %18 = arith.cmpi slt, %16, %17 : vector<72x1xi32>
    %19 = tpu.iota {dimensions = array<i32: 1>} : vector<1x128xi32>
    %cst = arith.constant 0.000000e+00 : bf16
    %20 = vector.broadcast %cst : bf16 to vector<16x128xbf16>
    %c0 = arith.constant 0 : index
    %c0_3 = arith.constant 0 : index
    %21 = vector.load %arg13[%c0, %c0_3] : memref<104x128xbf16, #tpu.memory_space<vmem>>, vector<16x128xbf16>
    tpu.vector_store %arg13[%c0, %c0_3], %20 {strides = array<i32>} : memref<104x128xbf16, #tpu.memory_space<vmem>>, vector<16x128xbf16>,
    %cst_4 = arith.constant 0.000000e+00 : bf16
    %22 = vector.broadcast %cst_4 : bf16 to vector<16x128xbf16>
    %c88 = arith.constant 88 : index
    %c0_5 = arith.constant 0 : index
    %23 = vector.load %arg13[%c88, %c0_5] : memref<104x128xbf16, #tpu.memory_space<vmem>>, vector<16x128xbf16>
    tpu.vector_store %arg13[%c88, %c0_5], %22 {strides = array<i32>} : memref<104x128xbf16, #tpu.memory_space<vmem>>, vector<16x128xbf16>,
    %cst_6 = arith.constant 0.000000e+00 : bf16
    %24 = vector.broadcast %cst_6 : bf16 to vector<16x128xbf16>
    %c0_7 = arith.constant 0 : index
    %c0_8 = arith.constant 0 : index
    %25 = vector.load %arg14[%c0_7, %c0_8] : memref<104x128xbf16, #tpu.memory_space<vmem>>, vector<16x128xbf16>
    tpu.vector_store %arg14[%c0_7, %c0_8], %24 {strides = array<i32>} : memref<104x128xbf16, #tpu.memory_space<vmem>>, vector<16x128xbf16>,
    %cst_9 = arith.constant 0.000000e+00 : bf16
    %26 = vector.broadcast %cst_9 : bf16 to vector<16x128xbf16>
    %c88_10 = arith.constant 88 : index
    %c0_11 = arith.constant 0 : index
    %27 = vector.load %arg14[%c88_10, %c0_11] : memref<104x128xbf16, #tpu.memory_space<vmem>>, vector<16x128xbf16>
    tpu.vector_store %arg14[%c88_10, %c0_11], %26 {strides = array<i32>} : memref<104x128xbf16, #tpu.memory_space<vmem>>, vector<16x128xbf16>,
    %cst_12 = arith.constant 0.000000e+00 : f32
    %28 = vector.broadcast %cst_12 : f32 to vector<72x128xf32>
    %c0_13 = arith.constant 0 : index
    %c6 = arith.constant 6 : index
    %c0_14 = arith.constant 0 : index
    %29 = vector.load %arg1[%c0_13, %c6, %c0_14] : memref<1x104x16xbf16, #tpu.memory_space<vmem>>, vector<1x72x16xbf16>
    %30 = vector.shape_cast %29 : vector<1x72x16xbf16> to vector<72x16xbf16>
    %c0_15 = arith.constant 0 : index
    %c0_16 = arith.constant 0 : index
    %c0_17 = arith.constant 0 : index
    %31 = vector.load %arg2[%c0_15, %c0_16, %c0_17] : memref<9x16x128xbf16, #tpu.memory_space<vmem>>, vector<1x16x128xbf16>
    %32 = vector.shape_cast %31 : vector<1x16x128xbf16> to vector<16x128xbf16>
    %cst_18 = arith.constant dense<0.000000e+00> : vector<72x128xf32>
    %33 = tpu.matmul %30, %32, %cst_18 {dimension_numbers = #tpu.dot_dimension_numbers<[1], [0], [0], [1], [0, 0, 1, 1], [], []>} : vector<72x16xbf16>, vector<16x128xbf16>, vector<72x128xf32> -> vector<72x128xf32>
    %34 = arith.addf %28, %33 : vector<72x128xf32>
    %c0_19 = arith.constant 0 : index
    %c7 = arith.constant 7 : index
    %c0_20 = arith.constant 0 : index
    %35 = vector.load %arg1[%c0_19, %c7, %c0_20] : memref<1x104x16xbf16, #tpu.memory_space<vmem>>, vector<1x72x16xbf16>
    %36 = vector.shape_cast %35 : vector<1x72x16xbf16> to vector<72x16xbf16>
    %c1 = arith.constant 1 : index
    %c0_21 = arith.constant 0 : index
    %c0_22 = arith.constant 0 : index
    %37 = vector.load %arg2[%c1, %c0_21, %c0_22] : memref<9x16x128xbf16, #tpu.memory_space<vmem>>, vector<1x16x128xbf16>
    %38 = vector.shape_cast %37 : vector<1x16x128xbf16> to vector<16x128xbf16>
    %cst_23 = arith.constant dense<0.000000e+00> : vector<72x128xf32>
    %39 = tpu.matmul %36, %38, %cst_23 {dimension_numbers = #tpu.dot_dimension_numbers<[1], [0], [0], [1], [0, 0, 1, 1], [], []>} : vector<72x16xbf16>, vector<16x128xbf16>, vector<72x128xf32> -> vector<72x128xf32>
    %40 = arith.addf %34, %39 : vector<72x128xf32>
    %c0_24 = arith.constant 0 : index
    %c8 = arith.constant 8 : index
    %c0_25 = arith.constant 0 : index
    %41 = vector.load %arg1[%c0_24, %c8, %c0_25] : memref<1x104x16xbf16, #tpu.memory_space<vmem>>, vector<1x72x16xbf16>
    %42 = vector.shape_cast %41 : vector<1x72x16xbf16> to vector<72x16xbf16>
    %c2 = arith.constant 2 : index
    %c0_26 = arith.constant 0 : index
    %c0_27 = arith.constant 0 : index
    %43 = vector.load %arg2[%c2, %c0_26, %c0_27] : memref<9x16x128xbf16, #tpu.memory_space<vmem>>, vector<1x16x128xbf16>
    %44 = vector.shape_cast %43 : vector<1x16x128xbf16> to vector<16x128xbf16>
    %cst_28 = arith.constant dense<0.000000e+00> : vector<72x128xf32>
    %45 = tpu.matmul %42, %44, %cst_28 {dimension_numbers = #tpu.dot_dimension_numbers<[1], [0], [0], [1], [0, 0, 1, 1], [], []>} : vector<72x16xbf16>, vector<16x128xbf16>, vector<72x128xf32> -> vector<72x128xf32>
    %46 = arith.addf %40, %45 : vector<72x128xf32>
    %c0_29 = arith.constant 0 : index
    %c15 = arith.constant 15 : index
    %c0_30 = arith.constant 0 : index
    %47 = vector.load %arg1[%c0_29, %c15, %c0_30] : memref<1x104x16xbf16, #tpu.memory_space<vmem>>, vector<1x72x16xbf16>
    %48 = vector.shape_cast %47 : vector<1x72x16xbf16> to vector<72x16xbf16>
    %c3 = arith.constant 3 : index
    %c0_31 = arith.constant 0 : index
    %c0_32 = arith.constant 0 : index
    %49 = vector.load %arg2[%c3, %c0_31, %c0_32] : memref<9x16x128xbf16, #tpu.memory_space<vmem>>, vector<1x16x128xbf16>
    %50 = vector.shape_cast %49 : vector<1x16x128xbf16> to vector<16x128xbf16>
    %cst_33 = arith.constant dense<0.000000e+00> : vector<72x128xf32>
    %51 = tpu.matmul %48, %50, %cst_33 {dimension_numbers = #tpu.dot_dimension_numbers<[1], [0], [0], [1], [0, 0, 1, 1], [], []>} : vector<72x16xbf16>, vector<16x128xbf16>, vector<72x128xf32> -> vector<72x128xf32>
    %52 = arith.addf %46, %51 : vector<72x128xf32>
    %c0_34 = arith.constant 0 : index
    %c16 = arith.constant 16 : index
    %c0_35 = arith.constant 0 : index
    %53 = vector.load %arg1[%c0_34, %c16, %c0_35] : memref<1x104x16xbf16, #tpu.memory_space<vmem>>, vector<1x72x16xbf16>
    %54 = vector.shape_cast %53 : vector<1x72x16xbf16> to vector<72x16xbf16>
    %c4 = arith.constant 4 : index
    %c0_36 = arith.constant 0 : index
    %c0_37 = arith.constant 0 : index
    %55 = vector.load %arg2[%c4, %c0_36, %c0_37] : memref<9x16x128xbf16, #tpu.memory_space<vmem>>, vector<1x16x128xbf16>
    %56 = vector.shape_cast %55 : vector<1x16x128xbf16> to vector<16x128xbf16>
    %cst_38 = arith.constant dense<0.000000e+00> : vector<72x128xf32>
    %57 = tpu.matmul %54, %56, %cst_38 {dimension_numbers = #tpu.dot_dimension_numbers<[1], [0], [0], [1], [0, 0, 1, 1], [], []>} : vector<72x16xbf16>, vector<16x128xbf16>, vector<72x128xf32> -> vector<72x128xf32>
    %58 = arith.addf %52, %57 : vector<72x128xf32>
    %c0_39 = arith.constant 0 : index
    %c17 = arith.constant 17 : index
    %c0_40 = arith.constant 0 : index
    %59 = vector.load %arg1[%c0_39, %c17, %c0_40] : memref<1x104x16xbf16, #tpu.memory_space<vmem>>, vector<1x72x16xbf16>
    %60 = vector.shape_cast %59 : vector<1x72x16xbf16> to vector<72x16xbf16>
    %c5 = arith.constant 5 : index
    %c0_41 = arith.constant 0 : index
    %c0_42 = arith.constant 0 : index
    %61 = vector.load %arg2[%c5, %c0_41, %c0_42] : memref<9x16x128xbf16, #tpu.memory_space<vmem>>, vector<1x16x128xbf16>
    %62 = vector.shape_cast %61 : vector<1x16x128xbf16> to vector<16x128xbf16>
    %cst_43 = arith.constant dense<0.000000e+00> : vector<72x128xf32>
    %63 = tpu.matmul %60, %62, %cst_43 {dimension_numbers = #tpu.dot_dimension_numbers<[1], [0], [0], [1], [0, 0, 1, 1], [], []>} : vector<72x16xbf16>, vector<16x128xbf16>, vector<72x128xf32> -> vector<72x128xf32>
    %64 = arith.addf %58, %63 : vector<72x128xf32>
    %c0_44 = arith.constant 0 : index
    %c24 = arith.constant 24 : index
    %c0_45 = arith.constant 0 : index
    %65 = vector.load %arg1[%c0_44, %c24, %c0_45] : memref<1x104x16xbf16, #tpu.memory_space<vmem>>, vector<1x72x16xbf16>
    %66 = vector.shape_cast %65 : vector<1x72x16xbf16> to vector<72x16xbf16>
    %c6_46 = arith.constant 6 : index
    %c0_47 = arith.constant 0 : index
    %c0_48 = arith.constant 0 : index
    %67 = vector.load %arg2[%c6_46, %c0_47, %c0_48] : memref<9x16x128xbf16, #tpu.memory_space<vmem>>, vector<1x16x128xbf16>
    %68 = vector.shape_cast %67 : vector<1x16x128xbf16> to vector<16x128xbf16>
    %cst_49 = arith.constant dense<0.000000e+00> : vector<72x128xf32>
    %69 = tpu.matmul %66, %68, %cst_49 {dimension_numbers = #tpu.dot_dimension_numbers<[1], [0], [0], [1], [0, 0, 1, 1], [], []>} : vector<72x16xbf16>, vector<16x128xbf16>, vector<72x128xf32> -> vector<72x128xf32>
    %70 = arith.addf %64, %69 : vector<72x128xf32>
    %c0_50 = arith.constant 0 : index
    %c25 = arith.constant 25 : index
    %c0_51 = arith.constant 0 : index
    %71 = vector.load %arg1[%c0_50, %c25, %c0_51] : memref<1x104x16xbf16, #tpu.memory_space<vmem>>, vector<1x72x16xbf16>
    %72 = vector.shape_cast %71 : vector<1x72x16xbf16> to vector<72x16xbf16>
    %c7_52 = arith.constant 7 : index
    %c0_53 = arith.constant 0 : index
    %c0_54 = arith.constant 0 : index
    %73 = vector.load %arg2[%c7_52, %c0_53, %c0_54] : memref<9x16x128xbf16, #tpu.memory_space<vmem>>, vector<1x16x128xbf16>
    %74 = vector.shape_cast %73 : vector<1x16x128xbf16> to vector<16x128xbf16>
    %cst_55 = arith.constant dense<0.000000e+00> : vector<72x128xf32>
    %75 = tpu.matmul %72, %74, %cst_55 {dimension_numbers = #tpu.dot_dimension_numbers<[1], [0], [0], [1], [0, 0, 1, 1], [], []>} : vector<72x16xbf16>, vector<16x128xbf16>, vector<72x128xf32> -> vector<72x128xf32>
    %76 = arith.addf %70, %75 : vector<72x128xf32>
    %c0_56 = arith.constant 0 : index
    %c26 = arith.constant 26 : index
    %c0_57 = arith.constant 0 : index
    %77 = vector.load %arg1[%c0_56, %c26, %c0_57] : memref<1x104x16xbf16, #tpu.memory_space<vmem>>, vector<1x72x16xbf16>
    %78 = vector.shape_cast %77 : vector<1x72x16xbf16> to vector<72x16xbf16>
    %c8_58 = arith.constant 8 : index
    %c0_59 = arith.constant 0 : index
    %c0_60 = arith.constant 0 : index
    %79 = vector.load %arg2[%c8_58, %c0_59, %c0_60] : memref<9x16x128xbf16, #tpu.memory_space<vmem>>, vector<1x16x128xbf16>
    %80 = vector.shape_cast %79 : vector<1x16x128xbf16> to vector<16x128xbf16>
    %cst_61 = arith.constant dense<0.000000e+00> : vector<72x128xf32>
    %81 = tpu.matmul %78, %80, %cst_61 {dimension_numbers = #tpu.dot_dimension_numbers<[1], [0], [0], [1], [0, 0, 1, 1], [], []>} : vector<72x16xbf16>, vector<16x128xbf16>, vector<72x128xf32> -> vector<72x128xf32>
    %82 = arith.addf %76, %81 : vector<72x128xf32>
    %c0_62 = arith.constant 0 : index
    %c0_63 = arith.constant 0 : index
    %83 = vector.load %arg3[%c0_62, %c0_63] : memref<1x128xf32, #tpu.memory_space<vmem>>, vector<1x128xf32>
    %84 = vector.broadcast %83 : vector<1x128xf32> to vector<72x128xf32>
    %85 = arith.addf %82, %84 : vector<72x128xf32>
    %cst_64 = arith.constant 0.000000e+00 : f32
    %86 = vector.shape_cast %18 : vector<72x1xi1> to vector<72x1xi1>
    %87 = vector.broadcast %86 : vector<72x1xi1> to vector<72x128xi1>
    %88 = vector.broadcast %cst_64 : f32 to vector<72x128xf32>
    %89 = arith.select %87, %85, %88 : vector<72x128xi1>, vector<72x128xf32>
    %90 = arith.truncf %89 : vector<72x128xf32> to vector<72x128xbf16>
    %c16_65 = arith.constant 16 : index
    %c0_66 = arith.constant 0 : index
    %91 = vector.load %arg13[%c16_65, %c0_66] : memref<104x128xbf16, #tpu.memory_space<vmem>>, vector<72x128xbf16>
    tpu.vector_store %arg13[%c16_65, %c0_66], %90 {strides = array<i32>} : memref<104x128xbf16, #tpu.memory_space<vmem>>, vector<72x128xbf16>,
    %cst_67 = arith.constant 0.000000e+00 : f32
    %92 = vector.broadcast %cst_67 : f32 to vector<72x128xf32>
    %c6_68 = arith.constant 6 : index
    %c0_69 = arith.constant 0 : index
    %93 = vector.load %arg13[%c6_68, %c0_69] : memref<104x128xbf16, #tpu.memory_space<vmem>>, vector<72x128xbf16>
    %c0_70 = arith.constant 0 : index
    %c0_71 = arith.constant 0 : index
    %c0_72 = arith.constant 0 : index
    %94 = vector.load %arg4[%c0_70, %c0_71, %c0_72] : memref<9x128x128xbf16, #tpu.memory_space<vmem>>, vector<1x128x128xbf16>
    %95 = vector.shape_cast %94 : vector<1x128x128xbf16> to vector<128x128xbf16>
    %cst_73 = arith.constant dense<0.000000e+00> : vector<72x128xf32>
    %96 = tpu.matmul %93, %95, %cst_73 {dimension_numbers = #tpu.dot_dimension_numbers<[1], [0], [0], [1], [0, 0, 1, 1], [], []>} : vector<72x128xbf16>, vector<128x128xbf16>, vector<72x128xf32> -> vector<72x128xf32>
    %97 = arith.addf %92, %96 : vector<72x128xf32>
    %c7_74 = arith.constant 7 : index
    %c0_75 = arith.constant 0 : index
    %98 = vector.load %arg13[%c7_74, %c0_75] : memref<104x128xbf16, #tpu.memory_space<vmem>>, vector<72x128xbf16>
    %c1_76 = arith.constant 1 : index
    %c0_77 = arith.constant 0 : index
    %c0_78 = arith.constant 0 : index
    %99 = vector.load %arg4[%c1_76, %c0_77, %c0_78] : memref<9x128x128xbf16, #tpu.memory_space<vmem>>, vector<1x128x128xbf16>
    %100 = vector.shape_cast %99 : vector<1x128x128xbf16> to vector<128x128xbf16>
    %cst_79 = arith.constant dense<0.000000e+00> : vector<72x128xf32>
    %101 = tpu.matmul %98, %100, %cst_79 {dimension_numbers = #tpu.dot_dimension_numbers<[1], [0], [0], [1], [0, 0, 1, 1], [], []>} : vector<72x128xbf16>, vector<128x128xbf16>, vector<72x128xf32> -> vector<72x128xf32>
    %102 = arith.addf %97, %101 : vector<72x128xf32>
    %c8_80 = arith.constant 8 : index
    %c0_81 = arith.constant 0 : index
    %103 = vector.load %arg13[%c8_80, %c0_81] : memref<104x128xbf16, #tpu.memory_space<vmem>>, vector<72x128xbf16>
    %c2_82 = arith.constant 2 : index
    %c0_83 = arith.constant 0 : index
    %c0_84 = arith.constant 0 : index
    %104 = vector.load %arg4[%c2_82, %c0_83, %c0_84] : memref<9x128x128xbf16, #tpu.memory_space<vmem>>, vector<1x128x128xbf16>
    %105 = vector.shape_cast %104 : vector<1x128x128xbf16> to vector<128x128xbf16>
    %cst_85 = arith.constant dense<0.000000e+00> : vector<72x128xf32>
    %106 = tpu.matmul %103, %105, %cst_85 {dimension_numbers = #tpu.dot_dimension_numbers<[1], [0], [0], [1], [0, 0, 1, 1], [], []>} : vector<72x128xbf16>, vector<128x128xbf16>, vector<72x128xf32> -> vector<72x128xf32>
    %107 = arith.addf %102, %106 : vector<72x128xf32>
    %c15_86 = arith.constant 15 : index
    %c0_87 = arith.constant 0 : index
    %108 = vector.load %arg13[%c15_86, %c0_87] : memref<104x128xbf16, #tpu.memory_space<vmem>>, vector<72x128xbf16>
    %c3_88 = arith.constant 3 : index
    %c0_89 = arith.constant 0 : index
    %c0_90 = arith.constant 0 : index
    %109 = vector.load %arg4[%c3_88, %c0_89, %c0_90] : memref<9x128x128xbf16, #tpu.memory_space<vmem>>, vector<1x128x128xbf16>
    %110 = vector.shape_cast %109 : vector<1x128x128xbf16> to vector<128x128xbf16>
    %cst_91 = arith.constant dense<0.000000e+00> : vector<72x128xf32>
    %111 = tpu.matmul %108, %110, %cst_91 {dimension_numbers = #tpu.dot_dimension_numbers<[1], [0], [0], [1], [0, 0, 1, 1], [], []>} : vector<72x128xbf16>, vector<128x128xbf16>, vector<72x128xf32> -> vector<72x128xf32>
    %112 = arith.addf %107, %111 : vector<72x128xf32>
    %c16_92 = arith.constant 16 : index
    %c0_93 = arith.constant 0 : index
    %113 = vector.load %arg13[%c16_92, %c0_93] : memref<104x128xbf16, #tpu.memory_space<vmem>>, vector<72x128xbf16>
    %c4_94 = arith.constant 4 : index
    %c0_95 = arith.constant 0 : index
    %c0_96 = arith.constant 0 : index
    %114 = vector.load %arg4[%c4_94, %c0_95, %c0_96] : memref<9x128x128xbf16, #tpu.memory_space<vmem>>, vector<1x128x128xbf16>
    %115 = vector.shape_cast %114 : vector<1x128x128xbf16> to vector<128x128xbf16>
    %cst_97 = arith.constant dense<0.000000e+00> : vector<72x128xf32>
    %116 = tpu.matmul %113, %115, %cst_97 {dimension_numbers = #tpu.dot_dimension_numbers<[1], [0], [0], [1], [0, 0, 1, 1], [], []>} : vector<72x128xbf16>, vector<128x128xbf16>, vector<72x128xf32> -> vector<72x128xf32>
    %117 = arith.addf %112, %116 : vector<72x128xf32>
    %c17_98 = arith.constant 17 : index
    %c0_99 = arith.constant 0 : index
    %118 = vector.load %arg13[%c17_98, %c0_99] : memref<104x128xbf16, #tpu.memory_space<vmem>>, vector<72x128xbf16>
    %c5_100 = arith.constant 5 : index
    %c0_101 = arith.constant 0 : index
    %c0_102 = arith.constant 0 : index
    %119 = vector.load %arg4[%c5_100, %c0_101, %c0_102] : memref<9x128x128xbf16, #tpu.memory_space<vmem>>, vector<1x128x128xbf16>
    %120 = vector.shape_cast %119 : vector<1x128x128xbf16> to vector<128x128xbf16>
    %cst_103 = arith.constant dense<0.000000e+00> : vector<72x128xf32>
    %121 = tpu.matmul %118, %120, %cst_103 {dimension_numbers = #tpu.dot_dimension_numbers<[1], [0], [0], [1], [0, 0, 1, 1], [], []>} : vector<72x128xbf16>, vector<128x128xbf16>, vector<72x128xf32> -> vector<72x128xf32>
    %122 = arith.addf %117, %121 : vector<72x128xf32>
    %c24_104 = arith.constant 24 : index
    %c0_105 = arith.constant 0 : index
    %123 = vector.load %arg13[%c24_104, %c0_105] : memref<104x128xbf16, #tpu.memory_space<vmem>>, vector<72x128xbf16>
    %c6_106 = arith.constant 6 : index
    %c0_107 = arith.constant 0 : index
    %c0_108 = arith.constant 0 : index
    %124 = vector.load %arg4[%c6_106, %c0_107, %c0_108] : memref<9x128x128xbf16, #tpu.memory_space<vmem>>, vector<1x128x128xbf16>
    %125 = vector.shape_cast %124 : vector<1x128x128xbf16> to vector<128x128xbf16>
    %cst_109 = arith.constant dense<0.000000e+00> : vector<72x128xf32>
    %126 = tpu.matmul %123, %125, %cst_109 {dimension_numbers = #tpu.dot_dimension_numbers<[1], [0], [0], [1], [0, 0, 1, 1], [], []>} : vector<72x128xbf16>, vector<128x128xbf16>, vector<72x128xf32> -> vector<72x128xf32>
    %127 = arith.addf %122, %126 : vector<72x128xf32>
    %c25_110 = arith.constant 25 : index
    %c0_111 = arith.constant 0 : index
    %128 = vector.load %arg13[%c25_110, %c0_111] : memref<104x128xbf16, #tpu.memory_space<vmem>>, vector<72x128xbf16>
    %c7_112 = arith.constant 7 : index
    %c0_113 = arith.constant 0 : index
    %c0_114 = arith.constant 0 : index
    %129 = vector.load %arg4[%c7_112, %c0_113, %c0_114] : memref<9x128x128xbf16, #tpu.memory_space<vmem>>, vector<1x128x128xbf16>
    %130 = vector.shape_cast %129 : vector<1x128x128xbf16> to vector<128x128xbf16>
    %cst_115 = arith.constant dense<0.000000e+00> : vector<72x128xf32>
    %131 = tpu.matmul %128, %130, %cst_115 {dimension_numbers = #tpu.dot_dimension_numbers<[1], [0], [0], [1], [0, 0, 1, 1], [], []>} : vector<72x128xbf16>, vector<128x128xbf16>, vector<72x128xf32> -> vector<72x128xf32>
    %132 = arith.addf %127, %131 : vector<72x128xf32>
    %c26_116 = arith.constant 26 : index
    %c0_117 = arith.constant 0 : index
    %133 = vector.load %arg13[%c26_116, %c0_117] : memref<104x128xbf16, #tpu.memory_space<vmem>>, vector<72x128xbf16>
    %c8_118 = arith.constant 8 : index
    %c0_119 = arith.constant 0 : index
    %c0_120 = arith.constant 0 : index
    %134 = vector.load %arg4[%c8_118, %c0_119, %c0_120] : memref<9x128x128xbf16, #tpu.memory_space<vmem>>, vector<1x128x128xbf16>
    %135 = vector.shape_cast %134 : vector<1x128x128xbf16> to vector<128x128xbf16>
    %cst_121 = arith.constant dense<0.000000e+00> : vector<72x128xf32>
    %136 = tpu.matmul %133, %135, %cst_121 {dimension_numbers = #tpu.dot_dimension_numbers<[1], [0], [0], [1], [0, 0, 1, 1], [], []>} : vector<72x128xbf16>, vector<128x128xbf16>, vector<72x128xf32> -> vector<72x128xf32>
    %137 = arith.addf %132, %136 : vector<72x128xf32>
    %c0_122 = arith.constant 0 : index
    %c0_123 = arith.constant 0 : index
    %138 = vector.load %arg5[%c0_122, %c0_123] : memref<1x128xf32, #tpu.memory_space<vmem>>, vector<1x128xf32>
    %139 = vector.broadcast %138 : vector<1x128xf32> to vector<72x128xf32>
    %140 = arith.addf %137, %139 : vector<72x128xf32>
    %c0_124 = arith.constant 0 : index
    %c0_125 = arith.constant 0 : index
    %141 = vector.load %arg6[%c0_124, %c0_125] : memref<1x128xf32, #tpu.memory_space<vmem>>, vector<1x128xf32>
    %c0_126 = arith.constant 0 : index
    %c0_127 = arith.constant 0 : index
    %142 = vector.load %arg7[%c0_126, %c0_127] : memref<1x128xf32, #tpu.memory_space<vmem>>, vector<1x128xf32>
    %cst_128 = arith.constant 0.000000e+00 : f32
    %143 = vector.shape_cast %18 : vector<72x1xi1> to vector<72x1xi1>
    %144 = vector.broadcast %143 : vector<72x1xi1> to vector<72x128xi1>
    %145 = vector.broadcast %cst_128 : f32 to vector<72x128xf32>
    %146 = arith.select %144, %140, %145 : vector<72x128xi1>, vector<72x128xf32>
    %cst_129 = arith.constant dense<0.000000e+00> : vector<128xf32>
    %147 = vector.multi_reduction <add>, %146, %cst_129 [0] : vector<72x128xf32> to vector<128xf32>
    %148 = vector.shape_cast %147 : vector<128xf32> to vector<1x128xf32>
    %cst_130 = arith.constant 0.000000e+00 : f32
    %149 = vector.broadcast %cst_130 : f32 to vector<1x128xf32>
    %c0_i32_131 = arith.constant 0 : i32
    %150 = vector.broadcast %c0_i32_131 : i32 to vector<1x128xi32>
    %151 = arith.cmpi sge, %19, %150 : vector<1x128xi32>
    %c4_i32 = arith.constant 4 : i32
    %152 = vector.broadcast %c4_i32 : i32 to vector<1x128xi32>
    %153 = arith.cmpi slt, %19, %152 : vector<1x128xi32>
    %154 = arith.andi %151, %153 : vector<1x128xi1>
    %155 = vector.extract_strided_slice %148 {offsets = [0, 0], sizes = [1, 4], strides = [1, 1]} : vector<1x128xf32> to vector<1x4xf32>
    %156 = vector.shape_cast %155 : vector<1x4xf32> to vector<1x1x4xf32>
    %cst_132 = arith.constant dense<0.000000e+00> : vector<1xf32>
    %157 = vector.multi_reduction <add>, %156, %cst_132 [1, 2] : vector<1x1x4xf32> to vector<1xf32>
    %158 = vector.shape_cast %157 : vector<1xf32> to vector<1x1x1xf32>
    %159 = vector.extract %158[0, 0, 0] : f32 from vector<1x1x1xf32>
    %cst_133 = arith.constant 3.906250e-03 : f32
    %160 = arith.mulf %159, %cst_133 : f32
    %161 = vector.broadcast %160 : f32 to vector<1x128xf32>
    %162 = arith.select %154, %161, %149 : vector<1x128xi1>, vector<1x128xf32>
    %c4_i32_134 = arith.constant 4 : i32
    %163 = vector.broadcast %c4_i32_134 : i32 to vector<1x128xi32>
    %164 = arith.cmpi sge, %19, %163 : vector<1x128xi32>
    %c8_i32_135 = arith.constant 8 : i32
    %165 = vector.broadcast %c8_i32_135 : i32 to vector<1x128xi32>
    %166 = arith.cmpi slt, %19, %165 : vector<1x128xi32>
    %167 = arith.andi %164, %166 : vector<1x128xi1>
    %168 = vector.extract_strided_slice %148 {offsets = [0, 4], sizes = [1, 4], strides = [1, 1]} : vector<1x128xf32> to vector<1x4xf32>
    %169 = vector.shape_cast %168 : vector<1x4xf32> to vector<1x1x4xf32>
    %cst_136 = arith.constant dense<0.000000e+00> : vector<1xf32>
    %170 = vector.multi_reduction <add>, %169, %cst_136 [1, 2] : vector<1x1x4xf32> to vector<1xf32>
    %171 = vector.shape_cast %170 : vector<1xf32> to vector<1x1x1xf32>
    %172 = vector.extract %171[0, 0, 0] : f32 from vector<1x1x1xf32>
    %cst_137 = arith.constant 3.906250e-03 : f32
    %173 = arith.mulf %172, %cst_137 : f32
    %174 = vector.broadcast %173 : f32 to vector<1x128xf32>
    %175 = arith.select %167, %174, %162 : vector<1x128xi1>, vector<1x128xf32>
    %176 = vector.broadcast %175 : vector<1x128xf32> to vector<72x128xf32>
    %177 = arith.subf %146, %176 : vector<72x128xf32>
    %178 = arith.mulf %177, %177 : vector<72x128xf32>
    %cst_138 = arith.constant dense<0.000000e+00> : vector<128xf32>
    %179 = vector.multi_reduction <add>, %178, %cst_138 [0] : vector<72x128xf32> to vector<128xf32>
    %180 = vector.shape_cast %179 : vector<128xf32> to vector<1x128xf32>
    %cst_139 = arith.constant 0.000000e+00 : f32
    %181 = vector.broadcast %cst_139 : f32 to vector<1x128xf32>
    %c0_i32_140 = arith.constant 0 : i32
    %182 = vector.broadcast %c0_i32_140 : i32 to vector<1x128xi32>
    %183 = arith.cmpi sge, %19, %182 : vector<1x128xi32>
    %c4_i32_141 = arith.constant 4 : i32
    %184 = vector.broadcast %c4_i32_141 : i32 to vector<1x128xi32>
    %185 = arith.cmpi slt, %19, %184 : vector<1x128xi32>
    %186 = arith.andi %183, %185 : vector<1x128xi1>
    %187 = vector.extract_strided_slice %180 {offsets = [0, 0], sizes = [1, 4], strides = [1, 1]} : vector<1x128xf32> to vector<1x4xf32>
    %188 = vector.shape_cast %187 : vector<1x4xf32> to vector<1x1x4xf32>
    %cst_142 = arith.constant dense<0.000000e+00> : vector<1xf32>
    %189 = vector.multi_reduction <add>, %188, %cst_142 [1, 2] : vector<1x1x4xf32> to vector<1xf32>
    %190 = vector.shape_cast %189 : vector<1xf32> to vector<1x1x1xf32>
    %191 = vector.extract %190[0, 0, 0] : f32 from vector<1x1x1xf32>
    %cst_143 = arith.constant 3.200000e+01 : f32
    %192 = arith.mulf %cst_143, %160 : f32
    %193 = arith.mulf %192, %160 : f32
    %194 = arith.subf %191, %193 : f32
    %cst_144 = arith.constant 3.906250e-03 : f32
    %195 = arith.mulf %194, %cst_144 : f32
    %cst_145 = arith.constant 0.000000e+00 : f32
    %196 = arith.maximumf %195, %cst_145 : f32
    %cst_146 = arith.constant 9.99999974E-6 : f32
    %197 = arith.addf %196, %cst_146 : f32
    %198 = math.rsqrt %197 : f32
    %199 = vector.broadcast %198 : f32 to vector<1x128xf32>
    %200 = arith.select %186, %199, %181 : vector<1x128xi1>, vector<1x128xf32>
    %c4_i32_147 = arith.constant 4 : i32
    %201 = vector.broadcast %c4_i32_147 : i32 to vector<1x128xi32>
    %202 = arith.cmpi sge, %19, %201 : vector<1x128xi32>
    %c8_i32_148 = arith.constant 8 : i32
    %203 = vector.broadcast %c8_i32_148 : i32 to vector<1x128xi32>
    %204 = arith.cmpi slt, %19, %203 : vector<1x128xi32>
    %205 = arith.andi %202, %204 : vector<1x128xi1>
    %206 = vector.extract_strided_slice %180 {offsets = [0, 4], sizes = [1, 4], strides = [1, 1]} : vector<1x128xf32> to vector<1x4xf32>
    %207 = vector.shape_cast %206 : vector<1x4xf32> to vector<1x1x4xf32>
    %cst_149 = arith.constant dense<0.000000e+00> : vector<1xf32>
    %208 = vector.multi_reduction <add>, %207, %cst_149 [1, 2] : vector<1x1x4xf32> to vector<1xf32>
    %209 = vector.shape_cast %208 : vector<1xf32> to vector<1x1x1xf32>
    %210 = vector.extract %209[0, 0, 0] : f32 from vector<1x1x1xf32>
    %cst_150 = arith.constant 3.200000e+01 : f32
    %211 = arith.mulf %cst_150, %173 : f32
    %212 = arith.mulf %211, %173 : f32
    %213 = arith.subf %210, %212 : f32
    %cst_151 = arith.constant 3.906250e-03 : f32
    %214 = arith.mulf %213, %cst_151 : f32
    %cst_152 = arith.constant 0.000000e+00 : f32
    %215 = arith.maximumf %214, %cst_152 : f32
    %cst_153 = arith.constant 9.99999974E-6 : f32
    %216 = arith.addf %215, %cst_153 : f32
    %217 = math.rsqrt %216 : f32
    %218 = vector.broadcast %217 : f32 to vector<1x128xf32>
    %219 = arith.select %205, %218, %200 : vector<1x128xi1>, vector<1x128xf32>
    %220 = arith.mulf %219, %141 : vector<1x128xf32>
    %221 = vector.broadcast %220 : vector<1x128xf32> to vector<72x128xf32>
    %222 = arith.mulf %177, %221 : vector<72x128xf32>
    %223 = vector.broadcast %142 : vector<1x128xf32> to vector<72x128xf32>
    %224 = arith.addf %222, %223 : vector<72x128xf32>
    %225 = arith.negf %224 : vector<72x128xf32>
    %226 = math.exp %225 : vector<72x128xf32>
    %cst_154 = arith.constant 1.000000e+00 : f32
    %227 = vector.broadcast %cst_154 : f32 to vector<72x128xf32>
    %228 = arith.addf %227, %226 : vector<72x128xf32>
    %229 = arith.divf %227, %228 : vector<72x128xf32>
    %230 = arith.mulf %224, %229 : vector<72x128xf32>
    %cst_155 = arith.constant 0.000000e+00 : f32
    %231 = vector.shape_cast %18 : vector<72x1xi1> to vector<72x1xi1>
    %232 = vector.broadcast %231 : vector<72x1xi1> to vector<72x128xi1>
    %233 = vector.broadcast %cst_155 : f32 to vector<72x128xf32>
    %234 = arith.select %232, %230, %233 : vector<72x128xi1>, vector<72x128xf32>
    %235 = arith.truncf %234 : vector<72x128xf32> to vector<72x128xbf16>
    %c16_156 = arith.constant 16 : index
    %c0_157 = arith.constant 0 : index
    %236 = vector.load %arg14[%c16_156, %c0_157] : memref<104x128xbf16, #tpu.memory_space<vmem>>, vector<72x128xbf16>
    tpu.vector_store %arg14[%c16_156, %c0_157], %235 {strides = array<i32>} : memref<104x128xbf16, #tpu.memory_space<vmem>>, vector<72x128xbf16>,
    %cst_158 = arith.constant 0.000000e+00 : f32
    %237 = vector.broadcast %cst_158 : f32 to vector<72x128xf32>
    %c6_159 = arith.constant 6 : index
    %c0_160 = arith.constant 0 : index
    %238 = vector.load %arg14[%c6_159, %c0_160] : memref<104x128xbf16, #tpu.memory_space<vmem>>, vector<72x128xbf16>
    %c0_161 = arith.constant 0 : index
    %c0_162 = arith.constant 0 : index
    %c0_163 = arith.constant 0 : index
    %239 = vector.load %arg8[%c0_161, %c0_162, %c0_163] : memref<9x128x128xbf16, #tpu.memory_space<vmem>>, vector<1x128x128xbf16>
    %240 = vector.shape_cast %239 : vector<1x128x128xbf16> to vector<128x128xbf16>
    %cst_164 = arith.constant dense<0.000000e+00> : vector<72x128xf32>
    %241 = tpu.matmul %238, %240, %cst_164 {dimension_numbers = #tpu.dot_dimension_numbers<[1], [0], [0], [1], [0, 0, 1, 1], [], []>} : vector<72x128xbf16>, vector<128x128xbf16>, vector<72x128xf32> -> vector<72x128xf32>
    %242 = arith.addf %237, %241 : vector<72x128xf32>
    %c7_165 = arith.constant 7 : index
    %c0_166 = arith.constant 0 : index
    %243 = vector.load %arg14[%c7_165, %c0_166] : memref<104x128xbf16, #tpu.memory_space<vmem>>, vector<72x128xbf16>
    %c1_167 = arith.constant 1 : index
    %c0_168 = arith.constant 0 : index
    %c0_169 = arith.constant 0 : index
    %244 = vector.load %arg8[%c1_167, %c0_168, %c0_169] : memref<9x128x128xbf16, #tpu.memory_space<vmem>>, vector<1x128x128xbf16>
    %245 = vector.shape_cast %244 : vector<1x128x128xbf16> to vector<128x128xbf16>
    %cst_170 = arith.constant dense<0.000000e+00> : vector<72x128xf32>
    %246 = tpu.matmul %243, %245, %cst_170 {dimension_numbers = #tpu.dot_dimension_numbers<[1], [0], [0], [1], [0, 0, 1, 1], [], []>} : vector<72x128xbf16>, vector<128x128xbf16>, vector<72x128xf32> -> vector<72x128xf32>
    %247 = arith.addf %242, %246 : vector<72x128xf32>
    %c8_171 = arith.constant 8 : index
    %c0_172 = arith.constant 0 : index
    %248 = vector.load %arg14[%c8_171, %c0_172] : memref<104x128xbf16, #tpu.memory_space<vmem>>, vector<72x128xbf16>
    %c2_173 = arith.constant 2 : index
    %c0_174 = arith.constant 0 : index
    %c0_175 = arith.constant 0 : index
    %249 = vector.load %arg8[%c2_173, %c0_174, %c0_175] : memref<9x128x128xbf16, #tpu.memory_space<vmem>>, vector<1x128x128xbf16>
    %250 = vector.shape_cast %249 : vector<1x128x128xbf16> to vector<128x128xbf16>
    %cst_176 = arith.constant dense<0.000000e+00> : vector<72x128xf32>
    %251 = tpu.matmul %248, %250, %cst_176 {dimension_numbers = #tpu.dot_dimension_numbers<[1], [0], [0], [1], [0, 0, 1, 1], [], []>} : vector<72x128xbf16>, vector<128x128xbf16>, vector<72x128xf32> -> vector<72x128xf32>
    %252 = arith.addf %247, %251 : vector<72x128xf32>
    %c15_177 = arith.constant 15 : index
    %c0_178 = arith.constant 0 : index
    %253 = vector.load %arg14[%c15_177, %c0_178] : memref<104x128xbf16, #tpu.memory_space<vmem>>, vector<72x128xbf16>
    %c3_179 = arith.constant 3 : index
    %c0_180 = arith.constant 0 : index
    %c0_181 = arith.constant 0 : index
    %254 = vector.load %arg8[%c3_179, %c0_180, %c0_181] : memref<9x128x128xbf16, #tpu.memory_space<vmem>>, vector<1x128x128xbf16>
    %255 = vector.shape_cast %254 : vector<1x128x128xbf16> to vector<128x128xbf16>
    %cst_182 = arith.constant dense<0.000000e+00> : vector<72x128xf32>
    %256 = tpu.matmul %253, %255, %cst_182 {dimension_numbers = #tpu.dot_dimension_numbers<[1], [0], [0], [1], [0, 0, 1, 1], [], []>} : vector<72x128xbf16>, vector<128x128xbf16>, vector<72x128xf32> -> vector<72x128xf32>
    %257 = arith.addf %252, %256 : vector<72x128xf32>
    %c16_183 = arith.constant 16 : index
    %c0_184 = arith.constant 0 : index
    %258 = vector.load %arg14[%c16_183, %c0_184] : memref<104x128xbf16, #tpu.memory_space<vmem>>, vector<72x128xbf16>
    %c4_185 = arith.constant 4 : index
    %c0_186 = arith.constant 0 : index
    %c0_187 = arith.constant 0 : index
    %259 = vector.load %arg8[%c4_185, %c0_186, %c0_187] : memref<9x128x128xbf16, #tpu.memory_space<vmem>>, vector<1x128x128xbf16>
    %260 = vector.shape_cast %259 : vector<1x128x128xbf16> to vector<128x128xbf16>
    %cst_188 = arith.constant dense<0.000000e+00> : vector<72x128xf32>
    %261 = tpu.matmul %258, %260, %cst_188 {dimension_numbers = #tpu.dot_dimension_numbers<[1], [0], [0], [1], [0, 0, 1, 1], [], []>} : vector<72x128xbf16>, vector<128x128xbf16>, vector<72x128xf32> -> vector<72x128xf32>
    %262 = arith.addf %257, %261 : vector<72x128xf32>
    %c17_189 = arith.constant 17 : index
    %c0_190 = arith.constant 0 : index
    %263 = vector.load %arg14[%c17_189, %c0_190] : memref<104x128xbf16, #tpu.memory_space<vmem>>, vector<72x128xbf16>
    %c5_191 = arith.constant 5 : index
    %c0_192 = arith.constant 0 : index
    %c0_193 = arith.constant 0 : index
    %264 = vector.load %arg8[%c5_191, %c0_192, %c0_193] : memref<9x128x128xbf16, #tpu.memory_space<vmem>>, vector<1x128x128xbf16>
    %265 = vector.shape_cast %264 : vector<1x128x128xbf16> to vector<128x128xbf16>
    %cst_194 = arith.constant dense<0.000000e+00> : vector<72x128xf32>
    %266 = tpu.matmul %263, %265, %cst_194 {dimension_numbers = #tpu.dot_dimension_numbers<[1], [0], [0], [1], [0, 0, 1, 1], [], []>} : vector<72x128xbf16>, vector<128x128xbf16>, vector<72x128xf32> -> vector<72x128xf32>
    %267 = arith.addf %262, %266 : vector<72x128xf32>
    %c24_195 = arith.constant 24 : index
    %c0_196 = arith.constant 0 : index
    %268 = vector.load %arg14[%c24_195, %c0_196] : memref<104x128xbf16, #tpu.memory_space<vmem>>, vector<72x128xbf16>
    %c6_197 = arith.constant 6 : index
    %c0_198 = arith.constant 0 : index
    %c0_199 = arith.constant 0 : index
    %269 = vector.load %arg8[%c6_197, %c0_198, %c0_199] : memref<9x128x128xbf16, #tpu.memory_space<vmem>>, vector<1x128x128xbf16>
    %270 = vector.shape_cast %269 : vector<1x128x128xbf16> to vector<128x128xbf16>
    %cst_200 = arith.constant dense<0.000000e+00> : vector<72x128xf32>
    %271 = tpu.matmul %268, %270, %cst_200 {dimension_numbers = #tpu.dot_dimension_numbers<[1], [0], [0], [1], [0, 0, 1, 1], [], []>} : vector<72x128xbf16>, vector<128x128xbf16>, vector<72x128xf32> -> vector<72x128xf32>
    %272 = arith.addf %267, %271 : vector<72x128xf32>
    %c25_201 = arith.constant 25 : index
    %c0_202 = arith.constant 0 : index
    %273 = vector.load %arg14[%c25_201, %c0_202] : memref<104x128xbf16, #tpu.memory_space<vmem>>, vector<72x128xbf16>
    %c7_203 = arith.constant 7 : index
    %c0_204 = arith.constant 0 : index
    %c0_205 = arith.constant 0 : index
    %274 = vector.load %arg8[%c7_203, %c0_204, %c0_205] : memref<9x128x128xbf16, #tpu.memory_space<vmem>>, vector<1x128x128xbf16>
    %275 = vector.shape_cast %274 : vector<1x128x128xbf16> to vector<128x128xbf16>
    %cst_206 = arith.constant dense<0.000000e+00> : vector<72x128xf32>
    %276 = tpu.matmul %273, %275, %cst_206 {dimension_numbers = #tpu.dot_dimension_numbers<[1], [0], [0], [1], [0, 0, 1, 1], [], []>} : vector<72x128xbf16>, vector<128x128xbf16>, vector<72x128xf32> -> vector<72x128xf32>
    %277 = arith.addf %272, %276 : vector<72x128xf32>
    %c26_207 = arith.constant 26 : index
    %c0_208 = arith.constant 0 : index
    %278 = vector.load %arg14[%c26_207, %c0_208] : memref<104x128xbf16, #tpu.memory_space<vmem>>, vector<72x128xbf16>
    %c8_209 = arith.constant 8 : index
    %c0_210 = arith.constant 0 : index
    %c0_211 = arith.constant 0 : index
    %279 = vector.load %arg8[%c8_209, %c0_210, %c0_211] : memref<9x128x128xbf16, #tpu.memory_space<vmem>>, vector<1x128x128xbf16>
    %280 = vector.shape_cast %279 : vector<1x128x128xbf16> to vector<128x128xbf16>
    %cst_212 = arith.constant dense<0.000000e+00> : vector<72x128xf32>
    %281 = tpu.matmul %278, %280, %cst_212 {dimension_numbers = #tpu.dot_dimension_numbers<[1], [0], [0], [1], [0, 0, 1, 1], [], []>} : vector<72x128xbf16>, vector<128x128xbf16>, vector<72x128xf32> -> vector<72x128xf32>
    %282 = arith.addf %277, %281 : vector<72x128xf32>
    %c0_213 = arith.constant 0 : index
    %c0_214 = arith.constant 0 : index
    %283 = vector.load %arg9[%c0_213, %c0_214] : memref<1x128xf32, #tpu.memory_space<vmem>>, vector<1x128xf32>
    %284 = vector.broadcast %283 : vector<1x128xf32> to vector<72x128xf32>
    %285 = arith.addf %282, %284 : vector<72x128xf32>
    %c0_215 = arith.constant 0 : index
    %c0_216 = arith.constant 0 : index
    %286 = vector.load %arg10[%c0_215, %c0_216] : memref<1x128xf32, #tpu.memory_space<vmem>>, vector<1x128xf32>
    %c0_217 = arith.constant 0 : index
    %c0_218 = arith.constant 0 : index
    %287 = vector.load %arg11[%c0_217, %c0_218] : memref<1x128xf32, #tpu.memory_space<vmem>>, vector<1x128xf32>
    %cst_219 = arith.constant 0.000000e+00 : f32
    %288 = vector.shape_cast %18 : vector<72x1xi1> to vector<72x1xi1>
    %289 = vector.broadcast %288 : vector<72x1xi1> to vector<72x128xi1>
    %290 = vector.broadcast %cst_219 : f32 to vector<72x128xf32>
    %291 = arith.select %289, %285, %290 : vector<72x128xi1>, vector<72x128xf32>
    %cst_220 = arith.constant dense<0.000000e+00> : vector<128xf32>
    %292 = vector.multi_reduction <add>, %291, %cst_220 [0] : vector<72x128xf32> to vector<128xf32>
    %293 = vector.shape_cast %292 : vector<128xf32> to vector<1x128xf32>
    %cst_221 = arith.constant 0.000000e+00 : f32
    %294 = vector.broadcast %cst_221 : f32 to vector<1x128xf32>
    %c0_i32_222 = arith.constant 0 : i32
    %295 = vector.broadcast %c0_i32_222 : i32 to vector<1x128xi32>
    %296 = arith.cmpi sge, %19, %295 : vector<1x128xi32>
    %c4_i32_223 = arith.constant 4 : i32
    %297 = vector.broadcast %c4_i32_223 : i32 to vector<1x128xi32>
    %298 = arith.cmpi slt, %19, %297 : vector<1x128xi32>
    %299 = arith.andi %296, %298 : vector<1x128xi1>
    %300 = vector.extract_strided_slice %293 {offsets = [0, 0], sizes = [1, 4], strides = [1, 1]} : vector<1x128xf32> to vector<1x4xf32>
    %301 = vector.shape_cast %300 : vector<1x4xf32> to vector<1x1x4xf32>
    %cst_224 = arith.constant dense<0.000000e+00> : vector<1xf32>
    %302 = vector.multi_reduction <add>, %301, %cst_224 [1, 2] : vector<1x1x4xf32> to vector<1xf32>
    %303 = vector.shape_cast %302 : vector<1xf32> to vector<1x1x1xf32>
    %304 = vector.extract %303[0, 0, 0] : f32 from vector<1x1x1xf32>
    %cst_225 = arith.constant 3.906250e-03 : f32
    %305 = arith.mulf %304, %cst_225 : f32
    %306 = vector.broadcast %305 : f32 to vector<1x128xf32>
    %307 = arith.select %299, %306, %294 : vector<1x128xi1>, vector<1x128xf32>
    %c4_i32_226 = arith.constant 4 : i32
    %308 = vector.broadcast %c4_i32_226 : i32 to vector<1x128xi32>
    %309 = arith.cmpi sge, %19, %308 : vector<1x128xi32>
    %c8_i32_227 = arith.constant 8 : i32
    %310 = vector.broadcast %c8_i32_227 : i32 to vector<1x128xi32>
    %311 = arith.cmpi slt, %19, %310 : vector<1x128xi32>
    %312 = arith.andi %309, %311 : vector<1x128xi1>
    %313 = vector.extract_strided_slice %293 {offsets = [0, 4], sizes = [1, 4], strides = [1, 1]} : vector<1x128xf32> to vector<1x4xf32>
    %314 = vector.shape_cast %313 : vector<1x4xf32> to vector<1x1x4xf32>
    %cst_228 = arith.constant dense<0.000000e+00> : vector<1xf32>
    %315 = vector.multi_reduction <add>, %314, %cst_228 [1, 2] : vector<1x1x4xf32> to vector<1xf32>
    %316 = vector.shape_cast %315 : vector<1xf32> to vector<1x1x1xf32>
    %317 = vector.extract %316[0, 0, 0] : f32 from vector<1x1x1xf32>
    %cst_229 = arith.constant 3.906250e-03 : f32
    %318 = arith.mulf %317, %cst_229 : f32
    %319 = vector.broadcast %318 : f32 to vector<1x128xf32>
    %320 = arith.select %312, %319, %307 : vector<1x128xi1>, vector<1x128xf32>
    %321 = vector.broadcast %320 : vector<1x128xf32> to vector<72x128xf32>
    %322 = arith.subf %291, %321 : vector<72x128xf32>
    %323 = arith.mulf %322, %322 : vector<72x128xf32>
    %cst_230 = arith.constant dense<0.000000e+00> : vector<128xf32>
    %324 = vector.multi_reduction <add>, %323, %cst_230 [0] : vector<72x128xf32> to vector<128xf32>
    %325 = vector.shape_cast %324 : vector<128xf32> to vector<1x128xf32>
    %cst_231 = arith.constant 0.000000e+00 : f32
    %326 = vector.broadcast %cst_231 : f32 to vector<1x128xf32>
    %c0_i32_232 = arith.constant 0 : i32
    %327 = vector.broadcast %c0_i32_232 : i32 to vector<1x128xi32>
    %328 = arith.cmpi sge, %19, %327 : vector<1x128xi32>
    %c4_i32_233 = arith.constant 4 : i32
    %329 = vector.broadcast %c4_i32_233 : i32 to vector<1x128xi32>
    %330 = arith.cmpi slt, %19, %329 : vector<1x128xi32>
    %331 = arith.andi %328, %330 : vector<1x128xi1>
    %332 = vector.extract_strided_slice %325 {offsets = [0, 0], sizes = [1, 4], strides = [1, 1]} : vector<1x128xf32> to vector<1x4xf32>
    %333 = vector.shape_cast %332 : vector<1x4xf32> to vector<1x1x4xf32>
    %cst_234 = arith.constant dense<0.000000e+00> : vector<1xf32>
    %334 = vector.multi_reduction <add>, %333, %cst_234 [1, 2] : vector<1x1x4xf32> to vector<1xf32>
    %335 = vector.shape_cast %334 : vector<1xf32> to vector<1x1x1xf32>
    %336 = vector.extract %335[0, 0, 0] : f32 from vector<1x1x1xf32>
    %cst_235 = arith.constant 3.200000e+01 : f32
    %337 = arith.mulf %cst_235, %305 : f32
    %338 = arith.mulf %337, %305 : f32
    %339 = arith.subf %336, %338 : f32
    %cst_236 = arith.constant 3.906250e-03 : f32
    %340 = arith.mulf %339, %cst_236 : f32
    %cst_237 = arith.constant 0.000000e+00 : f32
    %341 = arith.maximumf %340, %cst_237 : f32
    %cst_238 = arith.constant 9.99999974E-6 : f32
    %342 = arith.addf %341, %cst_238 : f32
    %343 = math.rsqrt %342 : f32
    %344 = vector.broadcast %343 : f32 to vector<1x128xf32>
    %345 = arith.select %331, %344, %326 : vector<1x128xi1>, vector<1x128xf32>
    %c4_i32_239 = arith.constant 4 : i32
    %346 = vector.broadcast %c4_i32_239 : i32 to vector<1x128xi32>
    %347 = arith.cmpi sge, %19, %346 : vector<1x128xi32>
    %c8_i32_240 = arith.constant 8 : i32
    %348 = vector.broadcast %c8_i32_240 : i32 to vector<1x128xi32>
    %349 = arith.cmpi slt, %19, %348 : vector<1x128xi32>
    %350 = arith.andi %347, %349 : vector<1x128xi1>
    %351 = vector.extract_strided_slice %325 {offsets = [0, 4], sizes = [1, 4], strides = [1, 1]} : vector<1x128xf32> to vector<1x4xf32>
    %352 = vector.shape_cast %351 : vector<1x4xf32> to vector<1x1x4xf32>
    %cst_241 = arith.constant dense<0.000000e+00> : vector<1xf32>
    %353 = vector.multi_reduction <add>, %352, %cst_241 [1, 2] : vector<1x1x4xf32> to vector<1xf32>
    %354 = vector.shape_cast %353 : vector<1xf32> to vector<1x1x1xf32>
    %355 = vector.extract %354[0, 0, 0] : f32 from vector<1x1x1xf32>
    %cst_242 = arith.constant 3.200000e+01 : f32
    %356 = arith.mulf %cst_242, %318 : f32
    %357 = arith.mulf %356, %318 : f32
    %358 = arith.subf %355, %357 : f32
    %cst_243 = arith.constant 3.906250e-03 : f32
    %359 = arith.mulf %358, %cst_243 : f32
    %cst_244 = arith.constant 0.000000e+00 : f32
    %360 = arith.maximumf %359, %cst_244 : f32
    %cst_245 = arith.constant 9.99999974E-6 : f32
    %361 = arith.addf %360, %cst_245 : f32
    %362 = math.rsqrt %361 : f32
    %363 = vector.broadcast %362 : f32 to vector<1x128xf32>
    %364 = arith.select %350, %363, %345 : vector<1x128xi1>, vector<1x128xf32>
    %365 = arith.mulf %364, %286 : vector<1x128xf32>
    %366 = vector.broadcast %365 : vector<1x128xf32> to vector<72x128xf32>
    %367 = arith.mulf %322, %366 : vector<72x128xf32>
    %368 = vector.broadcast %287 : vector<1x128xf32> to vector<72x128xf32>
    %369 = arith.addf %367, %368 : vector<72x128xf32>
    %370 = arith.truncf %369 : vector<72x128xf32> to vector<72x128xbf16>
    %c0_246 = arith.constant 0 : index
    %c0_247 = arith.constant 0 : index
    %c0_248 = arith.constant 0 : index
    %371 = vector.load %arg12[%c0_246, %c0_247, %c0_248] : memref<1x72x128xbf16, #tpu.memory_space<vmem>>, vector<1x72x128xbf16>
    %372 = vector.shape_cast %371 : vector<1x72x128xbf16> to vector<72x128xbf16>
    %373 = vector.shape_cast %370 : vector<72x128xbf16> to vector<1x72x128xbf16>
    tpu.vector_store %arg12[%c0_246, %c0_247, %c0_248], %373 {strides = array<i32>} : memref<1x72x128xbf16, #tpu.memory_space<vmem>>, vector<1x72x128xbf16>,
    return
  }
  func.func @transform_0(%arg0: i32) -> (i32, i32, i32) {
    %c0_i32 = arith.constant 0 : i32
    %c0_i32_0 = arith.constant 0 : i32
    %c0_i32_1 = arith.constant 0 : i32
    return %arg0, %c0_i32, %c0_i32_0 : i32, i32, i32
  }
  func.func @transform_1(%arg0: i32) -> (i32, i32, i32) {
    %c0_i32 = arith.constant 0 : i32
    %c0_i32_0 = arith.constant 0 : i32
    %c0_i32_1 = arith.constant 0 : i32
    %c0_i32_2 = arith.constant 0 : i32
    return %c0_i32, %c0_i32_0, %c0_i32_1 : i32, i32, i32
  }
  func.func @transform_2(%arg0: i32) -> (i32, i32) {
    %c0_i32 = arith.constant 0 : i32
    %c0_i32_0 = arith.constant 0 : i32
    %c0_i32_1 = arith.constant 0 : i32
    return %c0_i32, %c0_i32_0 : i32, i32
  }
  func.func @transform_3(%arg0: i32) -> (i32, i32, i32) {
    %c0_i32 = arith.constant 0 : i32
    %c0_i32_0 = arith.constant 0 : i32
    %c0_i32_1 = arith.constant 0 : i32
    %c0_i32_2 = arith.constant 0 : i32
    return %c0_i32, %c0_i32_0, %c0_i32_1 : i32, i32, i32
  }
  func.func @transform_4(%arg0: i32) -> (i32, i32) {
    %c0_i32 = arith.constant 0 : i32
    %c0_i32_0 = arith.constant 0 : i32
    %c0_i32_1 = arith.constant 0 : i32
    return %c0_i32, %c0_i32_0 : i32, i32
  }
  func.func @transform_5(%arg0: i32) -> (i32, i32) {
    %c0_i32 = arith.constant 0 : i32
    %c0_i32_0 = arith.constant 0 : i32
    %c0_i32_1 = arith.constant 0 : i32
    return %c0_i32, %c0_i32_0 : i32, i32
  }
  func.func @transform_6(%arg0: i32) -> (i32, i32) {
    %c0_i32 = arith.constant 0 : i32
    %c0_i32_0 = arith.constant 0 : i32
    %c0_i32_1 = arith.constant 0 : i32
    return %c0_i32, %c0_i32_0 : i32, i32
  }
  func.func @transform_7(%arg0: i32) -> (i32, i32, i32) {
    %c0_i32 = arith.constant 0 : i32
    %c0_i32_0 = arith.constant 0 : i32
    %c0_i32_1 = arith.constant 0 : i32
    %c0_i32_2 = arith.constant 0 : i32
    return %c0_i32, %c0_i32_0, %c0_i32_1 : i32, i32, i32
  }
  func.func @transform_8(%arg0: i32) -> (i32, i32) {
    %c0_i32 = arith.constant 0 : i32
    %c0_i32_0 = arith.constant 0 : i32
    %c0_i32_1 = arith.constant 0 : i32
    return %c0_i32, %c0_i32_0 : i32, i32
  }
  func.func @transform_9(%arg0: i32) -> (i32, i32) {
    %c0_i32 = arith.constant 0 : i32
    %c0_i32_0 = arith.constant 0 : i32
    %c0_i32_1 = arith.constant 0 : i32
    return %c0_i32, %c0_i32_0 : i32, i32
  }
  func.func @transform_10(%arg0: i32) -> (i32, i32) {
    %c0_i32 = arith.constant 0 : i32
    %c0_i32_0 = arith.constant 0 : i32
    %c0_i32_1 = arith.constant 0 : i32
    return %c0_i32, %c0_i32_0 : i32, i32
  }
  func.func @transform_11(%arg0: i32) -> (i32, i32, i32) {
    %c0_i32 = arith.constant 0 : i32
    %c0_i32_0 = arith.constant 0 : i32
    %c0_i32_1 = arith.constant 0 : i32
    return %arg0, %c0_i32, %c0_i32_0 : i32, i32, i32
  }
}

</mosaic_0001>

<bundles_post_ra>
// kernel: down_forward.1
= control target key start
LH: loop header
LB: loop body
LE: loop exit
PB: predicated region body
PF: predicated region fallthrough
CT: control target
= control target key end

     0   :  { %s8193_s17 = smov 0   ;;  %s10332_s0 = inlined_call_operand.vmem [shape: bf16[2,104,16], index: 0, kind: input, shape index: {}]   ;;  %s10333_s1 = inlined_call_operand.vmem [shape: bf16[9,16,128], index: 1, kind: input, shape index: {}]   ;;  %s10334_s2 = inlined_call_operand.vmem [shape: f32[1,128], index: 2, kind: input, shape index: {}]   ;;  %s10335_s3 = inlined_call_operand.vmem [shape: bf16[9,128,128], index: 3, kind: input, shape index: {}]   ;;  %s10336_s4 = inlined_call_operand.vmem [shape: f32[1,128], index: 4, kind: input, shape index: {}]   ;;  %s10337_s5 = inlined_call_operand.vmem [shape: f32[1,128], index: 5, kind: input, shape index: {}]   ;;  %s10338_s6 = inlined_call_operand.vmem [shape: f32[1,128], index: 6, kind: input, shape index: {}]   ;;  %s10339_s7 = inlined_call_operand.vmem [shape: bf16[9,128,128], index: 7, kind: input, shape index: {}]   ;;  %s10340_s8 = inlined_call_operand.vmem [shape: f32[1,128], index: 8, kind: input, shape index: {}]   ;;  %s10341_s9 = inlined_call_operand.vmem [shape: f32[1,128], index: 9, kind: input, shape index: {}]   ;;  %s10342_s10 = inlined_call_operand.vmem [shape: f32[1,128], index: 10, kind: input, shape index: {}]   ;;  %s10343_s11 = inlined_call_operand.vmem [shape: bf16[2,72,128], index: 11, kind: output, shape index: {}]  }
   0x1 LB: > { %s5893_s18 = sadd.s32 4294967295, %s8126_s17   ;;  %p5897_p0 = scmp.ge.s32.totalorder %s8126_s17, 1  ;;  %s8126_s17 = sphi %s8193_s17, %s21_s17  }
   0x2   : > { %p337_p1 = scmp.lt.s32.totalorder %s8126_s17, 3 }
   0x4   : > { %p338_p2 = pnand %p5897_p0, %p337_p1 }
   0x5   : > { %v7815_v0 = vld [vmem:[%s10333_s1 + $0x8] sm:$0xff] (!%p338_p2)   ;;  %v8128_v1 = vmov (!%p338_p2), 0.0   ;;  %p377_p3 = scmp.lt.s32.totalorder (!%p338_p2), %s5893_s18, 1  ;;  %vm8129_vm0 = vmmov (!%p338_p2), 0   ;;  %vm10346_vm1 = vsmask.f32 (!%p338_p2), 4352 }
   0x6   : > { %341 = sbr.rel (%p338_p2) target bundleno = 2885 (0xb45), region = 64  ;;  %6910 = vmatprep.subr.bf16.mxu0 (!%p338_p2), %v8128_v1  ;;  %7756 = vmatprep.subr.bf16.mxu1 (!%p338_p2), %v8128_v1  ;;  %vm653_vm2 = vcmask (!%p338_p2), 130048   ;;  %v7821_v36 = vld [vmem:[%s10333_s1 + $0x10] sm:$0xff] (!%p338_p2)   ;;  %v7822_v38 = vld [vmem:[%s10333_s1] sm:$0xff] (!%p338_p2)   ;;  %vm744_vm3 = vcmask (!%p338_p2), 1044480   ;;  %v7824_v60 = vld [vmem:[%s10333_s1 + $0x18] sm:$0xff] (!%p338_p2)  }
   0x7   : > { %6911 = vmatpush3.bf16.msra.mxu0 (!%p338_p2), %v7815_v0  ;;  %7757 = vmatpush3.bf16.msra.mxu1 (!%p338_p2), %v7815_v0  ;;  %vm10345_vm4 = vsmask.f32 (!%p338_p2), 7424  ;;  %vm10344_vm5 = vcmask (!%p338_p2), 1046528   ;;  %s8131_s19 = smov (!%p338_p2), 124   ;;  %s8132_s29 = smov (!%p338_p2), 0.0  }
   0x8   : > { %6912 = vmatprep.mubr.msk.bf16.mxu0 (!%p338_p2), %vm8129_vm0, %v8128_v1  ;;  %6924 = vmatprep.mubr.msk.bf16.mxu1 (!%p338_p2), %vm8129_vm0, %v8128_v1 }
   0x9   : > { %6954 = vmatprep.subr.bf16.mxu0 (!%p338_p2), %v8128_v1  ;;  %6932 = vmatprep.subr.bf16.mxu1 (!%p338_p2), %v8128_v1 }
   0xd   : > { %s10402_s18 = smov (!%p377_p3, %s5893_s18), 1 }
   0xe   : > { %s7758_s21 = smul.u32 52, %s10402_s18 }
  0x10   : > { %s8218_s24 = scalar_lea.vmem %s10332_s0, %s7758_s21 }
  0x11   : > { %v561_v2 = vld [vmem:[%s8218_s24] sm:$0x8]  ;;  %v8222_v3 = vld [vmem:[%s8218_s24 + $0x4] sm:$0xf]  ;;  %v8225_v4 = vld [vmem:[%s8218_s24 + $0x8] sm:$0xf] }
  0x12   : > { %v8228_v5 = vld [vmem:[%s8218_s24 + $0xc] sm:$0xf]  ;;  %v8231_v6 = vcombine.low %v561_v2, %v8222_v3  ;;  %v8234_v7 = vld [vmem:[%s8218_s24 + $0x18] sm:$0xf]  ;;  %v8237_v8 = vld [vmem:[%s8218_s24 + $0x1c] sm:$0xf] }
  0x13   : > { %v8241_v9 = vcombine.low %v8225_v4, %v8228_v5  ;;  %v8244_v10 = vld [vmem:[%s8218_s24 + $0x20] sm:$0xf]  ;;  %v8247_v11 = vld [vmem:[%s8218_s24 + $0x24] sm:$0xf]  ;;  %v8251_v12 = vcombine.low %v8234_v7, %v8237_v8  ;;  %v8258_v16 = vld [vmem:[%s8218_s24 + $0x10] sm:$0xf] }
  0x14   : > { %v604_v13 = vshrl.u32 %v8231_v6, 16  ;;  %v607_v14 = vshll.u32 %v8231_v6, 16  ;;  %v5906_v15 = vcombine.low %v8244_v10, %v8247_v11  ;;  %v8265_v21 = vld [vmem:[%s8218_s24 + $0x14] sm:$0xf]  ;;  %v745_v47 = vrot.slane %v8231_v6, 3 }
  0x15   : > { %v612_v17 = vshrl.u32 %v8241_v9, 16  ;;  %v615_v18 = vshll.u32 %v8241_v9, 16  ;;  %v630_v19 = vshrl.u32 %v8251_v12, 16  ;;  %v633_v20 = vshll.u32 %v8251_v12, 16  ;;  %v570_v48 = vld [vmem:[%s8218_s24 + $0x24] sm:$0x7] }
  0x16   : > { %v606_v22 = vrot.slane %v604_v13, 3  ;;  %v609_v23 = vrot.slane %v607_v14, 4  ;;  %v639_v24 = vshrl.u32 %v5906_v15, 16  ;;  %v642_v25 = vshll.u32 %v5906_v15, 16  ;;  %v957_v49 = vld [vmem:[%s8218_s24 + $0x4] sm:$0x8] }
  0x17   : > { %v614_v26 = vrot.slane %v612_v17, 3  ;;  %v617_v27 = vrot.slane %v615_v18, 4  ;;  %v632_v28 = vrot.slane %v630_v19, 3  ;;  %v635_v29 = vrot.slane %v633_v20, 4  ;;  %v8295_v50 = vld [vmem:[%s8218_s24 + $0x8] sm:$0xf] }
  0x18   : > { %v610_v30 = vor.u32 %v609_v23, %v606_v22  ;;  %v641_v31 = vrot.slane %v639_v24, 3  ;;  %v644_v32 = vrot.slane %v642_v25, 4  ;;  %v8269_v33 = vcombine.low %v8258_v16, %v8265_v21  ;;  %v8303_v53 = vld [vmem:[%s8218_s24 + $0xc] sm:$0xf]  ;;  %v8306_v54 = vld [vmem:[%s8218_s24 + $0x10] sm:$0xf] }
  0x19   : > { %v618_v34 = vor.u32 %v617_v27, %v614_v26  ;;  %v636_v35 = vor.u32 %v635_v29, %v632_v28  ;;  %v746_v51 = vrot.slane %v8241_v9, 3  ;;  %v750_v52 = vrot.slane %v8251_v12, 3  ;;  %v8311_v55 = vld [vmem:[%s8218_s24 + $0x14] sm:$0xf]  ;;  %v8315_v57 = vld [vmem:[%s8218_s24 + $0x18] sm:$0xf] }
  0x1a   : > { %v645_v37 = vor.u32 %v644_v32, %v641_v31  ;;  %v621_v39 = vshrl.u32 %v8269_v33, 16  ;;  %v624_v40 = vshll.u32 %v8269_v33, 16  ;;  %v5913_v56 = vcombine.low %v8244_v10, %v570_v48  ;;  %v8318_v58 = vld [vmem:[%s8218_s24 + $0x1c] sm:$0xf]  ;;  %v8321_v59 = vld [vmem:[%s8218_s24 + $0x20] sm:$0xf] }
  0x1b   : > { %v619_v41 = vsel %vm10346_vm1, %v610_v30, %v618_v34  ;;  %v8327_v61 = vld [vmem:[%s8218_s24 + $0x24] sm:$0xf]  ;;  %v5935_v63 = vcombine.low %v957_v49, %v8295_v50  ;;  %v8332_v0 = vld [vmem:[%s8218_s24 + $0x28] sm:$0xf]  ;;  %v747_v2 = vsel %vm744_vm3, %v745_v47, %v746_v51  ;;  %v5936_v6 = vcombine.low %v8303_v53, %v8306_v54  ;;  %v8339_v13 = vld [vmem:[%s8218_s24 + $0xc] sm:$0xf] }
  0x1c   : > { %6913 = vmatmul.mubr.msk.bf16.vlgmr.msra.gmra.mrb[0].mxu0 %vm653_vm2, %v619_v41  ;;  %v646_v42 = vsel %vm10346_vm1, %v636_v35, %v645_v37  ;;  %v623_v43 = vrot.slane %v621_v39, 3  ;;  %v626_v44 = vrot.slane %v624_v40, 4  ;;  %v1251_v9 = vld [vmem:[%s8218_s24 + $0x8] sm:$0xf]  ;;  %v748_v14 = vrot.slane %v8269_v33, 3  ;;  %v7825_v29 = vld [vmem:[%s10333_s1 + $0x20] sm:$0xff]  }
  0x1d   : > { %6925 = vmatmul.mubr.msk.bf16.vlgmr.msra.gmra.mrb[0].mxu1 %vm653_vm2, %v646_v42  ;;  %6955 = vmatpush3.bf16.msra.mxu0 %v7821_v36  ;;  %v8342_v15 = vrot.slane %v5913_v56, 3  ;;  %v5937_v17 = vcombine.low %v8311_v55, %v8315_v57  ;;  %v5938_v18 = vcombine.low %v8318_v58, %v8321_v59  ;;  %v8350_v19 = vld [vmem:[%s8218_s24 + $0x10] sm:$0xf]  ;;  %v8353_v20 = vld [vmem:[%s8218_s24 + $0x14] sm:$0xf]  ;;  %v996_v22 = vshrl.u32 %v5935_v63, 16 }
  0x1e   : > { %6933 = vmatpush3.bf16.msra.mxu1 %v7822_v38  ;;  %6916 = vmatprep.mubr.msk.bf16.mxu0 %vm8129_vm0, %v8128_v1  ;;  %v627_v45 = vor.u32 %v626_v44, %v623_v43  ;;  %v999_v23 = vshll.u32 %v5935_v63, 16  ;;  %v5939_v24 = vcombine.low %v8327_v61, %v8332_v0  ;;  %v8361_v25 = vld [vmem:[%s8218_s24 + $0x18] sm:$0xf]  ;;  %v8364_v26 = vld [vmem:[%s8218_s24 + $0x1c] sm:$0xf]  ;;  %v1004_v27 = vshrl.u32 %v5936_v6, 16 }
  0x1f   : > { %6928 = vmatprep.mubr.msk.bf16.mxu1 %vm8129_vm0, %v8128_v1  ;;  %6976 = vmatprep.subr.bf16.mxu1 %v8128_v1  ;;  %v1007_v28 = vshll.u32 %v5936_v6, 16  ;;  %v1013_v30 = vshrl.u32 %v5937_v17, 16  ;;  %v1016_v31 = vshll.u32 %v5937_v17, 16  ;;  %v1022_v32 = vshrl.u32 %v5938_v18, 16  ;;  %v8382_v38 = vld [vmem:[%s8218_s24 + $0x20] sm:$0xf] }
  0x20   : > { %6998 = vmatprep.subr.bf16.mxu0 %v8128_v1  ;;  %v628_v46 = vsel %vm10346_vm1, %v618_v34, %v627_v45  ;;  %v637_v62 = vsel %vm10346_vm1, %v627_v45, %v636_v35  ;;  %v8373_v33 = vcombine.low %v1251_v9, %v8339_v13  ;;  %v5922_v34 = vcombine.low %v8222_v3, %v8225_v4  ;;  %v8390_v43 = vld [vmem:[%s8218_s24 + $0x24] sm:$0xf] }
  0x21   : > { %v8379_v35 = vcombine.low %v8350_v19, %v8353_v20  ;;  %v1025_v36 = vshll.u32 %v5938_v18, 16  ;;  %v749_v39 = vsel %vm744_vm3, %v746_v51, %v748_v14  ;;  %v998_v40 = vrot.slane %v996_v22, 3 }
  0x22   : > { %v1034_v41 = vshll.u32 %v5939_v24, 16  ;;  %v8387_v42 = vcombine.low %v8361_v25, %v8364_v26  ;;  %v1001_v3 = vrot.slane %v999_v23, 4  ;;  %v1293_v4 = vshll.u32 %v8373_v33, 16 }
  0x23   : > { %v1006_v44 = vrot.slane %v1004_v27, 3  ;;  %v1009_v45 = vrot.slane %v1007_v28, 4  ;;  %v1298_v47 = vshll.u32 %v8379_v35, 16  ;;  %v1018_v48 = vrot.slane %v1016_v31, 4 }
  0x24   : > { %6917 = vmatmul.mubr.msk.bf16.gmra.mrb[4].mxu0 %vm653_vm2, %v628_v46  ;;  %v1015_v46 = vrot.slane %v1013_v30, 3  ;;  %v1024_v49 = vrot.slane %v1022_v32, 3  ;;  %v1027_v51 = vrot.slane %v1025_v36, 4  ;;  %v1036_v63 = vrot.slane %v1034_v41, 4 }
  0x25   : > { %6929 = vmatmul.mubr.msk.bf16.gmra.mrb[4].mxu1 %vm653_vm2, %v645_v37  ;;  %6920 = vmatprep.mubr.msk.bf16.mxu0 %vm8129_vm0, %v8128_v1  ;;  %v1031_v37 = vshrl.u32 %v5939_v24, 16  ;;  %v1306_v6 = vshll.u32 %v8387_v42, 16  ;;  %v8410_v9 = vcombine.low %v8382_v38, %v8390_v43  ;;  %v8413_v17 = vrot.slane %v1293_v4, 1 }
  0x26   : > { %6934 = vmatprep.mubr.msk.bf16.mxu1 %vm8129_vm0, %v8128_v1  ;;  %v1302_v18 = vshrl.u32 %v8379_v35, 16  ;;  %v5923_v22 = vcombine.low %v8228_v5, %v8258_v16  ;;  %v8418_v23 = vrot.slane %v1298_v47, 1  ;;  %v1310_v24 = vshrl.u32 %v8387_v42, 16 }
  0x27   : > { %v8396_v56 = vrot.slane %v1031_v37, 3  ;;  %v751_v27 = vsel %vm744_vm3, %v748_v14, %v750_v52  ;;  %v8424_v28 = vrot.slane %v1306_v6, 1  ;;  %v1318_v5 = vshrl.u32 %v8410_v9, 16  ;;  %v7857_v6 = vld [vmem:[%s8218_s24 + $0x1c] sm:$0xff]  }
  0x28   : > { %v5924_v14 = vcombine.low %v8265_v21, %v8234_v7  ;;  %v753_v31 = vsel %vm744_vm3, %v750_v52, %v8342_v15  ;;  %v5925_v7 = vcombine.low %v8237_v8, %v8244_v10  ;;  %v1002_v12 = vor.u32 %v1001_v3, %v998_v40  ;;  %v7833_v8 = vld [vmem:[%s10333_s1 + $0x28] sm:$0xff]  }
  0x29   : > { %v1010_v21 = vor.u32 %v1009_v45, %v1006_v44  ;;  %v5926_v52 = vcombine.low %v8247_v11, %v8247_v11  ;;  %v7836_v11 = vld [vmem:[%s10333_s1 + $0x30] sm:$0xff]   ;;  %v5948_v36 = vcombine.low %v8295_v50, %v8303_v53  ;;  %v5949_v40 = vcombine.low %v8306_v54, %v8311_v55  ;;  %v1544_v44 = vld [vmem:[%s8218_s24 + $0xc] sm:$0xf] }
  0x2a   : > { %v1037_v53 = vor.u32 %v1036_v63, %v8396_v56  ;;  %v5950_v41 = vcombine.low %v8315_v57, %v8318_v58  ;;  %v5951_v54 = vcombine.low %v8321_v59, %v8327_v61  ;;  %v5952_v57 = vcombine.low %v8332_v0, %v8332_v0  ;;  %v7845_v58 = vld [vmem:[%s10333_s1 + $0x38] sm:$0xff]   ;;  %v7848_v0 = vld [vmem:[%s10333_s1 + $0x40] sm:$0xff]   ;;  %v1545_v45 = vld [vmem:[%s8218_s24 + $0x10] sm:$0xf] }
  0x2b   : > { %v1011_v10 = vsel %vm10346_vm1, %v1002_v12, %v1010_v21  ;;  %v1304_v61 = vor.u32 %v1302_v18, %v8418_v23  ;;  %v1312_v35 = vor.u32 %v1310_v24, %v8424_v28 }
  0x2c   : > { %6921 = vmatmul.mubr.msk.bf16.gmra.mrb[8].mxu0 %vm653_vm2, %v637_v62  ;;  %v1260_v62 = vld [vmem:[%s8218_s24 + $0x2c] sm:$0x1] }
  0x2d   : > { %6935 = vmatmul.mubr.msk.bf16.vlgmr.msra.gmra.mrb[8].mxu1 %vm653_vm2, %v747_v2  ;;  %6956 = vmatprep.mubr.msk.bf16.mxu0 %vm8129_vm0, %v8128_v1  ;;  %v1291_v2 = vshrl.u32 %v8373_v33, 16  ;;  %v5974_v33 = vcombine.low %v8339_v13, %v8350_v19  ;;  %v1309_v4 = vsel %vm10345_vm4, %v1304_v61, %v8424_v28  ;;  %v5975_v13 = vcombine.low %v8353_v20, %v8361_v25  ;;  %v7861_v61 = vld [vmem:[%s10335_s3 + $0x40] sm:$0xff]  }
  0x2e   : > { %6977 = vmatpush3.bf16.msra.mxu1 %v7824_v60  ;;  %6938 = vmatprep.mubr.msk.bf16.mxu1 %vm8129_vm0, %v8128_v1  ;;  %v8399_v60 = vld [vmem:[%s8218_s24 + $0x28] sm:$0xf]  ;;  %v5976_v25 = vcombine.low %v8364_v26, %v8382_v38  ;;  %v7856_v26 = vld [vmem:[%s8218_s24 + $0x14] sm:$0xff]  }
  0x2f   : > { %7020 = vmatprep.subr.bf16.mxu1 %v8128_v1  ;;  %v8428_v30 = vcombine.low %v8399_v60, %v1260_v62  ;;  %v1296_v55 = vor.u32 %v8413_v17, %v1291_v2  ;;  %v1590_v62 = vshll.u32 %v7856_v26, 16  ;;  %v1594_v18 = vshrl.u32 %v7856_v26, 16 }
  0x30   : > { %v1732_v24 = vrot.slane %v7856_v26, 1  ;;  %v7866_v26 = vld [vmem:[%s10335_s3 + $0x10] sm:$0xff]  }
  0x31   : > { %v1322_v16 = vshll.u32 %v8428_v30, 16  ;;  %v1301_v59 = vsel %vm10345_vm4, %v1296_v55, %v8418_v23  ;;  %v1326_v47 = vshrl.u32 %v8428_v30, 16  ;;  %v1592_v2 = vrot.slane %v1590_v62, 1 }
  0x34   : > { %6957 = vmatmul.mubr.msk.bf16.vlgmr.msra.gmra.mrb[12].mxu0 %vm653_vm2, %v5922_v34  ;;  %v8446_v34 = vrot.slane %v1322_v16, 1  ;;  %v1602_v16 = vshrl.u32 %v7857_v6, 16 }
  0x35   : > { %6939 = vmatmul.mubr.msk.bf16.gmra.mrb[12].mxu1 %vm653_vm2, %v749_v39  ;;  %6999 = vmatpush3.bf16.msra.mxu0 %v7825_v29  ;;  %v1314_v29 = vshll.u32 %v8410_v9, 16  ;;  %v1028_v39 = vor.u32 %v1027_v51, %v1024_v49 }
  0x36   : > { %6942 = vmatprep.mubr.msk.bf16.mxu1 %vm8129_vm0, %v8128_v1  ;;  %6960 = vmatprep.mubr.msk.bf16.mxu0 %vm8129_vm0, %v8128_v1  ;;  %v1328_v49 = vor.u32 %v1326_v47, %v8446_v34  ;;  %v7865_v47 = vld [vmem:[%s10335_s3 + $0x50] sm:$0xff]  }
  0x37   : > { %7042 = vmatprep.subr.bf16.mxu0 %v8128_v1  ;;  %v8444_v32 = vrot.slane %v1314_v29, 1  ;;  %v1038_v3 = vsel %vm10346_vm1, %v1028_v39, %v1037_v53  ;;  %v7859_v29 = vld [vmem:[%s8218_s24 + $0x24] sm:$0xff]  }
  0x39   : > { %v1317_v19 = vsel %vm10345_vm4, %v1312_v35, %v8444_v32  ;;  %v1320_v20 = vor.u32 %v1318_v5, %v8444_v32 }
  0x3b   : > { %v1325_v42 = vsel %vm10345_vm4, %v1320_v20, %v8446_v34 }
  0x3c   : > { %6961 = vmatmul.mubr.msk.bf16.gmra.mrb[16].mxu0 %vm653_vm2, %v5923_v22  ;;  %v1598_v22 = vshll.u32 %v7857_v6, 16 }
  0x3d   : > { %6943 = vmatmul.mubr.msk.bf16.gmra.mrb[16].mxu1 %vm653_vm2, %v751_v27  ;;  %6964 = vmatprep.mubr.msk.bf16.mxu0 %vm8129_vm0, %v8128_v1  ;;  %v1596_v27 = vor.u32 %v1594_v18, %v1592_v2 }
  0x3e   : > { %6946 = vmatprep.mubr.msk.bf16.mxu1 %vm8129_vm0, %v8128_v1  ;;  %v1600_v28 = vrot.slane %v1598_v22, 1 }
  0x40   : > { %v1601_v5 = vsel %vm10345_vm4, %v1596_v27, %v1600_v28  ;;  %v1604_v32 = vor.u32 %v1602_v16, %v1600_v28 }
  0x44   : > { %6965 = vmatmul.mubr.msk.bf16.gmra.mrb[20].mxu0 %vm653_vm2, %v5924_v14  ;;  %v1606_v14 = vshll.u32 %v7859_v29, 16 }
  0x45   : > { %6947 = vmatmul.mubr.msk.bf16.gmra.mrb[20].mxu1 %vm653_vm2, %v753_v31  ;;  %6968 = vmatprep.mubr.msk.bf16.mxu0 %vm8129_vm0, %v8128_v1  ;;  %v1734_v31 = vrot.slane %v7857_v6, 1  ;;  %v7868_v6 = vld [vmem:[%s10335_s3 + $0x18] sm:$0xff]  }
  0x46   : > { %6950 = vmatprep.mubr.msk.bf16.mxu1 %vm8129_vm0, %v8128_v1  ;;  %v1608_v34 = vrot.slane %v1606_v14, 1 }
  0x47   : > { %v1735_v12 = vsel %vm10344_vm5, %v1732_v24, %v1734_v31 }
  0x4c   : > { %6969 = vmatmul.mubr.msk.bf16.gmra.mrb[24].mxu0 %vm653_vm2, %v5925_v7  ;;  %v7860_v7 = vld [vmem:[%s8218_s24 + $0x2c] sm:$0x1f]  }
  0x4d   : > { %6951 = vmatmul.mubr.msk.bf16.gmra.mrb[24].mxu1 %vm653_vm2, %v8342_v15  ;;  %6972 = vmatprep.mubr.msk.bf16.mxu0 %vm8129_vm0, %v8128_v1  ;;  %v1019_v15 = vor.u32 %v1018_v48, %v1015_v46  ;;  %v5987_v46 = vcombine.low %v1544_v44, %v1545_v45  ;;  %v5977_v48 = vcombine.low %v8390_v43, %v8399_v60  ;;  %v1723_v43 = vld [vmem:[%s8218_s24 + $0xc] sm:$0xe]  ;;  %v7854_v60 = vld [vmem:[%s8218_s24 + $0x2c] ss:$0 sps:$4 sm:$0xff]  }
  0x4e   : > { %6978 = vmatprep.mubr.msk.bf16.mxu1 %vm8129_vm0, %v8128_v1  ;;  %v6000_v9 = vcombine.low %v1723_v43, %v1545_v45  ;;  %v7862_v45 = vld [vmem:[%s10335_s3 + $0x48] sm:$0xff]  }
  0x4f   : > { %v1020_v37 = vsel %vm10346_vm1, %v1010_v21, %v1019_v15  ;;  %v1029_v50 = vsel %vm10346_vm1, %v1019_v15, %v1028_v39  ;;  %v1585_v38 = vshll.u32 %v5987_v46, 16  ;;  %v1583_v51 = vshrl.u32 %v5987_v46, 16 }
  0x50   : > { %v1731_v23 = vrot.slane %v6000_v9, 1  ;;  %v1609_v21 = vsel %vm10345_vm4, %v1604_v32, %v1608_v34  ;;  %v1618_v39 = vshrl.u32 %v7860_v7, 16  ;;  %v7867_v9 = vld [vmem:[%s10335_s3 + $0x58] sm:$0xff]  }
  0x51   : > { %v1587_v56 = vrot.slane %v1585_v38, 1 }
  0x52   : > { %v1733_v30 = vsel %vm10344_vm5, %v1731_v23, %v1732_v24 }
  0x53   : > { %v1588_v63 = vor.u32 %v1587_v56, %v1583_v51 }
  0x54   : > { %6973 = vmatmul.mubr.msk.bf16.gmra.mrb[28].mxu0 %vm653_vm2, %v5926_v52  ;;  %v1610_v52 = vshrl.u32 %v7859_v29, 16 }
  0x55   : > { %6979 = vmatmul.mubr.msk.bf16.vlgmr.msra.gmra.mrb[28].mxu1 %vm653_vm2, %v1011_v10  ;;  %7000 = vmatprep.mubr.msk.bf16.mxu0 %vm8129_vm0, %v8128_v1  ;;  %v1593_v17 = vsel %vm10345_vm4, %v1588_v63, %v1592_v2  ;;  %v1736_v10 = vrot.slane %v7859_v29, 1 }
  0x56   : > { %7021 = vmatpush3.bf16.msra.mxu1 %v7833_v8  ;;  %6982 = vmatprep.mubr.msk.bf16.mxu1 %vm8129_vm0, %v8128_v1  ;;  %v1614_v8 = vshll.u32 %v7860_v7, 16  ;;  %v1612_v15 = vor.u32 %v1610_v52, %v1608_v34 }
  0x57   : > { %7064 = vmatprep.subr.bf16.mxu1 %v8128_v1 }
  0x5c   : > { %7001 = vmatmul.mubr.msk.bf16.vlgmr.msra.gmra.mrb[32].mxu0 %vm653_vm2, %v5948_v36  ;;  %v1737_v36 = vsel %vm10344_vm5, %v1734_v31, %v1736_v10  ;;  %v7872_v31 = vld [vmem:[%s10335_s3 + $0x28] sm:$0xff]  }
  0x5d   : > { %6983 = vmatmul.mubr.msk.bf16.gmra.mrb[32].mxu1 %vm653_vm2, %v1020_v37  ;;  %7043 = vmatpush3.bf16.msra.mxu0 %v7836_v11  ;;  %v1616_v11 = vrot.slane %v1614_v8, 1 }
  0x5e   : > { %6986 = vmatprep.mubr.msk.bf16.mxu1 %vm8129_vm0, %v8128_v1  ;;  %7004 = vmatprep.mubr.msk.bf16.mxu0 %vm8129_vm0, %v8128_v1 }
  0x5f   : > { %7086 = vmatprep.subr.bf16.mxu0 %v8128_v1  ;;  %v1617_v37 = vsel %vm10345_vm4, %v1612_v15, %v1616_v11 }
  0x64   : > { %7005 = vmatmul.mubr.msk.bf16.gmra.mrb[36].mxu0 %vm653_vm2, %v5949_v40  ;;  %v1738_v40 = vrot.slane %v7860_v7, 1  ;;  %v8130_v7 = vmov 0  }
  0x65   : > { %6987 = vmatmul.mubr.msk.bf16.gmra.mrb[36].mxu1 %vm653_vm2, %v1029_v50  ;;  %7008 = vmatprep.mubr.msk.bf16.mxu0 %vm8129_vm0, %v8128_v1  ;;  %v1620_v50 = vor.u32 %v1618_v39, %v1616_v11  ;;  %553 = vst [vmem:[#allocation2] sm:$0xf] %v8130_v7  ;;  %554 = vst [vmem:[#allocation2 + $0x4] sm:$0xf] %v8130_v7 }
  0x66   : > { %6990 = vmatprep.mubr.msk.bf16.mxu1 %vm8129_vm0, %v8128_v1  ;;  %555 = vst [vmem:[#allocation2 + $0x2c] sm:$0xf] %v8130_v7  ;;  %556 = vst [vmem:[#allocation2 + $0x30] sm:$0xf] %v8130_v7 }
  0x67   : > { %557 = vst [vmem:[#allocation3] sm:$0xf] %v8130_v7  ;;  %558 = vst [vmem:[#allocation3 + $0x4] sm:$0xf] %v8130_v7 }
  0x68   : > { %559 = vst [vmem:[#allocation3 + $0x2c] sm:$0xf] %v8130_v7  ;;  %560 = vst [vmem:[#allocation3 + $0x30] sm:$0xf] %v8130_v7 }
  0x6c   : > { %7009 = vmatmul.mubr.msk.bf16.gmra.mrb[40].mxu0 %vm653_vm2, %v5950_v41 }
  0x6d   : > { %6991 = vmatmul.mubr.msk.bf16.gmra.mrb[40].mxu1 %vm653_vm2, %v1038_v3  ;;  %7012 = vmatprep.mubr.msk.bf16.mxu0 %vm8129_vm0, %v8128_v1 }
  0x6e   : > { %6994 = vmatprep.mubr.msk.bf16.mxu1 %vm8129_vm0, %v8128_v1 }
  0x74   : > { %7013 = vmatmul.mubr.msk.bf16.gmra.mrb[44].mxu0 %vm653_vm2, %v5951_v54 }
  0x75   : > { %6995 = vmatmul.mubr.msk.bf16.gmra.mrb[44].mxu1 %vm653_vm2, %v1037_v53  ;;  %7016 = vmatprep.mubr.msk.bf16.mxu0 %vm8129_vm0, %v8128_v1  ;;  %v1739_v53 = vsel %vm10344_vm5, %v1736_v10, %v1738_v40 }
  0x76   : > { %7022 = vmatprep.mubr.msk.bf16.mxu1 %vm8129_vm0, %v8128_v1 }
  0x7c   : > { %7017 = vmatmul.mubr.msk.bf16.gmra.mrb[48].mxu0 %vm653_vm2, %v5952_v57 }
  0x7d   : > { %7023 = vmatmul.mubr.msk.bf16.vlgmr.msra.gmra.mrb[48].mxu1 %vm653_vm2, %v1301_v59  ;;  %7044 = vmatprep.mubr.msk.bf16.mxu0 %vm8129_vm0, %v8128_v1 }
  0x7e   : > { %7065 = vmatpush3.bf16.msra.mxu1 %v7845_v58  ;;  %7026 = vmatprep.mubr.msk.bf16.mxu1 %vm8129_vm0, %v8128_v1 }
  0x7f   : > { %7108 = vmatprep.subr.bf16.mxu1 %v8128_v1 }
  0x84   : > { %7045 = vmatmul.mubr.msk.bf16.vlgmr.msra.gmra.mrb[52].mxu0 %vm653_vm2, %v5974_v33  ;;  %v7863_v33 = vld [vmem:[%s10335_s3] sm:$0xff]  }
  0x85   : > { %7027 = vmatmul.mubr.msk.bf16.gmra.mrb[52].mxu1 %vm653_vm2, %v1309_v4  ;;  %7087 = vmatpush3.bf16.msra.mxu0 %v7848_v0 }
  0x86   : > { %7030 = vmatprep.mubr.msk.bf16.mxu1 %vm8129_vm0, %v8128_v1  ;;  %7048 = vmatprep.mubr.msk.bf16.mxu0 %vm8129_vm0, %v8128_v1 }
  0x87   : > { %7144 = vmatprep.subr.bf16.mxu0 %v8128_v1 }
  0x8c   : > { %7049 = vmatmul.mubr.msk.bf16.gmra.mrb[56].mxu0 %vm653_vm2, %v5975_v13 }
  0x8d   : > { %7031 = vmatmul.mubr.msk.bf16.gmra.mrb[56].mxu1 %vm653_vm2, %v1317_v19  ;;  %7052 = vmatprep.mubr.msk.bf16.mxu0 %vm8129_vm0, %v8128_v1 }
  0x8e   : > { %7034 = vmatprep.mubr.msk.bf16.mxu1 %vm8129_vm0, %v8128_v1 }
  0x94   : > { %7053 = vmatmul.mubr.msk.bf16.gmra.mrb[60].mxu0 %vm653_vm2, %v5976_v25 }
  0x95   : > { %7035 = vmatmul.mubr.msk.bf16.gmra.mrb[60].mxu1 %vm653_vm2, %v1325_v42  ;;  %7056 = vmatprep.mubr.msk.bf16.mxu0 %vm8129_vm0, %v8128_v1  ;;  %v7864_v42 = vld [vmem:[%s10335_s3 + $0x8] sm:$0xff]  }
  0x96   : > { %7038 = vmatprep.mubr.msk.bf16.mxu1 %vm8129_vm0, %v8128_v1 }
  0x9c   : > { %7057 = vmatmul.mubr.msk.bf16.gmra.mrb[64].mxu0 %vm653_vm2, %v5977_v48 }
  0x9d   : > { %7039 = vmatmul.mubr.msk.bf16.gmra.mrb[64].mxu1 %vm653_vm2, %v1328_v49  ;;  %7060 = vmatprep.mubr.msk.bf16.mxu0 %vm8129_vm0, %v8128_v1 }
  0x9e   : > { %7066 = vmatprep.mubr.msk.bf16.mxu1 %vm8129_vm0, %v8128_v1 }
  0xa4   : > { %7061 = vmatmul.mubr.msk.bf16.gmra.mrb[68].mxu0 %vm653_vm2, %v7854_v60 }
  0xa5   : > { %7067 = vmatmul.mubr.msk.bf16.vlgmr.msra.gmra.mrb[68].mxu1 %vm653_vm2, %v1593_v17  ;;  %7088 = vmatprep.mubr.msk.bf16.mxu0 %vm8129_vm0, %v8128_v1  ;;  %v7870_v17 = vld [vmem:[%s10335_s3 + $0x20] sm:$0xff]  }
  0xa6   : > { %7070 = vmatprep.mubr.msk.bf16.mxu1 %vm8129_vm0, %v8128_v1  ;;  %7109 = vmatpush3.bf16.msra.mxu1 %v7861_v61 }
  0xa7   : > { %7110 = vmatprep.subr.bf16.mxu1 %v8128_v1 }
  0xaa   : > { %7111 = vmatpush3.bf16.msra.mxu1 %v7862_v45 }
  0xab   : > { %7112 = vmatprep.subr.bf16.mxu1 %v8128_v1 }
  0xac   : > { %7089 = vmatmul.mubr.msk.bf16.vlgmr.msra.gmra.mrb[72].mxu0 %vm653_vm2, %v1733_v30  ;;  %v7869_v30 = vld [vmem:[%s10335_s3 + $0x60] sm:$0xff]  }
  0xad   : > { %7071 = vmatmul.mubr.msk.bf16.gmra.mrb[72].mxu1 %vm653_vm2, %v1601_v5  ;;  %7092 = vmatprep.mubr.msk.bf16.mxu0 %vm8129_vm0, %v8128_v1 }
  0xae   : > { %7074 = vmatprep.mubr.msk.bf16.mxu1 %vm8129_vm0, %v8128_v1  ;;  %7145 = vmatpush3.bf16.msra.mxu0 %v7863_v33 }
  0xaf   : > { %7146 = vmatprep.subr.bf16.mxu0 %v8128_v1  ;;  %7113 = vmatpush3.bf16.msra.mxu1 %v7865_v47 }
  0xb0   : > { %7114 = vmatprep.subr.bf16.mxu1 %v8128_v1 }
  0xb2   : > { %7147 = vmatpush3.bf16.msra.mxu0 %v7864_v42 }
  0xb3   : > { %7148 = vmatprep.subr.bf16.mxu0 %v8128_v1  ;;  %7115 = vmatpush3.bf16.msra.mxu1 %v7867_v9 }
  0xb4   : > { %7093 = vmatmul.mubr.msk.bf16.gmra.mrb[76].mxu0 %vm653_vm2, %v1735_v12  ;;  %7116 = vmatprep.subr.bf16.mxu1 %v8128_v1  ;;  %v7871_v12 = vld [vmem:[%s10335_s3 + $0x68] sm:$0xff]  }
  0xb5   : > { %7075 = vmatmul.mubr.msk.bf16.gmra.mrb[76].mxu1 %vm653_vm2, %v1609_v21  ;;  %7096 = vmatprep.mubr.msk.bf16.mxu0 %vm8129_vm0, %v8128_v1  ;;  %v7873_v21 = vld [vmem:[%s10335_s3 + $0x30] sm:$0xff]  }
  0xb6   : > { %7078 = vmatprep.mubr.msk.bf16.mxu1 %vm8129_vm0, %v8128_v1  ;;  %7149 = vmatpush3.bf16.msra.mxu0 %v7866_v26 }
  0xb7   : > { %7150 = vmatprep.subr.bf16.mxu0 %v8128_v1  ;;  %7117 = vmatpush3.bf16.msra.mxu1 %v7869_v30 }
  0xb8   : > { %7118 = vmatprep.subr.bf16.mxu1 %v8128_v1 }
  0xba   : > { %7151 = vmatpush3.bf16.msra.mxu0 %v7868_v6 }
  0xbb   : > { %7152 = vmatprep.subr.bf16.mxu0 %v8128_v1  ;;  %7119 = vmatpush3.bf16.msra.mxu1 %v7871_v12 }
  0xbc   : > { %7097 = vmatmul.mubr.msk.bf16.gmra.mrb[80].mxu0 %vm653_vm2, %v1737_v36  ;;  %7120 = vmatprep.subr.bf16.mxu1 %v8128_v1 }
  0xbd   : > { %7079 = vmatmul.mubr.msk.bf16.gmra.mrb[80].mxu1 %vm653_vm2, %v1617_v37  ;;  %7100 = vmatprep.mubr.msk.bf16.mxu0 %vm8129_vm0, %v8128_v1 }
  0xbe   : > { %7082 = vmatprep.mubr.msk.bf16.mxu1 %vm8129_vm0, %v8128_v1  ;;  %7153 = vmatpush3.bf16.msra.mxu0 %v7870_v17 }
  0xbf   : > { %7154 = vmatprep.subr.bf16.mxu0 %v8128_v1 }
  0xc2   : > { %7155 = vmatpush3.bf16.msra.mxu0 %v7872_v31 }
  0xc3   : > { %7156 = vmatprep.subr.bf16.mxu0 %v8128_v1 }
  0xc4   : > { %7101 = vmatmul.mubr.msk.bf16.gmra.mrb[84].mxu0 %vm653_vm2, %v1739_v53  ;;  %v7874_v53 = vld [vmem:[%s10335_s3 + $0x70] sm:$0xff]  }
  0xc5   : > { %7083 = vmatmul.mubr.msk.bf16.gmra.mrb[84].mxu1 %vm653_vm2, %v1620_v50  ;;  %7104 = vmatprep.mubr.msk.bf16.mxu0 %vm8129_vm0, %v8128_v1 }
  0xc6   : > { %7124 = vmatprep.mubr.msk.bf16.mxu1 %vm8129_vm0, %v8128_v1  ;;  %7157 = vmatpush3.bf16.msra.mxu0 %v7873_v21 }
  0xc7   : > { %7158 = vmatprep.subr.bf16.mxu0 %v8128_v1  ;;  %7121 = vmatpush3.bf16.msra.mxu1 %v7874_v53 }
  0xc8   : > { %7122 = vmatprep.subr.bf16.mxu1 %v8128_v1 }
  0xcc   : > { %7105 = vmatmul.mubr.msk.bf16.gmra.mrb[88].mxu0 %vm653_vm2, %v1738_v40 }
  0xcd   : > { %7160 = vmatprep.mubr.msk.bf16.mxu0 %vm8129_vm0, %v8128_v1 }
  0xef   : > { %v703_v41 = vpop.f32.mrb[0].mxu0 }
  0xf0   : > { %v6914_v3 = vpop.f32.mrb[1].mxu0  ;;  %v8635_v54 = vpop.f32.mrb[0].mxu1 }
  0xf1   : > { %v706_v55 = vpop.f32.mrb[2].mxu0  ;;  %v6926_v57 = vpop.f32.mrb[1].mxu1 }
  0xf2   : > { %v6915_v58 = vpop.f32.mrb[3].mxu0  ;;  %v8637_v59 = vpop.f32.mrb[2].mxu1  ;;  %v7876_v57 = vld [vmem:[%s10335_s3 + $0x78] sm:$0xff]  }
  0xf3   : > { %v6927_v0 = vpop.f32.mrb[3].mxu1  ;;  %7123 = vmatpush3.bf16.msra.mxu1 %v7876_v57 }
  0xf4   : > { %7180 = vmatprep.subr.bf16.mxu1 %v8128_v1 }
  0xf7   : > { %v711_v4 = vpop.f32.mrb[4].mxu0 }
  0xf8   : > { %v6918_v35 = vpop.f32.mrb[5].mxu0  ;;  %v8646_v13 = vpop.f32.mrb[4].mxu1 }
  0xf9   : > { %v714_v19 = vpop.f32.mrb[6].mxu0  ;;  %v6930_v44 = vpop.f32.mrb[5].mxu1 }
  0xfa   : > { %v6919_v20 = vpop.f32.mrb[7].mxu0  ;;  %v738_v25 = vpop.f32.mrb[6].mxu1 }
  0xfb   : > { %v6931_v46 = vpop.f32.mrb[7].mxu1 }
  0xff   : > { %v719_v38 = vpop.f32.mrb[8].mxu0 }
 0x100   : > { %v809_v48 = vpop.f32.mrb[8].mxu1  ;;  %v6922_v49 = vpop.f32.mrb[9].mxu0 }
 0x101   : > { %v810_v51 = vadd.f32 %v809_v48, %v703_v41  ;;  %v6936_v56 = vpop.f32.mrb[9].mxu1  ;;  %v722_v62 = vpop.f32.mrb[10].mxu0  ;;  %v7875_v41 = vld [vmem:[%s10335_s3 + $0x38] sm:$0xff]  }
 0x102   : > { %v812_v63 = vpop.f32.mrb[10].mxu1  ;;  %v6923_v2 = vpop.f32.mrb[11].mxu0  ;;  %7159 = vmatpush3.bf16.msra.mxu0 %v7875_v41 }
 0x103   : > { %v813_v43 = vadd.f32 %v812_v63, %v706_v55  ;;  %v6937_v60 = vpop.f32.mrb[11].mxu1  ;;  %7216 = vmatprep.subr.bf16.mxu0 %v8128_v1 }
 0x107   : > { %v910_v18 = vpop.f32.mrb[12].mxu0 }
 0x108   : > { %v817_v22 = vpop.f32.mrb[12].mxu1  ;;  %v6958_v23 = vpop.f32.mrb[13].mxu0  ;;  %v8675_v24 = vadd.f32 %v910_v18, %v810_v51 }
 0x109   : > { %v818_v27 = vadd.f32 %v817_v22, %v711_v4  ;;  %v6940_v28 = vpop.f32.mrb[13].mxu1  ;;  %v913_v29 = vpop.f32.mrb[14].mxu0 }
 0x10a   : > { %v820_v5 = vpop.f32.mrb[14].mxu1  ;;  %v6959_v16 = vpop.f32.mrb[15].mxu0  ;;  %v8682_v14 = vadd.f32 %v913_v29, %v813_v43 }
 0x10b   : > { %v821_v32 = vadd.f32 %v820_v5, %v714_v19  ;;  %v6941_v34 = vpop.f32.mrb[15].mxu1 }
 0x10f   : > { %v918_v52 = vpop.f32.mrb[16].mxu0 }
 0x110   : > { %v825_v8 = vpop.f32.mrb[16].mxu1  ;;  %v950_v10 = vadd.f32 %v918_v52, %v818_v27  ;;  %v6962_v15 = vpop.f32.mrb[17].mxu0 }
 0x111   : > { %v826_v11 = vadd.f32 %v825_v8, %v719_v38  ;;  %v6944_v36 = vpop.f32.mrb[17].mxu1  ;;  %v921_v37 = vpop.f32.mrb[18].mxu0 }
 0x112   : > { %v828_v39 = vpop.f32.mrb[18].mxu1  ;;  %v951_v40 = vadd.f32 %v921_v37, %v821_v32  ;;  %v6963_v50 = vpop.f32.mrb[19].mxu0 }
 0x113   : > { %v829_v3 = vadd.f32 %v828_v39, %v722_v62  ;;  %v6945_v55 = vpop.f32.mrb[19].mxu1 }
 0x117   : > { %v926_v58 = vpop.f32.mrb[20].mxu0 }
 0x118   : > { %v833_v61 = vpop.f32.mrb[20].mxu1  ;;  %v952_v0 = vadd.f32 %v926_v58, %v826_v11  ;;  %v6966_v33 = vpop.f32.mrb[21].mxu0 }
 0x119   : > { %v834_v4 = vadd.f32 %v833_v61, %v8635_v54  ;;  %v6948_v35 = vpop.f32.mrb[21].mxu1  ;;  %v929_v19 = vpop.f32.mrb[22].mxu0 }
 0x11a   : > { %v836_v44 = vpop.f32.mrb[22].mxu1  ;;  %v953_v45 = vadd.f32 %v929_v19, %v829_v3  ;;  %v6967_v20 = vpop.f32.mrb[23].mxu0 }
 0x11b   : > { %v837_v25 = vadd.f32 %v836_v44, %v8637_v59  ;;  %v6949_v42 = vpop.f32.mrb[23].mxu1 }
 0x11f   : > { %v934_v46 = vpop.f32.mrb[24].mxu0 }
 0x120   : > { %v841_v47 = vpop.f32.mrb[24].mxu1  ;;  %v954_v26 = vadd.f32 %v934_v46, %v834_v4  ;;  %v6970_v38 = vpop.f32.mrb[25].mxu0 }
 0x121   : > { %v842_v48 = vadd.f32 %v841_v47, %v8646_v13  ;;  %v937_v49 = vpop.f32.mrb[26].mxu0  ;;  %v6952_v51 = vpop.f32.mrb[25].mxu1 }
 0x122   : > { %v955_v56 = vadd.f32 %v937_v49, %v837_v25  ;;  %v6971_v54 = vpop.f32.mrb[27].mxu0  ;;  %v844_v62 = vpop.f32.mrb[26].mxu1 }
 0x123   : > { %v6953_v63 = vpop.f32.mrb[27].mxu1 }
 0x127   : > { %v942_v2 = vpop.f32.mrb[28].mxu0 }
 0x128   : > { %v956_v6 = vadd.f32 %v942_v2, %v842_v48  ;;  %v1094_v43 = vpop.f32.mrb[28].mxu1  ;;  %v6974_v60 = vpop.f32.mrb[29].mxu0 }
 0x129   : > { %v1132_v9 = vadd.f32 %v1094_v43, %v8675_v24  ;;  %v6980_v59 = vpop.f32.mrb[29].mxu1  ;;  %v945_v17 = vpop.f32.mrb[30].mxu0 }
 0x12a   : > { %v1097_v18 = vpop.f32.mrb[30].mxu1  ;;  %v6975_v22 = vpop.f32.mrb[31].mxu0 }
 0x12b   : > { %v1133_v23 = vadd.f32 %v1097_v18, %v8682_v14  ;;  %v6981_v27 = vpop.f32.mrb[31].mxu1 }
 0x12f   : > { %v1204_v13 = vpop.f32.mrb[32].mxu0 }
 0x130   : > { %v1102_v28 = vpop.f32.mrb[32].mxu1  ;;  %v1242_v29 = vadd.f32 %v1204_v13, %v1132_v9  ;;  %v7002_v30 = vpop.f32.mrb[33].mxu0 }
 0x131   : > { %v1134_v5 = vadd.f32 %v1102_v28, %v950_v10  ;;  %v6984_v16 = vpop.f32.mrb[33].mxu1  ;;  %v1207_v31 = vpop.f32.mrb[34].mxu0 }
 0x132   : > { %v1105_v32 = vpop.f32.mrb[34].mxu1  ;;  %v1243_v34 = vadd.f32 %v1207_v31, %v1133_v23  ;;  %v7003_v7 = vpop.f32.mrb[35].mxu0 }
 0x133   : > { %v1135_v12 = vadd.f32 %v1105_v32, %v951_v40  ;;  %v6985_v21 = vpop.f32.mrb[35].mxu1 }
 0x137   : > { %v1212_v24 = vpop.f32.mrb[36].mxu0 }
 0x138   : > { %v1110_v52 = vpop.f32.mrb[36].mxu1  ;;  %v1244_v8 = vadd.f32 %v1212_v24, %v1134_v5  ;;  %v7006_v15 = vpop.f32.mrb[37].mxu0 }
 0x139   : > { %v1136_v11 = vadd.f32 %v1110_v52, %v952_v0  ;;  %v6988_v36 = vpop.f32.mrb[37].mxu1  ;;  %v1215_v14 = vpop.f32.mrb[38].mxu0 }
 0x13a   : > { %v1113_v37 = vpop.f32.mrb[38].mxu1  ;;  %v1245_v39 = vadd.f32 %v1215_v14, %v1135_v12  ;;  %v7007_v50 = vpop.f32.mrb[39].mxu0 }
 0x13b   : > { %v1137_v53 = vadd.f32 %v1113_v37, %v953_v45  ;;  %v6989_v41 = vpop.f32.mrb[39].mxu1 }
 0x13f   : > { %v1220_v10 = vpop.f32.mrb[40].mxu0 }
 0x140   : > { %v1118_v3 = vpop.f32.mrb[40].mxu1  ;;  %v1246_v55 = vadd.f32 %v1220_v10, %v1136_v11  ;;  %v7010_v57 = vpop.f32.mrb[41].mxu0 }
 0x141   : > { %v1138_v58 = vadd.f32 %v1118_v3, %v954_v26  ;;  %v6992_v61 = vpop.f32.mrb[41].mxu1  ;;  %v1223_v40 = vpop.f32.mrb[42].mxu0 }
 0x142   : > { %v1121_v33 = vpop.f32.mrb[42].mxu1  ;;  %v1247_v4 = vadd.f32 %v1223_v40, %v1137_v53  ;;  %v7011_v35 = vpop.f32.mrb[43].mxu0 }
 0x143   : > { %v1139_v19 = vadd.f32 %v1121_v33, %v955_v56  ;;  %v6993_v44 = vpop.f32.mrb[43].mxu1 }
 0x147   : > { %v1228_v0 = vpop.f32.mrb[44].mxu0 }
 0x148   : > { %v1126_v20 = vpop.f32.mrb[44].mxu1  ;;  %v1248_v25 = vadd.f32 %v1228_v0, %v1138_v58  ;;  %v7014_v42 = vpop.f32.mrb[45].mxu0 }
 0x149   : > { %v1140_v46 = vadd.f32 %v1126_v20, %v956_v6  ;;  %v1231_v47 = vpop.f32.mrb[46].mxu0  ;;  %v6996_v45 = vpop.f32.mrb[45].mxu1  ;;  %v388_v6 = vlaneseq }
 0x14a   : > { %v1249_v38 = vadd.f32 %v1231_v47, %v1139_v19  ;;  %v7015_v48 = vpop.f32.mrb[47].mxu0  ;;  %v1129_v49 = vpop.f32.mrb[46].mxu1 }
 0x14b   : > { %v6997_v51 = vpop.f32.mrb[47].mxu1  ;;  %v8721_v7 = vshrl.u32 %v388_v6, 7 }
 0x14d   : > { %v390_v12 = vadd.s32 8, %v8721_v7  ;;  %v8736_v57 = vadd.s32 16, %v8721_v7  ;;  %v8741_v44 = vadd.s32 24, %v8721_v7  ;;  %v8755_v51 = vadd.s32 40, %v8721_v7 }
 0x14f   : > { %v1236_v54 = vpop.f32.mrb[48].mxu0  ;;  %v8732_v10 = vmul.u32.u64.low 3817748708, %v390_v12  ;;  %v8733_v3 = vmul.u32.u64.high 3817748708, %v390_v12, %v8732_v10 }
 0x150   : > { %v8714_v26 = vadd.f32 %v1236_v54, %v1140_v46  ;;  %v1384_v62 = vpop.f32.mrb[48].mxu1  ;;  %v7018_v63 = vpop.f32.mrb[49].mxu0  ;;  %v8747_v46 = vmul.u32.u64.low 3817748708, %v8736_v57  ;;  %v8748_v47 = vmul.u32.u64.high 3817748708, %v8736_v57, %v8747_v46 }
 0x151   : > { %v1422_v2 = vadd.f32 %v1384_v62, %v1242_v29  ;;  %v7024_v43 = vpop.f32.mrb[49].mxu1  ;;  %v1239_v56 = vpop.f32.mrb[50].mxu0  ;;  %v415_v49 = vshrl.u32 %v8733_v3, 3  ;;  %v8758_v54 = vmul.u32.u64.low 3817748708, %v8741_v44  ;;  %v8759_v62 = vmul.u32.u64.high 3817748708, %v8741_v44, %v8758_v54 }
 0x152   : > { %v1387_v60 = vpop.f32.mrb[50].mxu1  ;;  %v7019_v9 = vpop.f32.mrb[51].mxu0 }
 0x153   : > { %v1423_v59 = vadd.f32 %v1387_v60, %v1243_v34  ;;  %v7025_v17 = vpop.f32.mrb[51].mxu1  ;;  %v416_v43 = vmul.u32 9, %v415_v49 }
 0x157   : > { %v1497_v18 = vpop.f32.mrb[52].mxu0 }
 0x158   : > { %v1392_v22 = vpop.f32.mrb[52].mxu1  ;;  %v8716_v23 = vadd.f32 %v1497_v18, %v1422_v2  ;;  %v7046_v27 = vpop.f32.mrb[53].mxu0  ;;  %v8768_v17 = vmul.u32.u64.low 3817748708, %v8755_v51  ;;  %v8769_v18 = vmul.u32.u64.high 3817748708, %v8755_v51, %v8768_v17 }
 0x159   : > { %v1424_v13 = vadd.f32 %v1392_v22, %v1244_v8  ;;  %v7028_v28 = vpop.f32.mrb[53].mxu1  ;;  %v1500_v30 = vpop.f32.mrb[54].mxu0 }
 0x15a   : > { %v1395_v5 = vpop.f32.mrb[54].mxu1  ;;  %v8718_v16 = vadd.f32 %v1500_v30, %v1423_v59  ;;  %v7047_v31 = vpop.f32.mrb[55].mxu0 }
 0x15b   : > { %v1425_v29 = vadd.f32 %v1395_v5, %v1245_v39  ;;  %v7029_v32 = vpop.f32.mrb[55].mxu1  ;;  %v8729_v39 = vmul.u32.u64.low 3817748708, %v8721_v7  ;;  %v8730_v50 = vmul.u32.u64.high 3817748708, %v8721_v7, %v8729_v39 }
 0x15d   : > { %v404_v42 = vshrl.u32 %v8730_v50, 3 }
 0x15f   : > { %v1505_v34 = vpop.f32.mrb[56].mxu0  ;;  %v405_v63 = vmul.u32 9, %v404_v42 }
 0x160   : > { %v1400_v21 = vpop.f32.mrb[56].mxu1  ;;  %v8724_v24 = vadd.f32 %v1505_v34, %v1424_v13  ;;  %v7050_v52 = vpop.f32.mrb[57].mxu0  ;;  %v417_v34 = vsub.s32 %v390_v12, %v416_v43  ;;  %v459_v12 = vshrl.u32 %v8769_v18, 3 }
 0x161   : > { %v1426_v15 = vadd.f32 %v1400_v21, %v1246_v55  ;;  %v7032_v8 = vpop.f32.mrb[57].mxu1  ;;  %v1508_v11 = vpop.f32.mrb[58].mxu0  ;;  %v406_v31 = vsub.s32 %v8721_v7, %v405_v63  ;;  %v437_v21 = vshrl.u32 %v8759_v62, 3 }
 0x162   : > { %v1403_v36 = vpop.f32.mrb[58].mxu1  ;;  %v8726_v14 = vadd.f32 %v1508_v11, %v1425_v29  ;;  %v7051_v37 = vpop.f32.mrb[59].mxu0  ;;  %v426_v29 = vshrl.u32 %v8748_v47, 3  ;;  %vm498_vm8 = vcmp.ne.s32.totalorder %v417_v34, 0  ;;  %vm507_vm9 = vcmp.lt.s32.totalorder %v417_v34, 0 }
 0x163   : > { %v1427_v53 = vadd.f32 %v1403_v36, %v1247_v4  ;;  %v7033_v41 = vpop.f32.mrb[59].mxu1  ;;  %vm497_vm6 = vcmp.ne.s32.totalorder %v406_v31, 0  ;;  %vm506_vm7 = vcmp.lt.s32.totalorder %v406_v31, 0  ;;  %v8779_v8 = vadd.s32 48, %v8721_v7  ;;  %vm8796_vm11 = vmand %vm507_vm9, %vm498_vm8 }
 0x164   : > { %v427_v52 = vmul.u32 9, %v426_v29  ;;  %v524_v39 = vadd.s32 9, %v406_v31  ;;  %vm8787_vm10 = vmand %vm506_vm7, %vm497_vm6  ;;  %v525_v3 = vadd.s32 9, %v417_v34 }
 0x165   : > { %v8803_v42 = vmul.u32.u64.low 3817748708, %v8779_v8  ;;  %v8804_v46 = vmul.u32.u64.high 3817748708, %v8779_v8, %v8803_v42 }
 0x166   : > { %v533_v47 = vsel %vm8787_vm10, %v524_v39, %v406_v31 }
 0x167   : > { %v1513_v58 = vpop.f32.mrb[60].mxu0  ;;  %vm8820_vm12 = vcmp.lt.s32.totalorder %v533_v47, 8 }
 0x168   : > { %v1408_v55 = vpop.f32.mrb[60].mxu1  ;;  %v8738_v61 = vadd.f32 %v1513_v58, %v1426_v15  ;;  %v7054_v40 = vpop.f32.mrb[61].mxu0  ;;  %v438_v58 = vmul.u32 9, %v437_v21 }
 0x169   : > { %v1428_v33 = vadd.f32 %v1408_v55, %v1248_v25  ;;  %v7036_v35 = vpop.f32.mrb[61].mxu1  ;;  %v1516_v19 = vpop.f32.mrb[62].mxu0  ;;  %v8752_v25 = vadd.s32 32, %v8721_v7  ;;  %v8792_v55 = vadd.s32 56, %v8721_v7 }
 0x16a   : > { %v1411_v0 = vpop.f32.mrb[62].mxu1  ;;  %v8743_v4 = vadd.f32 %v1516_v19, %v1427_v53  ;;  %v7055_v20 = vpop.f32.mrb[63].mxu0  ;;  %v8811_v49 = vsub.s32 %v8741_v44, %v438_v58 }
 0x16b   : > { %v1429_v45 = vadd.f32 %v1411_v0, %v1249_v38  ;;  %v7037_v48 = vpop.f32.mrb[63].mxu1  ;;  %v8762_v56 = vmul.u32.u64.low 3817748708, %v8752_v25  ;;  %v8763_v60 = vmul.u32.u64.high 3817748708, %v8752_v25, %v8762_v56 }
 0x16c   : > { %v534_v48 = vsel %vm8796_vm11, %v525_v3, %v417_v34  ;;  %vm500_vm2 = vcmp.ne.s32.totalorder %v8811_v49, 0  ;;  %vm509_vm6 = vcmp.lt.s32.totalorder %v8811_v49, 0 }
 0x16d   : > { %vm8832_vm15 = vcmp.lt.s32.totalorder %v534_v48, 8 }
 0x16f   : > { %v1521_v2 = vpop.f32.mrb[64].mxu0 }
 0x170   : > { %v1416_v38 = vpop.f32.mrb[64].mxu1  ;;  %v8765_v9 = vadd.f32 %v1521_v2, %v1428_v33  ;;  %v7058_v59 = vpop.f32.mrb[65].mxu0  ;;  %v8827_v2 = vld [vmem:[%s10334_s2] ss:$0 sm:$0xff] }
 0x171   : > { %v1430_v22 = vadd.f32 %v1416_v38, %v8714_v26  ;;  %v1524_v27 = vpop.f32.mrb[66].mxu0  ;;  %v7040_v13 = vpop.f32.mrb[65].mxu1  ;;  %v448_v26 = vshrl.u32 %v8763_v60, 3 }
 0x172   : > { %v8772_v28 = vadd.f32 %v1524_v27, %v1429_v45  ;;  %v7059_v30 = vpop.f32.mrb[67].mxu0  ;;  %v1419_v5 = vpop.f32.mrb[66].mxu1  ;;  %v460_v45 = vmul.u32 9, %v459_v12 }
 0x173   : > { %v7041_v32 = vpop.f32.mrb[67].mxu1  ;;  %v449_v20 = vmul.u32 9, %v448_v26  ;;  %v527_v26 = vadd.s32 9, %v8811_v49 }
 0x174   : > { %v8837_v17 = vsub.s32 %v8755_v51, %v460_v45  ;;  %v8849_v51 = vld [vmem:[#allocation2 + $0x4] sm:$0xf] }
 0x175   : > { %v8830_v44 = vsub.s32 %v8752_v25, %v449_v20  ;;  %v1931_v25 = vld [vmem:[#allocation2] sm:$0x8] }
 0x176   : > { %vm502_vm10 = vcmp.ne.s32.totalorder %v8837_v17, 0  ;;  %vm511_vm11 = vcmp.lt.s32.totalorder %v8837_v17, 0  ;;  %v8875_v39 = vcombine.low %v1931_v25, %v8849_v51  ;;  %v529_v10 = vadd.s32 9, %v8837_v17 }
 0x177   : > { %v1529_v15 = vpop.f32.mrb[68].mxu0  ;;  %vm501_vm8 = vcmp.ne.s32.totalorder %v8830_v44, 0  ;;  %vm510_vm9 = vcmp.lt.s32.totalorder %v8830_v44, 0 }
 0x178   : > { %v8781_v11 = vadd.f32 %v1529_v15, %v1430_v22  ;;  %v1676_v36 = vpop.f32.mrb[68].mxu1  ;;  %v7062_v37 = vpop.f32.mrb[69].mxu0 }
 0x179   : > { %v1714_v50 = vadd.f32 %v1676_v36, %v8716_v23  ;;  %v7068_v53 = vpop.f32.mrb[69].mxu1  ;;  %v1532_v41 = vpop.f32.mrb[70].mxu0  ;;  %v428_v23 = vsub.s32 %v8736_v57, %v427_v52  ;;  %v8814_v57 = vmul.u32.u64.low 3817748708, %v8792_v55  ;;  %v8815_v54 = vmul.u32.u64.high 3817748708, %v8792_v55, %v8814_v57 }
 0x17a   : > { %v1679_v40 = vpop.f32.mrb[70].mxu1  ;;  %v7063_v33 = vpop.f32.mrb[71].mxu0  ;;  %v470_v52 = vshrl.u32 %v8804_v46, 3  ;;  %v528_v37 = vadd.s32 9, %v8830_v44  ;;  %v2001_v57 = vshrl.u32 %v8875_v39, 16 }
 0x17b   : > { %v1715_v19 = vadd.f32 %v1679_v40, %v8718_v16  ;;  %v7069_v0 = vpop.f32.mrb[71].mxu1  ;;  %v8818_v16 = vadd.s32 64, %v8721_v7  ;;  %vm499_vm13 = vcmp.ne.s32.totalorder %v428_v23, 0  ;;  %vm508_vm14 = vcmp.lt.s32.totalorder %v428_v23, 0 }
 0x17c   : > { %v526_v59 = vadd.s32 9, %v428_v23  ;;  %vm8845_vm7 = vmand %vm508_vm14, %vm499_vm13  ;;  %v481_v12 = vshrl.u32 %v8815_v54, 3  ;;  %v471_v33 = vmul.u32 9, %v470_v52 }
 0x17d   : > { %vm8869_vm13 = vmand %vm509_vm6, %vm500_vm2 }
 0x17e   : > { %v535_v36 = vsel %vm8845_vm7, %v526_v59, %v428_v23  ;;  %vm8882_vm14 = vmand %vm510_vm9, %vm501_vm8  ;;  %v536_v20 = vsel %vm8869_vm13, %v527_v26, %v8811_v49  ;;  %v482_v48 = vmul.u32 9, %v481_v12 }
 0x17f   : > { %v1795_v63 = vpop.f32.mrb[72].mxu0  ;;  %vm8887_vm2 = vmand %vm511_vm11, %vm502_vm10  ;;  %vm8891_vm6 = vcmp.lt.s32.totalorder %v535_v36, 8  ;;  %v537_v45 = vsel %vm8882_vm14, %v528_v37, %v8830_v44  ;;  %vm8909_vm7 = vcmp.lt.s32.totalorder %v536_v20, 8 }
 0x180   : > { %v1684_v43 = vpop.f32.mrb[72].mxu1  ;;  %v1833_v56 = vadd.f32 %v1795_v63, %v1714_v50  ;;  %v7090_v60 = vpop.f32.mrb[73].mxu0  ;;  %v538_v49 = vsel %vm8887_vm2, %v529_v10, %v8837_v17  ;;  %vm8918_vm8 = vcmp.lt.s32.totalorder %v537_v45, 8 }
 0x181   : > { %v1716_v18 = vadd.f32 %v1684_v43, %v8724_v24  ;;  %v7072_v22 = vpop.f32.mrb[73].mxu1  ;;  %v1798_v27 = vpop.f32.mrb[74].mxu0  ;;  %v8852_v24 = vmul.u32.u64.low 3817748708, %v8818_v16  ;;  %v8853_v32 = vmul.u32.u64.high 3817748708, %v8818_v16, %v8852_v24  ;;  %vm8922_vm9 = vcmp.lt.s32.totalorder %v538_v49, 8  ;;  %v7883_v49 = vld [vmem:[%s10335_s3 + $0xc8] sm:$0xff]  }
 0x182   : > { %v1849_v13 = vadd.f32 %v8827_v2, %v1833_v56  ;;  %v1687_v30 = vpop.f32.mrb[74].mxu1  ;;  %v1834_v5 = vadd.f32 %v1798_v27, %v1715_v19  ;;  %v7091_v31 = vpop.f32.mrb[75].mxu0  ;;  %v2004_v22 = vshll.u32 %v8875_v39, 16 }
 0x183   : > { %v1717_v34 = vadd.f32 %v1687_v30, %v8726_v14  ;;  %v7073_v21 = vpop.f32.mrb[75].mxu1 }
 0x184   : > { %v1850_v15 = vadd.f32 %v8827_v2, %v1834_v5  ;;  %v1876_v50 = vsel %vm8820_vm12, %v1849_v13, 0.0  ;;  %v8928_v13 = vsub.s32 %v8792_v55, %v482_v48  ;;  %v8934_v5 = vrot.slane %v2001_v57, 3 }
 0x186   : > { %v1877_v53 = vsel %vm8832_vm15, %v1850_v15, 0.0  ;;  %vm504_vm13 = vcmp.ne.s32.totalorder %v8928_v13, 0  ;;  %vm513_vm14 = vcmp.lt.s32.totalorder %v8928_v13, 0 }
 0x187   : > { %v6554_v3 = vpack.c.bf16 %v1877_v53, %v1876_v50  ;;  %v1803_v58 = vpop.f32.mrb[76].mxu0 }
 0x188   : > { %v1692_v35 = vpop.f32.mrb[76].mxu1  ;;  %v1835_v19 = vadd.f32 %v1803_v58, %v1716_v18  ;;  %v7094_v0 = vpop.f32.mrb[77].mxu0  ;;  %v8914_v18 = vsub.s32 %v8779_v8, %v471_v33 }
 0x189   : > { %6611 = vst [vmem:[#allocation2 + $0x8] sm:$0xff] %v6554_v3   ;;  %v1718_v42 = vadd.f32 %v1692_v35, %v8738_v61  ;;  %v7076_v46 = vpop.f32.mrb[77].mxu1  ;;  %v1806_v47 = vpop.f32.mrb[78].mxu0  ;;  %v492_v61 = vshrl.u32 %v8853_v32, 3  ;;  %v2006_v32 = vrot.slane %v2004_v22, 4 }
 0x18a   : > { %v1851_v54 = vadd.f32 %v8827_v2, %v1835_v19  ;;  %v1695_v63 = vpop.f32.mrb[78].mxu1  ;;  %v1836_v43 = vadd.f32 %v1806_v47, %v1717_v34  ;;  %v7095_v56 = vpop.f32.mrb[79].mxu0  ;;  %vm503_vm10 = vcmp.ne.s32.totalorder %v8914_v18, 0  ;;  %vm512_vm11 = vcmp.lt.s32.totalorder %v8914_v18, 0 }
 0x18b   : > { %v1719_v60 = vadd.f32 %v1695_v63, %v8743_v4  ;;  %v7077_v44 = vpop.f32.mrb[79].mxu1  ;;  %v2172_v4 = vrot.slane %v8875_v39, 3  ;;  %v493_v31 = vmul.u32 9, %v492_v61  ;;  %v530_v39 = vadd.s32 9, %v8914_v18  ;;  %vm8960_vm2 = vmand %vm512_vm11, %vm503_vm10  ;;  %v7879_v56 = vld [vmem:[%s10335_s3 + $0x80] sm:$0xff]  }
 0x18c   : > { %v1852_v27 = vadd.f32 %v8827_v2, %v1836_v43  ;;  %v1878_v8 = vsel %vm8891_vm6, %v1851_v54, 0.0  ;;  %v531_v19 = vadd.s32 9, %v8928_v13  ;;  %vm8974_vm10 = vmand %vm513_vm14, %vm504_vm13 }
 0x18d   : > { %v8952_v10 = vsub.s32 %v8818_v16, %v493_v31  ;;  %v7882_v16 = vld [vmem:[%s10335_s3 + $0xc0] sm:$0xff]   ;;  %v539_v57 = vsel %vm8960_vm2, %v530_v39, %v8914_v18 }
 0x18e   : > { %v1879_v30 = vsel %vm8909_vm7, %v1852_v27, 0.0  ;;  %v540_v18 = vsel %vm8974_vm10, %v531_v19, %v8928_v13  ;;  %vm9013_vm14 = vcmp.lt.s32.totalorder %v539_v57, 8 }
 0x18f   : > { %v6559_v29 = vpack.c.bf16 %v1879_v30, %v1878_v8  ;;  %v1811_v24 = vpop.f32.mrb[80].mxu0  ;;  %vm505_vm11 = vcmp.ne.s32.totalorder %v8952_v10, 0  ;;  %vm514_vm13 = vcmp.lt.s32.totalorder %v8952_v10, 0  ;;  %vm9019_vm2 = vcmp.lt.s32.totalorder %v540_v18, 8 }
 0x190   : > { %v1700_v34 = vpop.f32.mrb[80].mxu1  ;;  %v1837_v21 = vadd.f32 %v1811_v24, %v1718_v42  ;;  %v7098_v55 = vpop.f32.mrb[81].mxu0  ;;  %v8938_v52 = vld [vmem:[#allocation2 + $0x8] sm:$0xf]  ;;  %v8940_v15 = vld [vmem:[#allocation2 + $0xc] sm:$0xf]  ;;  %v2007_v42 = vor.u32 %v2006_v32, %v8934_v5  ;;  %vm9028_vm10 = vmand %vm514_vm13, %vm505_vm11 }
 0x191   : > { %6612 = vst [vmem:[#allocation2 + $0x10] sm:$0xff] %v6559_v29   ;;  %v1720_v26 = vadd.f32 %v1700_v34, %v8765_v9  ;;  %v7080_v36 = vpop.f32.mrb[81].mxu1  ;;  %v1814_v14 = vpop.f32.mrb[82].mxu0  ;;  %v8945_v37 = vcombine.low %v8938_v52, %v8940_v15  ;;  %vm3665_vm13 = vcmask 24576  }
 0x192   : > { %v1853_v12 = vadd.f32 %v8827_v2, %v1837_v21  ;;  %v1703_v50 = vpop.f32.mrb[82].mxu1  ;;  %v1838_v53 = vadd.f32 %v1814_v14, %v1719_v60  ;;  %v7099_v41 = vpop.f32.mrb[83].mxu0  ;;  %v7881_v36 = vld [vmem:[%s10335_s3 + $0x88] sm:$0xff]  }
 0x193   : > { %v1721_v9 = vadd.f32 %v1703_v50, %v8772_v28  ;;  %v7081_v3 = vpop.f32.mrb[83].mxu1  ;;  %v2173_v58 = vrot.slane %v8945_v37, 3  ;;  %v2009_v33 = vshrl.u32 %v8945_v37, 16  ;;  %v2012_v35 = vshll.u32 %v8945_v37, 16  ;;  %v7886_v50 = vld [vmem:[%s10335_s3 + $0xd0] sm:$0xff]  }
 0x194   : > { %v1854_v28 = vadd.f32 %v8827_v2, %v1838_v53  ;;  %v1880_v45 = vsel %vm8918_vm8, %v1853_v12, 0.0 }
 0x195   : > { %v2174_v0 = vsel %vm744_vm3, %v2172_v4, %v2173_v58  ;;  %v2011_v46 = vrot.slane %v2009_v33, 3  ;;  %v2014_v47 = vrot.slane %v2012_v35, 4 }
 0x196   : > { %v1881_v48 = vsel %vm8922_vm9, %v1854_v28, 0.0  ;;  %7161 = vmatmul.mubr.bf16.vlgmr.msra.gmra.mrb[92].mxu0 %v2174_v0 }
 0x197   : > { %v6564_v54 = vpack.c.bf16 %v1881_v48, %v1880_v45  ;;  %v1819_v63 = vpop.f32.mrb[84].mxu0  ;;  %v8986_v43 = vor.u32 %v2014_v47, %v2011_v46  ;;  %7164 = vmatprep.mubr.msk.bf16.mxu0 %vm8129_vm0, %v8128_v1  ;;  %7217 = vmatpush3.bf16.msra.mxu0 %v7882_v16 }
 0x198   : > { %v1708_v61 = vpop.f32.mrb[84].mxu1  ;;  %v1839_v60 = vadd.f32 %v1819_v63, %v1720_v26  ;;  %v7102_v44 = vpop.f32.mrb[85].mxu0  ;;  %v9001_v22 = vld [vmem:[#allocation2 + $0x10] sm:$0xf]  ;;  %v9003_v27 = vld [vmem:[#allocation2 + $0x14] sm:$0xf]  ;;  %7218 = vmatprep.subr.bf16.mxu0 %v8128_v1 }
 0x199   : > { %6613 = vst [vmem:[#allocation2 + $0x18] sm:$0xff] %v6564_v54   ;;  %v1722_v4 = vadd.f32 %v1708_v61, %v8781_v11  ;;  %v1822_v8 = vpop.f32.mrb[86].mxu0  ;;  %v2016_v30 = vsel %vm10346_vm1, %v2007_v42, %v8986_v43  ;;  %v9011_v5 = vcombine.low %v9001_v22, %v9003_v27  ;;  %v7084_v31 = vpop.f32.mrb[85].mxu1  ;;  %v532_v11 = vadd.s32 9, %v8952_v10  ;;  %v7887_v63 = vld [vmem:[%s10335_s3 + $0x98] sm:$0xff]  }
 0x19a   : > { %v1855_v29 = vadd.f32 %v8827_v2, %v1839_v60  ;;  %v1840_v24 = vadd.f32 %v1822_v8, %v1721_v9  ;;  %v7103_v32 = vpop.f32.mrb[87].mxu0  ;;  %7125 = vmatmul.mubr.bf16.vlgmr.msra.gmra.mrb[88].mxu1 %v2016_v30  ;;  %v1711_v34 = vpop.f32.mrb[86].mxu1  ;;  %v7890_v30 = vld [vmem:[%s10335_s3 + $0xa0] sm:$0xff]   ;;  %v9107_v26 = vld [vmem:[#allocation2 + $0x10] sm:$0xf] }
 0x19b   : > { %7181 = vmatpush3.bf16.msra.mxu1 %v7879_v56  ;;  %v2175_v55 = vrot.slane %v9011_v5, 3  ;;  %7128 = vmatprep.mubr.msk.bf16.mxu1 %vm8129_vm0, %v8128_v1  ;;  %v2018_v14 = vshrl.u32 %v9011_v5, 16  ;;  %v2021_v37 = vshll.u32 %v9011_v5, 16  ;;  %v7085_v39 = vpop.f32.mrb[87].mxu1  ;;  %v541_v33 = vsel %vm9028_vm10, %v532_v11, %v8952_v10  ;;  %v7888_v10 = vld [vmem:[%s10335_s3 + $0xd8] sm:$0xff]   ;;  %v7894_v5 = vld [vmem:[%s10335_s3 + $0xe8] sm:$0xff]  }
 0x19c   : > { %v1856_v12 = vadd.f32 %v8827_v2, %v1840_v24  ;;  %7182 = vmatprep.subr.bf16.mxu1 %v8128_v1  ;;  %7219 = vmatpush3.bf16.msra.mxu0 %v7883_v49  ;;  %v1882_v3 = vsel %vm9013_vm14, %v1855_v29, 0.0  ;;  %vm9066_vm11 = vcmp.lt.s32.totalorder %v541_v33, 8  ;;  %v7893_v39 = vld [vmem:[%s10335_s3 + $0xa8] sm:$0xff]  }
 0x19d   : > { %v2176_v53 = vsel %vm744_vm3, %v2173_v58, %v2175_v55  ;;  %v2020_v41 = vrot.slane %v2018_v14, 3  ;;  %v2023_v9 = vrot.slane %v2021_v37, 4  ;;  %7220 = vmatprep.subr.bf16.mxu0 %v8128_v1  ;;  %v7884_v58 = vld [vmem:[%s10335_s3 + $0x90] sm:$0xff]  }
 0x19e   : > { %v1883_v40 = vsel %vm9019_vm2, %v1856_v12, 0.0  ;;  %7165 = vmatmul.mubr.bf16.gmra.mrb[96].mxu0 %v2176_v53  ;;  %v7895_v12 = vld [vmem:[%s10335_s3 + $0xf0] sm:$0xff]   ;;  %v9120_v53 = vld [vmem:[#allocation2 + $0xc] sm:$0xf] }
 0x19f   : > { %v6569_v35 = vpack.c.bf16 %v1883_v40, %v1882_v3  ;;  %v1827_v16 = vpop.f32.mrb[88].mxu0  ;;  %7183 = vmatpush3.bf16.msra.mxu1 %v7881_v36  ;;  %v2024_v28 = vor.u32 %v2023_v9, %v2020_v41  ;;  %7168 = vmatprep.mubr.msk.bf16.mxu0 %vm8129_vm0, %v8128_v1  ;;  %v6101_v40 = vcombine.low %v9120_v53, %v9107_v26 }
 0x1a0   : > { %v1841_v19 = vadd.f32 %v1827_v16, %v1722_v4  ;;  %7184 = vmatprep.subr.bf16.mxu1 %v8128_v1  ;;  %v9059_v0 = vld [vmem:[#allocation2 + $0x18] sm:$0xf]  ;;  %v9061_v20 = vld [vmem:[#allocation2 + $0x1c] sm:$0xf]  ;;  %7221 = vmatpush3.bf16.msra.mxu0 %v7886_v50  ;;  %v7106_v45 = vpop.f32.mrb[89].mxu0 }
 0x1a1   : > { %6614 = vst [vmem:[#allocation2 + $0x20] sm:$0xff] %v6569_v35   ;;  %v2025_v46 = vsel %vm10346_vm1, %v8986_v43, %v2024_v28  ;;  %v6036_v47 = vcombine.low %v9059_v0, %v9061_v20  ;;  %7222 = vmatprep.subr.bf16.mxu0 %v8128_v1  ;;  %v1830_v57 = vpop.f32.mrb[90].mxu0  ;;  %v9118_v50 = vld [vmem:[#allocation2 + $0x8] sm:$0xf]  ;;  %v7896_v35 = vld [vmem:[%s10335_s3 + $0xb0] sm:$0xff]  }
 0x1a2   : > { %v1857_v48 = vadd.f32 %v8827_v2, %v1841_v19  ;;  %7129 = vmatmul.mubr.bf16.gmra.mrb[92].mxu1 %v2025_v46  ;;  %v7107_v49 = vpop.f32.mrb[91].mxu0  ;;  %v7891_v2 = vld [vmem:[%s10335_s3 + $0xe0] sm:$0xff]   ;;  %v2523_v19 = vshrl.u32 %v6101_v40, 16  ;;  %v9138_v46 = vld [vmem:[#allocation2 + $0x18] sm:$0xf] }
 0x1a3   : > { %7185 = vmatpush3.bf16.msra.mxu1 %v7884_v58  ;;  %v2177_v54 = vrot.slane %v6036_v47, 3  ;;  %7132 = vmatprep.mubr.msk.bf16.mxu1 %vm8129_vm0, %v8128_v1  ;;  %v2027_v43 = vshrl.u32 %v6036_v47, 16  ;;  %v2030_v56 = vshll.u32 %v6036_v47, 16  ;;  %v7898_v47 = vld [vmem:[%s10335_s3 + $0xb8] sm:$0xff]   ;;  %v9146_v57 = vld [vmem:[#allocation2 + $0x14] sm:$0xf] }
 0x1a4   : > { %v1884_v61 = vsel %vm9066_vm11, %v1857_v48, 0.0  ;;  %7186 = vmatprep.subr.bf16.mxu1 %v8128_v1  ;;  %7223 = vmatpush3.bf16.msra.mxu0 %v7888_v10  ;;  %v2526_v10 = vshll.u32 %v6101_v40, 16 }
 0x1a5   : > { %v6532_v60 = vpack.c.bf16 %v1884_v61, %v1884_v61  ;;  %v2178_v44 = vsel %vm744_vm3, %v2175_v55, %v2177_v54  ;;  %v2029_v18 = vrot.slane %v2027_v43, 3  ;;  %v2032_v4 = vrot.slane %v2030_v56, 4  ;;  %7224 = vmatprep.subr.bf16.mxu0 %v8128_v1  ;;  %v2462_v55 = vld [vmem:[#allocation2 + $0x4] sm:$0x8] }
 0x1a6   : > { %7169 = vmatmul.mubr.bf16.gmra.mrb[100].mxu0 %v2178_v44  ;;  %v6100_v16 = vcombine.low %v2462_v55, %v9118_v50  ;;  %v6102_v43 = vcombine.low %v9146_v57, %v9138_v46  ;;  %v7907_v55 = vld [vmem:[%s10335_s3 + $0x148] sm:$0xff]  }
 0x1a7   : > { %1930 = vst [vmem:[#allocation2 + $0x28] sm:$0xf] %v6532_v60  ;;  %7187 = vmatpush3.bf16.msra.mxu1 %v7887_v63  ;;  %v2033_v8 = vor.u32 %v2032_v4, %v2029_v18  ;;  %7172 = vmatprep.mubr.msk.bf16.mxu0 %vm8129_vm0, %v8128_v1  ;;  %v2528_v63 = vrot.slane %v2526_v10, 4  ;;  %v7905_v4 = vld [vmem:[%s10335_s3 + $0x140] sm:$0xff]  }
 0x1a8   : > { %7188 = vmatprep.subr.bf16.mxu1 %v8128_v1  ;;  %v9098_v31 = vld [vmem:[#allocation2 + $0x20] sm:$0xf]  ;;  %v1940_v29 = vld [vmem:[#allocation2 + $0x24] sm:$0x7]  ;;  %7225 = vmatpush3.bf16.msra.mxu0 %v7891_v2  ;;  %v2515_v45 = vshrl.u32 %v6100_v16, 16  ;;  %v2518_v48 = vshll.u32 %v6100_v16, 16 }
 0x1a9   : > { %v9100_v24 = vld [vmem:[#allocation2 + $0x24] sm:$0xf]  ;;  %v2034_v32 = vsel %vm10346_vm1, %v2024_v28, %v2033_v8  ;;  %v6046_v11 = vcombine.low %v9098_v31, %v1940_v29  ;;  %7226 = vmatprep.subr.bf16.mxu0 %v8128_v1  ;;  %v7897_v28 = vld [vmem:[%s10335_s3 + $0xf8] sm:$0xff]   ;;  %v2532_v2 = vshrl.u32 %v6102_v43, 16  ;;  %v2535_v60 = vshll.u32 %v6102_v43, 16 }
 0x1aa   : > { %v6037_v34 = vcombine.low %v9098_v31, %v9100_v24  ;;  %7133 = vmatmul.mubr.bf16.gmra.mrb[96].mxu1 %v2034_v32  ;;  %v2517_v56 = vrot.slane %v2515_v45, 3  ;;  %v2520_v49 = vrot.slane %v2518_v48, 4  ;;  %v9154_v44 = vld [vmem:[#allocation2 + $0x20] sm:$0xf]  ;;  %v7913_v16 = vld [vmem:[%s10335_s3 + $0x158] sm:$0xff]  }
 0x1ab   : > { %v2179_v36 = vrot.slane %v6046_v11, 3  ;;  %7189 = vmatpush3.bf16.msra.mxu1 %v7890_v30  ;;  %7136 = vmatprep.mubr.msk.bf16.mxu1 %vm8129_vm0, %v8128_v1  ;;  %v2537_v29 = vrot.slane %v2535_v60, 4  ;;  %v7902_v11 = vld [vmem:[%s10335_s3 + $0x100] sm:$0xff]   ;;  %v9244_v60 = vld [vmem:[#allocation2 + $0x14] sm:$0xf] }
 0x1ac   : > { %v2036_v14 = vshrl.u32 %v6037_v34, 16  ;;  %v2039_v37 = vshll.u32 %v6037_v34, 16  ;;  %7190 = vmatprep.subr.bf16.mxu1 %v8128_v1  ;;  %7227 = vmatpush3.bf16.msra.mxu0 %v7894_v5  ;;  %v2521_v18 = vor.u32 %v2520_v49, %v2517_v56  ;;  %v2534_v5 = vrot.slane %v2532_v2, 3  ;;  %v7915_v48 = vld [vmem:[%s10335_s3 + $0x120] sm:$0xff]   ;;  %v7918_v56 = vld [vmem:[%s10335_s3 + $0x128] sm:$0xff]  }
 0x1ad   : > { %v2180_v41 = vsel %vm744_vm3, %v2177_v54, %v2179_v36  ;;  %7228 = vmatprep.subr.bf16.mxu0 %v8128_v1  ;;  %v2525_v54 = vrot.slane %v2523_v19, 3  ;;  %v6071_v34 = vcombine.low %v8849_v51, %v8938_v52  ;;  %v7910_v51 = vld [vmem:[%s10335_s3 + $0x150] sm:$0xff]   ;;  %v9188_v52 = vld [vmem:[#allocation2 + $0x24] sm:$0xf]  ;;  %v9238_v49 = vld [vmem:[#allocation2 + $0xc] sm:$0xf] }
 0x1ae   : > { %v2038_v9 = vrot.slane %v2036_v14, 3  ;;  %v2041_v3 = vrot.slane %v2039_v37, 4  ;;  %7173 = vmatmul.mubr.bf16.gmra.mrb[104].mxu0 %v2180_v41  ;;  %v9242_v2 = vld [vmem:[#allocation2 + $0x10] sm:$0xf] }
 0x1af   : > { %7191 = vmatpush3.bf16.msra.mxu1 %v7893_v39  ;;  %7176 = vmatprep.mubr.msk.bf16.mxu0 %vm8129_vm0, %v8128_v1  ;;  %v2529_v61 = vor.u32 %v2528_v63, %v2525_v54  ;;  %v9177_v39 = vld [vmem:[#allocation2 + $0x28] sm:$0xf]  ;;  %v6073_v54 = vcombine.low %v9003_v27, %v9059_v0  ;;  %v7920_v27 = vld [vmem:[%s10335_s3 + $0x170] sm:$0xff]  }
 0x1b0   : > { %v2042_v33 = vor.u32 %v2041_v3, %v2038_v9  ;;  %7192 = vmatprep.subr.bf16.mxu1 %v8128_v1  ;;  %7229 = vmatpush3.bf16.msra.mxu0 %v7895_v12  ;;  %v7904_v12 = vld [vmem:[%s10335_s3 + $0x108] sm:$0xff]   ;;  %v6104_v40 = vcombine.low %v9188_v52, %v9177_v39 }
 0x1b1   : > { %7230 = vmatprep.subr.bf16.mxu0 %v8128_v1  ;;  %v2530_v30 = vsel %vm10346_vm1, %v2521_v18, %v2529_v61  ;;  %v7919_v63 = vld [vmem:[%s10335_s3 + $0x168] sm:$0xff]   ;;  %v7921_v18 = vld [vmem:[%s10335_s3 + $0x130] sm:$0xff]  }
 0x1b2   : > { %v2043_v58 = vsel %vm10346_vm1, %v2033_v8, %v2042_v33  ;;  %v9161_v8 = vld [vmem:[#allocation2 + $0x1c] sm:$0xf]  ;;  %v2553_v19 = vshll.u32 %v6104_v40, 16  ;;  %v2848_v0 = vld [vmem:[#allocation2 + $0x8] sm:$0xf] }
 0x1b3   : > { %7137 = vmatmul.mubr.bf16.gmra.mrb[100].mxu1 %v2043_v58  ;;  %v6103_v32 = vcombine.low %v9161_v8, %v9154_v44  ;;  %v2550_v58 = vshrl.u32 %v6104_v40, 16  ;;  %v9287_v40 = vld [vmem:[#allocation2 + $0x24] sm:$0xf] }
 0x1b4   : > { %7193 = vmatpush3.bf16.msra.mxu1 %v7896_v35  ;;  %7140 = vmatprep.mubr.msk.bf16.mxu1 %vm8129_vm0, %v8128_v1  ;;  %v6072_v35 = vcombine.low %v8940_v15, %v9001_v22  ;;  %v7911_v15 = vld [vmem:[%s10335_s3 + $0x118] sm:$0xff]   ;;  %v7916_v22 = vld [vmem:[%s10335_s3 + $0x160] sm:$0xff]   ;;  %v2555_v45 = vrot.slane %v2553_v19, 4 }
 0x1b5   : > { %7231 = vmatpush3.bf16.msra.mxu0 %v7897_v28  ;;  %7194 = vmatprep.subr.bf16.mxu1 %v8128_v1  ;;  %v2541_v14 = vshrl.u32 %v6103_v32, 16  ;;  %v2544_v37 = vshll.u32 %v6103_v32, 16 }
 0x1b6   : > { %7288 = vmatprep.subr.bf16.mxu0 %v8128_v1  ;;  %7177 = vmatmul.mubr.bf16.gmra.mrb[108].mxu0 %v2179_v36  ;;  %v2538_v36 = vor.u32 %v2537_v29, %v2534_v5  ;;  %v7923_v5 = vld [vmem:[%s10335_s3 + $0x178] sm:$0xff]   ;;  %v6159_v29 = vcombine.low %v9242_v2, %v9244_v60 }
 0x1b7   : > { %7232 = vmatprep.mubr.msk.bf16.mxu0 %vm8129_vm0, %v8128_v1  ;;  %v2543_v9 = vrot.slane %v2541_v14, 3  ;;  %v2546_v3 = vrot.slane %v2544_v37, 4 }
 0x1b8   : > { %7195 = vmatpush3.bf16.msra.mxu1 %v7898_v47  ;;  %v2539_v41 = vsel %vm10346_vm1, %v2529_v61, %v2538_v36  ;;  %v2552_v47 = vrot.slane %v2550_v58, 3  ;;  %v2908_v32 = vshll.u32 %v6159_v29, 16 }
 0x1b9   : > { %7252 = vmatprep.subr.bf16.mxu1 %v8128_v1  ;;  %v2547_v28 = vor.u32 %v2546_v3, %v2543_v9 }
 0x1ba   : > { %v2556_v43 = vor.u32 %v2555_v45, %v2552_v47  ;;  %v2910_v37 = vrot.slane %v2908_v32, 1  ;;  %v9313_v47 = vld [vmem:[#allocation2 + $0x28] sm:$0xf]  ;;  %v2857_v45 = vld [vmem:[#allocation2 + $0x2c] sm:$0x1] }
 0x1bb   : > { %7141 = vmatmul.mubr.bf16.gmra.mrb[104].mxu1 %v2042_v33  ;;  %v7908_v33 = vld [vmem:[%s10335_s3 + $0x110] sm:$0xff]   ;;  %v2548_v10 = vsel %vm10346_vm1, %v2538_v36, %v2547_v28  ;;  %v6075_v36 = vcombine.low %v9100_v24, %v9100_v24  ;;  %v9285_v24 = vld [vmem:[#allocation2 + $0x20] sm:$0xf] }
 0x1bc   : > { %7196 = vmatprep.mubr.msk.bf16.mxu1 %vm8129_vm0, %v8128_v1  ;;  %v2557_v61 = vsel %vm10346_vm1, %v2547_v28, %v2556_v43  ;;  %v2912_v28 = vshrl.u32 %v6159_v29, 16  ;;  %v6161_v19 = vcombine.low %v9285_v24, %v9287_v40  ;;  %v9360_v32 = vld [vmem:[#allocation2 + $0x10] sm:$0xf] }
 0x1be   : > { %7233 = vmatmul.mubr.bf16.vlgmr.msra.gmra.mrb[112].mxu0 %v2530_v30  ;;  %v6074_v30 = vcombine.low %v9061_v20, %v9098_v31  ;;  %v7924_v20 = vld [vmem:[%s10335_s3 + $0x138] sm:$0xff]   ;;  %v2928_v29 = vshrl.u32 %v6161_v19, 16 }
 0x1bf   : > { %7236 = vmatprep.mubr.msk.bf16.mxu0 %vm8129_vm0, %v8128_v1  ;;  %7289 = vmatpush3.bf16.msra.mxu0 %v7905_v4  ;;  %v6158_v4 = vcombine.low %v2848_v0, %v9238_v49 }
 0x1c0   : > { %7290 = vmatprep.subr.bf16.mxu0 %v8128_v1 }
 0x1c1   : > { %v2903_v31 = vshll.u32 %v6158_v4, 16  ;;  %v2901_v14 = vshrl.u32 %v6158_v4, 16  ;;  %v7941_v4 = vld [vmem:[%s10335_s3 + $0x1a0] sm:$0xff]  }
 0x1c3   : > { %7197 = vmatmul.mubr.bf16.vlgmr.msra.gmra.mrb[108].mxu1 %v6071_v34  ;;  %7291 = vmatpush3.bf16.msra.mxu0 %v7907_v55  ;;  %v9270_v34 = vld [vmem:[#allocation2 + $0x1c] sm:$0xf]  ;;  %v2905_v55 = vrot.slane %v2903_v31, 1 }
 0x1c4   : > { %7253 = vmatpush3.bf16.msra.mxu1 %v7902_v11  ;;  %7200 = vmatprep.mubr.msk.bf16.mxu1 %vm8129_vm0, %v8128_v1  ;;  %v9268_v11 = vld [vmem:[#allocation2 + $0x18] sm:$0xf] }
 0x1c5   : > { %7254 = vmatprep.subr.bf16.mxu1 %v8128_v1  ;;  %7292 = vmatprep.subr.bf16.mxu0 %v8128_v1 }
 0x1c6   : > { %7237 = vmatmul.mubr.bf16.gmra.mrb[116].mxu0 %v2539_v41  ;;  %v7931_v41 = vld [vmem:[%s10335_s3 + $0x1c0] sm:$0xff]  }
 0x1c7   : > { %7240 = vmatprep.mubr.msk.bf16.mxu0 %vm8129_vm0, %v8128_v1  ;;  %7293 = vmatpush3.bf16.msra.mxu0 %v7910_v51  ;;  %v2906_v51 = vor.u32 %v2905_v55, %v2901_v14  ;;  %v7947_v14 = vld [vmem:[%s10335_s3 + $0x1b0] sm:$0xff]  }
 0x1c8   : > { %7255 = vmatpush3.bf16.msra.mxu1 %v7904_v12  ;;  %7294 = vmatprep.subr.bf16.mxu0 %v8128_v1  ;;  %v6160_v12 = vcombine.low %v9268_v11, %v9270_v34 }
 0x1c9   : > { %7256 = vmatprep.subr.bf16.mxu1 %v8128_v1  ;;  %v2911_v9 = vsel %vm10345_vm4, %v2906_v51, %v2910_v37  ;;  %v7949_v51 = vld [vmem:[%s10335_s3 + $0x1f8] sm:$0xff]  }
 0x1ca   : > { %v2916_v3 = vshll.u32 %v6160_v12, 16 }
 0x1cb   : > { %7201 = vmatmul.mubr.bf16.gmra.mrb[112].mxu1 %v6072_v35  ;;  %7295 = vmatpush3.bf16.msra.mxu0 %v7913_v16  ;;  %v6129_v35 = vcombine.low %v9118_v50, %v9120_v53  ;;  %v7933_v16 = vld [vmem:[%s10335_s3 + $0x1c8] sm:$0xff]   ;;  %v7936_v50 = vld [vmem:[%s10335_s3 + $0x1d0] sm:$0xff]  }
 0x1cc   : > { %7257 = vmatpush3.bf16.msra.mxu1 %v7908_v33  ;;  %7204 = vmatprep.mubr.msk.bf16.mxu1 %vm8129_vm0, %v8128_v1  ;;  %v7928_v33 = vld [vmem:[%s10335_s3 + $0x180] sm:$0xff]   ;;  %v2918_v58 = vrot.slane %v2916_v3, 1 }
 0x1cd   : > { %7258 = vmatprep.subr.bf16.mxu1 %v8128_v1  ;;  %7296 = vmatprep.subr.bf16.mxu0 %v8128_v1 }
 0x1ce   : > { %7241 = vmatmul.mubr.bf16.gmra.mrb[120].mxu0 %v2548_v10  ;;  %v2924_v10 = vshll.u32 %v6161_v19, 16  ;;  %v9392_v19 = vld [vmem:[#allocation2 + $0x1c] sm:$0xff]  }
 0x1cf   : > { %7244 = vmatprep.mubr.msk.bf16.mxu0 %vm8129_vm0, %v8128_v1  ;;  %7297 = vmatpush3.bf16.msra.mxu0 %v7916_v22  ;;  %v7930_v22 = vld [vmem:[%s10335_s3 + $0x188] sm:$0xff]  }
 0x1d0   : > { %7259 = vmatpush3.bf16.msra.mxu1 %v7911_v15  ;;  %7298 = vmatprep.subr.bf16.mxu0 %v8128_v1  ;;  %v2914_v15 = vor.u32 %v2912_v28, %v2910_v37 }
 0x1d1   : > { %7260 = vmatprep.subr.bf16.mxu1 %v8128_v1 }
 0x1d2   : > { %v2919_v53 = vsel %vm10345_vm4, %v2914_v15, %v2918_v58 }
 0x1d3   : > { %7205 = vmatmul.mubr.bf16.gmra.mrb[116].mxu1 %v6073_v54  ;;  %7299 = vmatpush3.bf16.msra.mxu0 %v7919_v63  ;;  %v6130_v54 = vcombine.low %v9107_v26, %v9146_v57  ;;  %v7939_v63 = vld [vmem:[%s10335_s3 + $0x1d8] sm:$0xff]   ;;  %v7942_v57 = vld [vmem:[%s10335_s3 + $0x1e0] sm:$0xff]  }
 0x1d4   : > { %7261 = vmatpush3.bf16.msra.mxu1 %v7915_v48  ;;  %7208 = vmatprep.mubr.msk.bf16.mxu1 %vm8129_vm0, %v8128_v1  ;;  %v7934_v48 = vld [vmem:[%s10335_s3 + $0x190] sm:$0xff]   ;;  %v7937_v26 = vld [vmem:[%s10335_s3 + $0x198] sm:$0xff]  }
 0x1d5   : > { %7262 = vmatprep.subr.bf16.mxu1 %v8128_v1  ;;  %7300 = vmatprep.subr.bf16.mxu0 %v8128_v1 }
 0x1d6   : > { %7245 = vmatmul.mubr.bf16.gmra.mrb[124].mxu0 %v2557_v61 }
 0x1d7   : > { %7248 = vmatprep.mubr.msk.bf16.mxu0 %vm8129_vm0, %v8128_v1  ;;  %7301 = vmatpush3.bf16.msra.mxu0 %v7920_v27  ;;  %v6162_v27 = vcombine.low %v9313_v47, %v2857_v45 }
 0x1d8   : > { %7263 = vmatpush3.bf16.msra.mxu1 %v7918_v56  ;;  %7302 = vmatprep.subr.bf16.mxu0 %v8128_v1  ;;  %v2926_v56 = vrot.slane %v2924_v10, 1 }
 0x1d9   : > { %7264 = vmatprep.subr.bf16.mxu1 %v8128_v1 }
 0x1da   : > { %v2930_v31 = vor.u32 %v2928_v29, %v2926_v56 }
 0x1db   : > { %7209 = vmatmul.mubr.bf16.gmra.mrb[120].mxu1 %v6074_v30  ;;  %7303 = vmatpush3.bf16.msra.mxu0 %v7923_v5  ;;  %v6131_v30 = vcombine.low %v9138_v46, %v9161_v8  ;;  %v7945_v5 = vld [vmem:[%s10335_s3 + $0x1e8] sm:$0xff]   ;;  %v7946_v8 = vld [vmem:[%s10335_s3 + $0x1f0] sm:$0xff]  }
 0x1dc   : > { %7265 = vmatpush3.bf16.msra.mxu1 %v7921_v18  ;;  %7212 = vmatprep.mubr.msk.bf16.mxu1 %vm8129_vm0, %v8128_v1  ;;  %v2932_v18 = vshll.u32 %v6162_v27, 16  ;;  %v7944_v46 = vld [vmem:[%s10335_s3 + $0x1a8] sm:$0xff]  }
 0x1dd   : > { %7266 = vmatprep.subr.bf16.mxu1 %v8128_v1  ;;  %7360 = vmatprep.subr.bf16.mxu0 %v8128_v1 }
 0x1de   : > { %7249 = vmatmul.mubr.bf16.gmra.mrb[128].mxu0 %v2556_v43  ;;  %v2920_v43 = vshrl.u32 %v6160_v12, 16  ;;  %v6132_v12 = vcombine.low %v9154_v44, %v9188_v52  ;;  %v7950_v44 = vld [vmem:[%s10335_s3 + $0x1b8] sm:$0xff]  }
 0x1df   : > { %7304 = vmatprep.mubr.msk.bf16.mxu0 %vm8129_vm0, %v8128_v1 }
 0x1e0   : > { %7267 = vmatpush3.bf16.msra.mxu1 %v7924_v20  ;;  %v2922_v0 = vor.u32 %v2920_v43, %v2918_v58  ;;  %v2934_v20 = vrot.slane %v2932_v18, 1 }
 0x1e1   : > { %7324 = vmatprep.subr.bf16.mxu1 %v8128_v1 }
 0x1e2   : > { %v2927_v61 = vsel %vm10345_vm4, %v2922_v0, %v2926_v56  ;;  %v2935_v55 = vsel %vm10345_vm4, %v2930_v31, %v2934_v20  ;;  %v6188_v56 = vcombine.low %v9244_v60, %v9268_v11 }
 0x1e3   : > { %7213 = vmatmul.mubr.bf16.gmra.mrb[124].mxu1 %v6075_v36  ;;  %v3232_v36 = vld [vmem:[#allocation2 + $0xc] sm:$0xf] }
 0x1e4   : > { %7268 = vmatprep.mubr.msk.bf16.mxu1 %vm8129_vm0, %v8128_v1  ;;  %v6216_v37 = vcombine.low %v3232_v36, %v9360_v32  ;;  %v7967_v36 = vld [vmem:[#allocation2 + $0x2c] ss:$0 sps:$4 sm:$0xff]  }
 0x1e6   : > { %7305 = vmatmul.mubr.bf16.vlgmr.msra.gmra.mrb[132].mxu0 %v2911_v9  ;;  %v2936_v9 = vshrl.u32 %v6162_v27, 16  ;;  %v3287_v52 = vshll.u32 %v6216_v37, 16  ;;  %v3285_v28 = vshrl.u32 %v6216_v37, 16  ;;  %v3304_v27 = vshrl.u32 %v9392_v19, 16 }
 0x1e7   : > { %7308 = vmatprep.mubr.msk.bf16.mxu0 %vm8129_vm0, %v8128_v1  ;;  %7361 = vmatpush3.bf16.msra.mxu0 %v7931_v41  ;;  %v9377_v41 = vld [vmem:[#allocation2 + $0x14] sm:$0xff]  }
 0x1e8   : > { %7362 = vmatprep.subr.bf16.mxu0 %v8128_v1  ;;  %v2938_v3 = vor.u32 %v2936_v9, %v2934_v20  ;;  %v3296_v10 = vshrl.u32 %v9377_v41, 16  ;;  %v7965_v20 = vld [vmem:[%s10335_s3 + $0x228] sm:$0xff]  }
 0x1eb   : > { %7269 = vmatmul.mubr.bf16.vlgmr.msra.gmra.mrb[128].mxu1 %v6129_v35  ;;  %7363 = vmatpush3.bf16.msra.mxu0 %v7933_v16  ;;  %v3289_v35 = vrot.slane %v3287_v52, 1  ;;  %v6133_v16 = vcombine.low %v9177_v39, %v9177_v39  ;;  %v7954_v39 = vld [vmem:[%s10335_s3 + $0x200] sm:$0xff]  }
 0x1ec   : > { %7325 = vmatpush3.bf16.msra.mxu1 %v7928_v33  ;;  %7272 = vmatprep.mubr.msk.bf16.mxu1 %vm8129_vm0, %v8128_v1  ;;  %v3292_v33 = vshll.u32 %v9377_v41, 16 }
 0x1ed   : > { %7326 = vmatprep.subr.bf16.mxu1 %v8128_v1  ;;  %7364 = vmatprep.subr.bf16.mxu0 %v8128_v1  ;;  %v3290_v15 = vor.u32 %v3289_v35, %v3285_v28 }
 0x1ee   : > { %7309 = vmatmul.mubr.bf16.gmra.mrb[136].mxu0 %v2919_v53  ;;  %v3294_v58 = vrot.slane %v3292_v33, 1  ;;  %v6187_v53 = vcombine.low %v9238_v49, %v9242_v2  ;;  %v7958_v2 = vld [vmem:[%s10335_s3 + $0x210] sm:$0xff]  }
 0x1ef   : > { %7312 = vmatprep.mubr.msk.bf16.mxu0 %vm8129_vm0, %v8128_v1  ;;  %7365 = vmatpush3.bf16.msra.mxu0 %v7936_v50  ;;  %v3300_v50 = vshll.u32 %v9392_v19, 16 }
 0x1f0   : > { %7327 = vmatpush3.bf16.msra.mxu1 %v7930_v22  ;;  %7366 = vmatprep.subr.bf16.mxu0 %v8128_v1  ;;  %v3295_v22 = vsel %vm10345_vm4, %v3290_v15, %v3294_v58 }
 0x1f1   : > { %7328 = vmatprep.subr.bf16.mxu1 %v8128_v1  ;;  %v3302_v45 = vrot.slane %v3300_v50, 1 }
 0x1f3   : > { %7273 = vmatmul.mubr.bf16.gmra.mrb[132].mxu1 %v6130_v54  ;;  %7367 = vmatpush3.bf16.msra.mxu0 %v7939_v63  ;;  %v3298_v54 = vor.u32 %v3296_v10, %v3294_v58  ;;  %v7956_v63 = vld [vmem:[%s10335_s3 + $0x208] sm:$0xff]  }
 0x1f4   : > { %7329 = vmatpush3.bf16.msra.mxu1 %v7934_v48  ;;  %7276 = vmatprep.mubr.msk.bf16.mxu1 %vm8129_vm0, %v8128_v1  ;;  %v9406_v48 = vld [vmem:[#allocation2 + $0x24] sm:$0xff]  }
 0x1f5   : > { %7330 = vmatprep.subr.bf16.mxu1 %v8128_v1  ;;  %7368 = vmatprep.subr.bf16.mxu0 %v8128_v1  ;;  %v3303_v43 = vsel %vm10345_vm4, %v3298_v54, %v3302_v45  ;;  %v3308_v49 = vshll.u32 %v9406_v48, 16  ;;  %v3312_v18 = vshrl.u32 %v9406_v48, 16 }
 0x1f6   : > { %7313 = vmatmul.mubr.bf16.gmra.mrb[140].mxu0 %v2927_v61  ;;  %v7962_v61 = vld [vmem:[#allocation2 + $0x2c] sm:$0x1f]  }
 0x1f7   : > { %7316 = vmatprep.mubr.msk.bf16.mxu0 %vm8129_vm0, %v8128_v1  ;;  %7369 = vmatpush3.bf16.msra.mxu0 %v7942_v57  ;;  %v3310_v0 = vrot.slane %v3308_v49, 1  ;;  %v7960_v57 = vld [vmem:[%s10335_s3 + $0x218] sm:$0xff]   ;;  %v3316_v11 = vshll.u32 %v7962_v61, 16 }
 0x1f8   : > { %7331 = vmatpush3.bf16.msra.mxu1 %v7937_v26  ;;  %7370 = vmatprep.subr.bf16.mxu0 %v8128_v1  ;;  %v3306_v26 = vor.u32 %v3304_v27, %v3302_v45 }
 0x1f9   : > { %7332 = vmatprep.subr.bf16.mxu1 %v8128_v1  ;;  %v3318_v29 = vrot.slane %v3316_v11, 1 }
 0x1fa   : > { %v3311_v60 = vsel %vm10345_vm4, %v3306_v26, %v3310_v0 }
 0x1fb   : > { %7277 = vmatmul.mubr.bf16.gmra.mrb[136].mxu1 %v6131_v30  ;;  %7371 = vmatpush3.bf16.msra.mxu0 %v7945_v5  ;;  %v6189_v30 = vcombine.low %v9270_v34, %v9285_v24  ;;  %v3314_v5 = vor.u32 %v3312_v18, %v3310_v0  ;;  %v7966_v34 = vld [vmem:[%s10335_s3 + $0x230] sm:$0xff]   ;;  %v6190_v24 = vcombine.low %v9287_v40, %v9313_v47  ;;  %v3457_v40 = vld [vmem:[#allocation2 + $0xc] sm:$0xe] }
 0x1fc   : > { %7333 = vmatpush3.bf16.msra.mxu1 %v7941_v4  ;;  %7280 = vmatprep.mubr.msk.bf16.mxu1 %vm8129_vm0, %v8128_v1  ;;  %v7963_v4 = vld [vmem:[%s10335_s3 + $0x220] sm:$0xff]   ;;  %v6245_v47 = vcombine.low %v3457_v40, %v9360_v32 }
 0x1fd   : > { %7334 = vmatprep.subr.bf16.mxu1 %v8128_v1  ;;  %7372 = vmatprep.subr.bf16.mxu0 %v8128_v1  ;;  %v3319_v31 = vsel %vm10345_vm4, %v3314_v5, %v3318_v29 }
 0x1fe   : > { %7317 = vmatmul.mubr.bf16.gmra.mrb[144].mxu0 %v2935_v55  ;;  %v7968_v55 = vld [vmem:[%s10335_s3 + $0x238] sm:$0xff]   ;;  %v3478_v37 = vrot.slane %v6245_v47, 1 }
 0x1ff   : > { %7320 = vmatprep.mubr.msk.bf16.mxu0 %vm8129_vm0, %v8128_v1  ;;  %7373 = vmatpush3.bf16.msra.mxu0 %v7946_v8 }
 0x200   : > { %7335 = vmatpush3.bf16.msra.mxu1 %v7944_v46  ;;  %7374 = vmatprep.subr.bf16.mxu0 %v8128_v1  ;;  %v3320_v46 = vshrl.u32 %v7962_v61, 16 }
 0x201   : > { %7336 = vmatprep.subr.bf16.mxu1 %v8128_v1 }
 0x202   : > { %v3322_v8 = vor.u32 %v3320_v46, %v3318_v29 }
 0x203   : > { %7281 = vmatmul.mubr.bf16.gmra.mrb[140].mxu1 %v6132_v12  ;;  %7375 = vmatpush3.bf16.msra.mxu0 %v7949_v51  ;;  %v3481_v51 = vrot.slane %v9392_v19, 1 }
 0x204   : > { %7337 = vmatpush3.bf16.msra.mxu1 %v7947_v14  ;;  %7284 = vmatprep.mubr.msk.bf16.mxu1 %vm8129_vm0, %v8128_v1  ;;  %v3479_v14 = vrot.slane %v9377_v41, 1  ;;  %v3485_v41 = vrot.slane %v7962_v61, 1 }
 0x205   : > { %7338 = vmatprep.subr.bf16.mxu1 %v8128_v1  ;;  %7432 = vmatprep.subr.bf16.mxu0 %v8128_v1 }
 0x206   : > { %7321 = vmatmul.mubr.bf16.gmra.mrb[148].mxu0 %v2938_v3  ;;  %v3480_v12 = vsel %vm10344_vm5, %v3478_v37, %v3479_v14  ;;  %v3482_v9 = vsel %vm10344_vm5, %v3479_v14, %v3481_v51 }
 0x207   : > { %7376 = vmatprep.mubr.msk.bf16.mxu0 %vm8129_vm0, %v8128_v1 }
 0x208   : > { %7339 = vmatpush3.bf16.msra.mxu1 %v7950_v44  ;;  %v3483_v44 = vrot.slane %v9406_v48, 1 }
 0x209   : > { %7396 = vmatprep.subr.bf16.mxu1 %v8128_v1 }
 0x20a   : > { %v3484_v32 = vsel %vm10344_vm5, %v3481_v51, %v3483_v44  ;;  %v3486_v52 = vsel %vm10344_vm5, %v3483_v44, %v3485_v41 }
 0x20b   : > { %7285 = vmatmul.mubr.bf16.gmra.mrb[144].mxu1 %v6133_v16 }
 0x20c   : > { %7340 = vmatprep.mubr.msk.bf16.mxu1 %vm8129_vm0, %v8128_v1 }
 0x20e   : > { %7377 = vmatmul.mubr.bf16.vlgmr.msra.gmra.mrb[152].mxu0 %v3295_v22 }
 0x20f   : > { %7380 = vmatprep.mubr.msk.bf16.mxu0 %vm8129_vm0, %v8128_v1 }
 0x213   : > { %7341 = vmatmul.mubr.bf16.vlgmr.msra.gmra.mrb[148].mxu1 %v6187_v53 }
 0x214   : > { %7397 = vmatpush3.bf16.msra.mxu1 %v7954_v39  ;;  %7344 = vmatprep.mubr.msk.bf16.mxu1 %vm8129_vm0, %v8128_v1 }
 0x215   : > { %7398 = vmatprep.subr.bf16.mxu1 %v8128_v1 }
 0x216   : > { %7381 = vmatmul.mubr.bf16.gmra.mrb[156].mxu0 %v3303_v43 }
 0x217   : > { %7384 = vmatprep.mubr.msk.bf16.mxu0 %vm8129_vm0, %v8128_v1 }
 0x218   : > { %7399 = vmatpush3.bf16.msra.mxu1 %v7956_v63 }
 0x219   : > { %7400 = vmatprep.subr.bf16.mxu1 %v8128_v1 }
 0x21b   : > { %7345 = vmatmul.mubr.bf16.gmra.mrb[152].mxu1 %v6188_v56 }
 0x21c   : > { %7401 = vmatpush3.bf16.msra.mxu1 %v7958_v2  ;;  %7348 = vmatprep.mubr.msk.bf16.mxu1 %vm8129_vm0, %v8128_v1 }
 0x21d   : > { %7402 = vmatprep.subr.bf16.mxu1 %v8128_v1 }
 0x21e   : > { %7385 = vmatmul.mubr.bf16.gmra.mrb[160].mxu0 %v3311_v60 }
 0x21f   : > { %7388 = vmatprep.mubr.msk.bf16.mxu0 %vm8129_vm0, %v8128_v1 }
 0x220   : > { %7403 = vmatpush3.bf16.msra.mxu1 %v7960_v57 }
 0x221   : > { %7404 = vmatprep.subr.bf16.mxu1 %v8128_v1 }
 0x223   : > { %7349 = vmatmul.mubr.bf16.gmra.mrb[156].mxu1 %v6189_v30 }
 0x224   : > { %7405 = vmatpush3.bf16.msra.mxu1 %v7963_v4  ;;  %7352 = vmatprep.mubr.msk.bf16.mxu1 %vm8129_vm0, %v8128_v1 }
 0x225   : > { %7406 = vmatprep.subr.bf16.mxu1 %v8128_v1 }
 0x226   : > { %7389 = vmatmul.mubr.bf16.gmra.mrb[164].mxu0 %v3319_v31 }
 0x227   : > { %7392 = vmatprep.mubr.msk.bf16.mxu0 %vm8129_vm0, %v8128_v1 }
 0x228   : > { %7407 = vmatpush3.bf16.msra.mxu1 %v7965_v20 }
 0x229   : > { %7408 = vmatprep.subr.bf16.mxu1 %v8128_v1 }
 0x22b   : > { %7353 = vmatmul.mubr.bf16.gmra.mrb[160].mxu1 %v6190_v24 }
 0x22c   : > { %7409 = vmatpush3.bf16.msra.mxu1 %v7966_v34  ;;  %7356 = vmatprep.mubr.msk.bf16.mxu1 %vm8129_vm0, %v8128_v1 }
 0x22d   : > { %7410 = vmatprep.subr.bf16.mxu1 %v8128_v1 }
 0x22e   : > { %7393 = vmatmul.mubr.bf16.gmra.mrb[168].mxu0 %v3322_v8 }
 0x22f   : > { %7448 = vmatprep.mubr.msk.bf16.mxu0 %vm8129_vm0, %v8128_v1 }
 0x230   : > { %7411 = vmatpush3.bf16.msra.mxu1 %v7968_v55 }
 0x231   : > { %7468 = vmatprep.subr.bf16.mxu1 %v8128_v1 }
 0x233   : > { %7357 = vmatmul.mubr.bf16.gmra.mrb[164].mxu1 %v7967_v36 }
 0x234   : > { %7412 = vmatprep.mubr.msk.bf16.mxu1 %vm8129_vm0, %v8128_v1 }
 0x23b   : > { %7413 = vmatmul.mubr.bf16.vlgmr.msra.gmra.mrb[168].mxu1 %v3480_v12 }
 0x23c   : > { %7416 = vmatprep.mubr.msk.bf16.mxu1 %vm8129_vm0, %v8128_v1 }
 0x243   : > { %7417 = vmatmul.mubr.bf16.gmra.mrb[172].mxu1 %v3482_v9 }
 0x244   : > { %7420 = vmatprep.mubr.msk.bf16.mxu1 %vm8129_vm0, %v8128_v1 }
 0x24b   : > { %7421 = vmatmul.mubr.bf16.gmra.mrb[176].mxu1 %v3484_v32 }
 0x24c   : > { %7424 = vmatprep.mubr.msk.bf16.mxu1 %vm8129_vm0, %v8128_v1 }
 0x253   : > { %7425 = vmatmul.mubr.bf16.gmra.mrb[180].mxu1 %v3486_v52 }
 0x254   : > { %7428 = vmatprep.mubr.msk.bf16.mxu1 %vm8129_vm0, %v8128_v1 }
 0x25b   : > { %7429 = vmatmul.mubr.bf16.gmra.mrb[184].mxu1 %v3485_v41 }
 0x25c   : > { %7484 = vmatprep.mubr.msk.bf16.mxu1 %vm8129_vm0, %v8128_v1 }
 0x269   : > { %v2268_v3 = vpop.f32.mrb[92].mxu0 }
 0x26a   : > { %v7162_v33 = vpop.f32.mrb[93].mxu0 }
 0x26b   : > { %v2271_v35 = vpop.f32.mrb[94].mxu0 }
 0x26c   : > { %v7163_v16 = vpop.f32.mrb[95].mxu0 }
 0x26d   : > { %v2131_v28 = vpop.f32.mrb[88].mxu1 }
 0x26e   : > { %v2269_v58 = vadd.f32 %v2268_v3, %v2131_v28  ;;  %v7126_v19 = vpop.f32.mrb[89].mxu1 }
 0x26f   : > { %v2134_v15 = vpop.f32.mrb[90].mxu1 }
 0x270   : > { %v2272_v22 = vadd.f32 %v2271_v35, %v2134_v15  ;;  %v7127_v50 = vpop.f32.mrb[91].mxu1 }
 0x271   : > { %v2276_v39 = vpop.f32.mrb[96].mxu0 }
 0x272   : > { %v7166_v53 = vpop.f32.mrb[97].mxu0 }
 0x273   : > { %v2279_v10 = vpop.f32.mrb[98].mxu0 }
 0x274   : > { %v7167_v45 = vpop.f32.mrb[99].mxu0 }
 0x275   : > { %v2139_v48 = vpop.f32.mrb[92].mxu1 }
 0x276   : > { %v2277_v54 = vadd.f32 %v2276_v39, %v2139_v48  ;;  %v7130_v63 = vpop.f32.mrb[93].mxu1 }
 0x277   : > { %v2142_v43 = vpop.f32.mrb[94].mxu1 }
 0x278   : > { %v2280_v49 = vadd.f32 %v2279_v10, %v2142_v43  ;;  %v7131_v2 = vpop.f32.mrb[95].mxu1 }
 0x279   : > { %v2284_v56 = vpop.f32.mrb[100].mxu0 }
 0x27a   : > { %v7170_v27 = vpop.f32.mrb[101].mxu0 }
 0x27b   : > { %v2287_v0 = vpop.f32.mrb[102].mxu0 }
 0x27c   : > { %v7171_v26 = vpop.f32.mrb[103].mxu0 }
 0x27d   : > { %v2147_v57 = vpop.f32.mrb[96].mxu1 }
 0x27e   : > { %v2285_v61 = vadd.f32 %v2284_v56, %v2147_v57  ;;  %v7134_v60 = vpop.f32.mrb[97].mxu1 }
 0x27f   : > { %v2150_v11 = vpop.f32.mrb[98].mxu1 }
 0x280   : > { %v2288_v18 = vadd.f32 %v2287_v0, %v2150_v11  ;;  %v7135_v4 = vpop.f32.mrb[99].mxu1 }
 0x281   : > { %v2292_v30 = vpop.f32.mrb[104].mxu0 }
 0x282   : > { %v7174_v5 = vpop.f32.mrb[105].mxu0 }
 0x283   : > { %v2295_v29 = vpop.f32.mrb[106].mxu0 }
 0x284   : > { %v7175_v20 = vpop.f32.mrb[107].mxu0 }
 0x286   : > { %v2155_v31 = vpop.f32.mrb[100].mxu1 }
 0x287   : > { %v2293_v46 = vadd.f32 %v2292_v30, %v2155_v31  ;;  %v7138_v34 = vpop.f32.mrb[101].mxu1 }
 0x288   : > { %v2158_v24 = vpop.f32.mrb[102].mxu1 }
 0x289   : > { %v2296_v8 = vadd.f32 %v2295_v29, %v2158_v24  ;;  %v7139_v55 = vpop.f32.mrb[103].mxu1  ;;  %v2300_v36 = vpop.f32.mrb[108].mxu0 }
 0x28a   : > { %v7178_v40 = vpop.f32.mrb[109].mxu0 }
 0x28b   : > { %v2303_v47 = vpop.f32.mrb[110].mxu0 }
 0x28c   : > { %v7179_v14 = vpop.f32.mrb[111].mxu0 }
 0x28e   : > { %v2163_v37 = vpop.f32.mrb[104].mxu1 }
 0x28f   : > { %v2301_v12 = vadd.f32 %v2300_v36, %v2163_v37  ;;  %v7142_v51 = vpop.f32.mrb[105].mxu1 }
 0x290   : > { %v2166_v9 = vpop.f32.mrb[106].mxu1 }
 0x291   : > { %v7143_v44 = vpop.f32.mrb[107].mxu1  ;;  %v2645_v32 = vpop.f32.mrb[112].mxu0 }
 0x292   : > { %v7234_v41 = vpop.f32.mrb[113].mxu0 }
 0x293   : > { %v2648_v52 = vpop.f32.mrb[114].mxu0 }
 0x294   : > { %v7235_v3 = vpop.f32.mrb[115].mxu0 }
 0x296   : > { %v2415_v33 = vpop.f32.mrb[108].mxu1 }
 0x297   : > { %v2453_v35 = vadd.f32 %v2415_v33, %v2269_v58  ;;  %v7198_v16 = vpop.f32.mrb[109].mxu1 }
 0x298   : > { %v2418_v28 = vpop.f32.mrb[110].mxu1 }
 0x299   : > { %v2454_v19 = vadd.f32 %v2418_v28, %v2272_v22  ;;  %v7199_v15 = vpop.f32.mrb[111].mxu1  ;;  %v2683_v50 = vadd.f32 %v2645_v32, %v2453_v35  ;;  %v2653_v39 = vpop.f32.mrb[116].mxu0 }
 0x29a   : > { %v7238_v53 = vpop.f32.mrb[117].mxu0 }
 0x29b   : > { %v2684_v10 = vadd.f32 %v2648_v52, %v2454_v19  ;;  %v2656_v45 = vpop.f32.mrb[118].mxu0 }
 0x29c   : > { %v7239_v48 = vpop.f32.mrb[119].mxu0 }
 0x29e   : > { %v2423_v63 = vpop.f32.mrb[112].mxu1 }
 0x29f   : > { %v2455_v43 = vadd.f32 %v2423_v63, %v2277_v54  ;;  %v7202_v2 = vpop.f32.mrb[113].mxu1 }
 0x2a0   : > { %v2426_v56 = vpop.f32.mrb[114].mxu1 }
 0x2a1   : > { %v2456_v27 = vadd.f32 %v2426_v56, %v2280_v49  ;;  %v7203_v0 = vpop.f32.mrb[115].mxu1  ;;  %v2685_v26 = vadd.f32 %v2653_v39, %v2455_v43  ;;  %v2661_v57 = vpop.f32.mrb[120].mxu0 }
 0x2a2   : > { %v7242_v60 = vpop.f32.mrb[121].mxu0 }
 0x2a3   : > { %v2686_v58 = vadd.f32 %v2656_v45, %v2456_v27  ;;  %v2664_v11 = vpop.f32.mrb[122].mxu0 }
 0x2a4   : > { %v7243_v4 = vpop.f32.mrb[123].mxu0 }
 0x2a6   : > { %v2431_v22 = vpop.f32.mrb[116].mxu1 }
 0x2a7   : > { %v2457_v30 = vadd.f32 %v2431_v22, %v2285_v61  ;;  %v7206_v5 = vpop.f32.mrb[117].mxu1 }
 0x2a8   : > { %v2434_v29 = vpop.f32.mrb[118].mxu1 }
 0x2a9   : > { %v2458_v20 = vadd.f32 %v2434_v29, %v2288_v18  ;;  %v7207_v31 = vpop.f32.mrb[119].mxu1  ;;  %v2687_v34 = vadd.f32 %v2661_v57, %v2457_v30  ;;  %v2669_v24 = vpop.f32.mrb[124].mxu0 }
 0x2aa   : > { %v7246_v55 = vpop.f32.mrb[125].mxu0 }
 0x2ab   : > { %v2688_v54 = vadd.f32 %v2664_v11, %v2458_v20  ;;  %v2672_v36 = vpop.f32.mrb[126].mxu0 }
 0x2ac   : > { %v7247_v40 = vpop.f32.mrb[127].mxu0 }
 0x2ae   : > { %v2439_v49 = vpop.f32.mrb[120].mxu1 }
 0x2af   : > { %v2459_v47 = vadd.f32 %v2439_v49, %v2293_v46  ;;  %v7210_v14 = vpop.f32.mrb[121].mxu1 }
 0x2b0   : > { %v2442_v37 = vpop.f32.mrb[122].mxu1 }
 0x2b1   : > { %v2460_v51 = vadd.f32 %v2442_v37, %v2296_v8  ;;  %v7211_v9 = vpop.f32.mrb[123].mxu1  ;;  %v2689_v44 = vadd.f32 %v2669_v24, %v2459_v47  ;;  %v2677_v32 = vpop.f32.mrb[128].mxu0 }
 0x2b2   : > { %v7250_v41 = vpop.f32.mrb[129].mxu0 }
 0x2b3   : > { %v2690_v61 = vadd.f32 %v2672_v36, %v2460_v51  ;;  %v2680_v52 = vpop.f32.mrb[130].mxu0 }
 0x2b4   : > { %v7251_v3 = vpop.f32.mrb[131].mxu0 }
 0x2b6   : > { %v2447_v18 = vpop.f32.mrb[124].mxu1 }
 0x2b7   : > { %v2461_v33 = vadd.f32 %v2447_v18, %v2301_v12  ;;  %v7214_v35 = vpop.f32.mrb[125].mxu1 }
 0x2b8   : > { %v2450_v16 = vpop.f32.mrb[126].mxu1 }
 0x2b9   : > { %v7215_v28 = vpop.f32.mrb[127].mxu1  ;;  %v2691_v19 = vadd.f32 %v2677_v32, %v2461_v33  ;;  %v3026_v15 = vpop.f32.mrb[132].mxu0 }
 0x2ba   : > { %v7306_v39 = vpop.f32.mrb[133].mxu0 }
 0x2bb   : > { %v3029_v53 = vpop.f32.mrb[134].mxu0 }
 0x2bc   : > { %v7307_v46 = vpop.f32.mrb[135].mxu0 }
 0x2be   : > { %v2801_v45 = vpop.f32.mrb[128].mxu1 }
 0x2bf   : > { %v2839_v48 = vadd.f32 %v2801_v45, %v2683_v50  ;;  %v7270_v8 = vpop.f32.mrb[129].mxu1 }
 0x2c0   : > { %v2804_v63 = vpop.f32.mrb[130].mxu1 }
 0x2c1   : > { %v2840_v43 = vadd.f32 %v2804_v63, %v2684_v10  ;;  %v7271_v2 = vpop.f32.mrb[131].mxu1  ;;  %v3064_v56 = vadd.f32 %v3026_v15, %v2839_v48  ;;  %v3034_v27 = vpop.f32.mrb[136].mxu0 }
 0x2c2   : > { %v7310_v0 = vpop.f32.mrb[137].mxu0 }
 0x2c3   : > { %v3065_v57 = vadd.f32 %v3029_v53, %v2840_v43  ;;  %v3037_v60 = vpop.f32.mrb[138].mxu0 }
 0x2c4   : > { %v7311_v12 = vpop.f32.mrb[139].mxu0 }
 0x2c6   : > { %v2809_v11 = vpop.f32.mrb[132].mxu1 }
 0x2c7   : > { %v2841_v4 = vadd.f32 %v2809_v11, %v2685_v26  ;;  %v7274_v22 = vpop.f32.mrb[133].mxu1 }
 0x2c8   : > { %v2812_v30 = vpop.f32.mrb[134].mxu1 }
 0x2c9   : > { %v2842_v5 = vadd.f32 %v2812_v30, %v2686_v58  ;;  %v7275_v29 = vpop.f32.mrb[135].mxu1  ;;  %v3066_v20 = vadd.f32 %v3034_v27, %v2841_v4  ;;  %v3042_v31 = vpop.f32.mrb[140].mxu0 }
 0x2ca   : > { %v7314_v24 = vpop.f32.mrb[141].mxu0 }
 0x2cb   : > { %v3067_v50 = vadd.f32 %v3037_v60, %v2842_v5  ;;  %v3045_v55 = vpop.f32.mrb[142].mxu0 }
 0x2cc   : > { %v7315_v36 = vpop.f32.mrb[143].mxu0 }
 0x2ce   : > { %v2817_v10 = vpop.f32.mrb[136].mxu1 }
 0x2cf   : > { %v2843_v40 = vadd.f32 %v2817_v10, %v2687_v34  ;;  %v7278_v49 = vpop.f32.mrb[137].mxu1 }
 0x2d0   : > { %v2820_v47 = vpop.f32.mrb[138].mxu1 }
 0x2d1   : > { %v2844_v14 = vadd.f32 %v2820_v47, %v2688_v54  ;;  %v7279_v37 = vpop.f32.mrb[139].mxu1  ;;  %v3068_v51 = vadd.f32 %v3042_v31, %v2843_v40  ;;  %v3050_v9 = vpop.f32.mrb[144].mxu0 }
 0x2d2   : > { %v7318_v32 = vpop.f32.mrb[145].mxu0 }
 0x2d3   : > { %v3069_v26 = vadd.f32 %v3045_v55, %v2844_v14  ;;  %v3053_v41 = vpop.f32.mrb[146].mxu0 }
 0x2d4   : > { %v7319_v52 = vpop.f32.mrb[147].mxu0 }
 0x2d6   : > { %v2825_v58 = vpop.f32.mrb[140].mxu1 }
 0x2d7   : > { %v2845_v3 = vadd.f32 %v2825_v58, %v2689_v44  ;;  %v7282_v18 = vpop.f32.mrb[141].mxu1 }
 0x2d8   : > { %v2828_v33 = vpop.f32.mrb[142].mxu1 }
 0x2d9   : > { %v2846_v35 = vadd.f32 %v2828_v33, %v2690_v61  ;;  %v7283_v16 = vpop.f32.mrb[143].mxu1  ;;  %v3070_v28 = vadd.f32 %v3050_v9, %v2845_v3  ;;  %v3058_v15 = vpop.f32.mrb[148].mxu0 }
 0x2da   : > { %v7322_v39 = vpop.f32.mrb[149].mxu0 }
 0x2db   : > { %v3071_v34 = vadd.f32 %v3053_v41, %v2846_v35  ;;  %v3061_v53 = vpop.f32.mrb[150].mxu0 }
 0x2dc   : > { %v7323_v46 = vpop.f32.mrb[151].mxu0 }
 0x2de   : > { %v2833_v54 = vpop.f32.mrb[144].mxu1 }
 0x2df   : > { %v2847_v45 = vadd.f32 %v2833_v54, %v2691_v19  ;;  %v7286_v48 = vpop.f32.mrb[145].mxu1 }
 0x2e0   : > { %v2836_v8 = vpop.f32.mrb[146].mxu1 }
 0x2e1   : > { %v7287_v63 = vpop.f32.mrb[147].mxu1  ;;  %v3072_v43 = vadd.f32 %v3058_v15, %v2847_v45  ;;  %v3410_v2 = vpop.f32.mrb[152].mxu0 }
 0x2e2   : > { %v7378_v27 = vpop.f32.mrb[153].mxu0 }
 0x2e3   : > { %v3413_v0 = vpop.f32.mrb[154].mxu0 }
 0x2e4   : > { %v7379_v44 = vpop.f32.mrb[155].mxu0 }
 0x2e6   : > { %v3185_v60 = vpop.f32.mrb[148].mxu1 }
 0x2e7   : > { %v3223_v12 = vadd.f32 %v3185_v60, %v3064_v56  ;;  %v7342_v61 = vpop.f32.mrb[149].mxu1 }
 0x2e8   : > { %v3188_v11 = vpop.f32.mrb[150].mxu1 }
 0x2e9   : > { %v3224_v4 = vadd.f32 %v3188_v11, %v3065_v57  ;;  %v7343_v22 = vpop.f32.mrb[151].mxu1  ;;  %v3448_v30 = vadd.f32 %v3410_v2, %v3223_v12  ;;  %v3418_v5 = vpop.f32.mrb[156].mxu0 }
 0x2ea   : > { %v7382_v29 = vpop.f32.mrb[157].mxu0 }
 0x2eb   : > { %v3449_v31 = vadd.f32 %v3413_v0, %v3224_v4  ;;  %v3421_v24 = vpop.f32.mrb[158].mxu0 }
 0x2ec   : > { %v7383_v19 = vpop.f32.mrb[159].mxu0 }
 0x2ee   : > { %v3193_v55 = vpop.f32.mrb[152].mxu1 }
 0x2ef   : > { %v3225_v36 = vadd.f32 %v3193_v55, %v3066_v20  ;;  %v7346_v10 = vpop.f32.mrb[153].mxu1 }
 0x2f0   : > { %v3196_v40 = vpop.f32.mrb[154].mxu1  ;;  %v6254_v10 = vld [vmem:[%s10336_s4] ss:$0 sm:$0xff] }
 0x2f1   : > { %v3226_v49 = vadd.f32 %v3196_v40, %v3067_v50  ;;  %v7347_v47 = vpop.f32.mrb[155].mxu1  ;;  %v3450_v14 = vadd.f32 %v3418_v5, %v3225_v36  ;;  %v3426_v37 = vpop.f32.mrb[160].mxu0 }
 0x2f2   : > { %v7386_v9 = vpop.f32.mrb[161].mxu0 }
 0x2f3   : > { %v3451_v56 = vadd.f32 %v3421_v24, %v3226_v49  ;;  %v3429_v32 = vpop.f32.mrb[162].mxu0 }
 0x2f4   : > { %v7387_v41 = vpop.f32.mrb[163].mxu0 }
 0x2f6   : > { %v3201_v57 = vpop.f32.mrb[156].mxu1 }
 0x2f7   : > { %v3227_v52 = vadd.f32 %v3201_v57, %v3068_v51  ;;  %v7350_v58 = vpop.f32.mrb[157].mxu1 }
 0x2f8   : > { %v3204_v3 = vpop.f32.mrb[158].mxu1 }
 0x2f9   : > { %v3228_v18 = vadd.f32 %v3204_v3, %v3069_v26  ;;  %v7351_v33 = vpop.f32.mrb[159].mxu1  ;;  %v3452_v35 = vadd.f32 %v3426_v37, %v3227_v52  ;;  %v3434_v16 = vpop.f32.mrb[164].mxu0 }
 0x2fa   : > { %v7390_v15 = vpop.f32.mrb[165].mxu0 }
 0x2fb   : > { %v3453_v20 = vadd.f32 %v3429_v32, %v3228_v18  ;;  %v3437_v39 = vpop.f32.mrb[166].mxu0 }
 0x2fc   : > { %v7391_v53 = vpop.f32.mrb[167].mxu0 }
 0x2fe   : > { %v3209_v50 = vpop.f32.mrb[160].mxu1 }
 0x2ff   : > { %v3229_v46 = vadd.f32 %v3209_v50, %v3070_v28  ;;  %v7354_v54 = vpop.f32.mrb[161].mxu1 }
 0x300   : > { %v3212_v45 = vpop.f32.mrb[162].mxu1 }
 0x301   : > { %v3230_v48 = vadd.f32 %v3212_v45, %v3071_v34  ;;  %v7355_v8 = vpop.f32.mrb[163].mxu1  ;;  %v3454_v63 = vadd.f32 %v3434_v16, %v3229_v46  ;;  %v3442_v2 = vpop.f32.mrb[168].mxu0 }
 0x302   : > { %v7394_v51 = vpop.f32.mrb[169].mxu0 }
 0x303   : > { %v3455_v27 = vadd.f32 %v3437_v39, %v3230_v48  ;;  %v3445_v0 = vpop.f32.mrb[170].mxu0 }
 0x304   : > { %v7395_v44 = vpop.f32.mrb[171].mxu0 }
 0x306   : > { %v3217_v26 = vpop.f32.mrb[164].mxu1 }
 0x307   : > { %v3231_v60 = vadd.f32 %v3217_v26, %v3072_v43  ;;  %v7358_v12 = vpop.f32.mrb[165].mxu1 }
 0x308   : > { %v3220_v61 = vpop.f32.mrb[166].mxu1 }
 0x309   : > { %v3456_v11 = vadd.f32 %v3442_v2, %v3231_v60  ;;  %v7359_v4 = vpop.f32.mrb[167].mxu1 }
 0x30e   : > { %v3574_v22 = vpop.f32.mrb[168].mxu1 }
 0x30f   : > { %v3612_v5 = vadd.f32 %v3574_v22, %v3448_v30  ;;  %v7414_v29 = vpop.f32.mrb[169].mxu1 }
 0x310   : > { %v3577_v28 = vpop.f32.mrb[170].mxu1 }
 0x311   : > { %v3613_v24 = vadd.f32 %v3577_v28, %v3449_v31  ;;  %v7415_v19 = vpop.f32.mrb[171].mxu1  ;;  %v3628_v37 = vadd.f32 %v6254_v10, %v3612_v5 }
 0x313   : > { %v3629_v49 = vadd.f32 %v6254_v10, %v3613_v24  ;;  %v9494_v31 = vsel %vm8820_vm12, %v3628_v37, 0.0 }
 0x315   : > { %v9490_v30 = vsel %vm8832_vm15, %v3629_v49, 0.0 }
 0x316   : > { %v3582_v34 = vpop.f32.mrb[172].mxu1 }
 0x317   : > { %v3614_v55 = vadd.f32 %v3582_v34, %v3450_v14  ;;  %v7418_v36 = vpop.f32.mrb[173].mxu1 }
 0x318   : > { %v3585_v40 = vpop.f32.mrb[174].mxu1 }
 0x319   : > { %v3615_v43 = vadd.f32 %v3585_v40, %v3451_v56  ;;  %v7419_v47 = vpop.f32.mrb[175].mxu1  ;;  %v3630_v9 = vadd.f32 %v6254_v10, %v3614_v55  ;;  %v3648_v56 = vadd.f32 %v9490_v30, %v9494_v31 }
 0x31b   : > { %v9498_v14 = vsel %vm8891_vm6, %v3630_v9, 0.0  ;;  %v3631_v41 = vadd.f32 %v6254_v10, %v3615_v43 }
 0x31c   : > { %v3649_v16 = vadd.f32 %v3648_v56, %v9498_v14 }
 0x31d   : > { %v9505_v15 = vsel %vm8909_vm7, %v3631_v41, 0.0 }
 0x31e   : > { %v3590_v32 = vpop.f32.mrb[176].mxu1 }
 0x31f   : > { %v3616_v57 = vadd.f32 %v3590_v32, %v3452_v35  ;;  %v7422_v52 = vpop.f32.mrb[177].mxu1  ;;  %v3650_v35 = vadd.f32 %v3649_v16, %v9505_v15 }
 0x320   : > { %v3593_v58 = vpop.f32.mrb[178].mxu1 }
 0x321   : > { %v3632_v3 = vadd.f32 %v6254_v10, %v3616_v57  ;;  %v3617_v18 = vadd.f32 %v3593_v58, %v3453_v20  ;;  %v7423_v33 = vpop.f32.mrb[179].mxu1 }
 0x323   : > { %v9509_v39 = vsel %vm8918_vm8, %v3632_v3, 0.0  ;;  %v3633_v53 = vadd.f32 %v6254_v10, %v3617_v18 }
 0x324   : > { %v3651_v45 = vadd.f32 %v3650_v35, %v9509_v39  ;;  %v9537_v35 = vand.u32 127, %v388_v6 }
 0x325   : > { %v9515_v48 = vsel %vm8922_vm9, %v3633_v53, 0.0 }
 0x326   : > { %v3598_v50 = vpop.f32.mrb[180].mxu1  ;;  %v3652_v26 = vadd.f32 %v3651_v45, %v9515_v48  ;;  %vm3679_vm10 = vcmp.ge.s32.totalorder %v9537_v35, 4  ;;  %vm3680_vm5 = vcmp.lt.s32.totalorder %v9537_v35, 8  ;;  %vm3663_vm4 = vcmp.lt.s32.totalorder %v9537_v35, 4 }
 0x327   : > { %v3618_v46 = vadd.f32 %v3598_v50, %v3454_v63  ;;  %v7426_v54 = vpop.f32.mrb[181].mxu1  ;;  %vm9545_vm1 = vmand %vm3679_vm10, %vm3680_vm5  ;;  %vm10385_vm5 = vsmask.f32 4352 }
 0x328   : > { %v3601_v20 = vpop.f32.mrb[182].mxu1  ;;  %vm10386_vm10 = vmmov %vm10385_vm5 }
 0x329   : > { %v3634_v8 = vadd.f32 %v6254_v10, %v3618_v46  ;;  %v3619_v2 = vadd.f32 %v3601_v20, %v3455_v27  ;;  %v7427_v51 = vpop.f32.mrb[183].mxu1 }
 0x32b   : > { %v9519_v0 = vsel %vm9013_vm14, %v3634_v8, 0.0  ;;  %v3635_v44 = vadd.f32 %v6254_v10, %v3619_v2 }
 0x32c   : > { %v3653_v63 = vadd.f32 %v3652_v26, %v9519_v0 }
 0x32d   : > { %v9525_v12 = vsel %vm9019_vm2, %v3635_v44, 0.0 }
 0x32e   : > { %v3606_v60 = vpop.f32.mrb[184].mxu1  ;;  %v3654_v29 = vadd.f32 %v3653_v63, %v9525_v12 }
 0x32f   : > { %v3620_v61 = vadd.f32 %v3606_v60, %v3456_v11  ;;  %v7430_v4 = vpop.f32.mrb[185].mxu1 }
 0x330   : > { %v3609_v22 = vpop.f32.mrb[186].mxu1 }
 0x331   : > { %v3636_v5 = vadd.f32 %v6254_v10, %v3620_v61  ;;  %v7431_v27 = vpop.f32.mrb[187].mxu1 }
 0x333   : > { %v9530_v28 = vsel %vm9066_vm11, %v3636_v5, 0.0 }
 0x334   : > { %v3655_v24 = vadd.f32 %v3654_v29, %v9530_v28 }
 0x336   : > { %v3656_v19 = vrot.slane %v3655_v24, 4 }
 0x338   : > { %v3657_v34 = vadd.f32 %v3656_v19, %v3655_v24 }
 0x33a   : > { %v3658_v55 = vrot.slane %v3657_v34, 2 }
 0x33c   : > { %v3659_v36 = vadd.f32 %v3658_v55, %v3657_v34 }
 0x33e   : > { %v3660_v40 = vrot.slane %v3659_v36, 1 }
 0x340   : > { %v3661_v49 = vadd.f32 %v3660_v40, %v3659_v36 }
 0x342   : > { %3683 = vrot.lane.b32.xlu0 %v3661_v49, %s8131_s19  ;;  %v3666_v11 = vsel %vm3665_vm13, %v3661_v49, 0.0 }
 0x361   : > { %3667 = vadd.xlane.f32.xlu0 %v3666_v11 }
 0x3b4   : > { %v3684_v10 = vpop.permute.xlu0 %3683 }
 0x3b5   : > { %v3686_v43 = vsel %vm3665_vm13, %v3684_v10, 0.0 }
 0x3b6   : > { %3687 = vadd.xlane.f32.xlu1 %v3686_v43 }
 0x3ee   : > { %v3668_v47 = vpop.xlane.xlu0 %3667 }
 0x3ef   : > { %v3669_v37 = vrot.slane %v3668_v47, 4 }
 0x3f1   : > { %v3670_v9 = vadd.f32 %v3669_v37, %v3668_v47 }
 0x3f3   : > { %v3671_v32 = vrot.slane %v3670_v9, 2 }
 0x3f5   : > { %v3672_v41 = vadd.f32 %v3671_v32, %v3670_v9 }
 0x3f7   : > { %v3673_v57 = vrot.slane %v3672_v41, 1 }
 0x3f9   : > { %v3674_v52 = vadd.f32 %v3673_v57, %v3672_v41 }
 0x3fb   : > { %7778 = vpush %v3674_v52 }
 0x42c   : > { %s7779_s20 = spop %7778 }
 0x42d   : > { %s9539_s21 = smul.f32 0.00390625, %s7779_s20 }
 0x42f   : > { %v3677_v50 = vstv %s9539_s21  ;;  %s3741_s24 = smul.f32 32.0, %s9539_s21 }
 0x430   : > { %v3678_v6 = vsel %vm3663_vm4, %v3677_v50, 0.0 }
 0x431   : > { %s3742_s25 = smul.f32 %s3741_s24, %s9539_s21 }
 0x443   : > { %v3688_v56 = vpop.xlane.xlu1 %3687 }
 0x444   : > { %v3689_v58 = vrot.slane %v3688_v56, 4 }
 0x446   : > { %v3690_v3 = vadd.f32 %v3689_v58, %v3688_v56 }
 0x448   : > { %v3691_v18 = vrot.slane %v3690_v3, 2 }
 0x44a   : > { %v3692_v33 = vadd.f32 %v3691_v18, %v3690_v3 }
 0x44c   : > { %v3693_v16 = vrot.slane %v3692_v33, 1 }
 0x44e   : > { %v3694_v53 = vadd.f32 %v3693_v16, %v3692_v33 }
 0x450   : > { %7780 = vpush %v3694_v53 }
 0x481   : > { %s7781_s22 = spop %7780 }
 0x482   : > { %s9549_s23 = smul.f32 0.00390625, %s7781_s22 }
 0x484   : > { %v3697_v54 = vstv %s9549_s23  ;;  %s3766_s22 = smul.f32 32.0, %s9549_s23 }
 0x485   : > { %v3698_v45 = vsel %vm9545_vm1, %v3697_v54, %v3678_v6 }
 0x486   : > { %v9557_v20 = vsub.f32 %v9494_v31, %v3698_v45  ;;  %v9560_v8 = vsub.f32 %v9490_v30, %v3698_v45  ;;  %v9563_v2 = vsub.f32 %v9498_v14, %v3698_v45  ;;  %v9566_v51 = vsub.f32 %v9505_v15, %v3698_v45 }
 0x487   : > { %v9573_v63 = vsub.f32 %v9509_v39, %v3698_v45  ;;  %v9578_v60 = vsub.f32 %v9515_v48, %v3698_v45  ;;  %v9583_v61 = vsub.f32 %v9519_v0, %v3698_v45  ;;  %v9588_v39 = vsub.f32 %v9525_v12, %v3698_v45 }
 0x488   : > { %v3708_v44 = vmul.f32 %v9557_v20, %v9557_v20  ;;  %v3709_v26 = vmul.f32 %v9560_v8, %v9560_v8  ;;  %v3710_v31 = vmul.f32 %v9563_v2, %v9563_v2  ;;  %v3711_v14 = vmul.f32 %v9566_v51, %v9566_v51 }
 0x489   : > { %v3712_v4 = vmul.f32 %v9573_v63, %v9573_v63  ;;  %v3713_v5 = vmul.f32 %v9578_v60, %v9578_v60  ;;  %v9593_v48 = vsub.f32 %v9530_v28, %v3698_v45  ;;  %v3714_v29 = vmul.f32 %v9583_v61, %v9583_v61 }
 0x48a   : > { %v3717_v30 = vadd.f32 %v3709_v26, %v3708_v44  ;;  %v3715_v0 = vmul.f32 %v9588_v39, %v9588_v39  ;;  %v7970_v44 = vld [vmem:[%s10339_s7 + $0x40] sm:$0xff]  }
 0x48b   : > { %v3716_v34 = vmul.f32 %v9593_v48, %v9593_v48  ;;  %v7972_v26 = vld [vmem:[%s10339_s7] sm:$0xff]   ;;  %7433 = vmatpush3.bf16.msra.mxu0 %v7970_v44 }
 0x48c   : > { %v3718_v15 = vadd.f32 %v3717_v30, %v3710_v31  ;;  %v7971_v31 = vld [vmem:[%s10339_s7 + $0x48] sm:$0xff]   ;;  %7469 = vmatpush3.bf16.msra.mxu1 %v7972_v26  ;;  %7434 = vmatprep.subr.bf16.mxu0 %v8128_v1 }
 0x48d   : > { %v7973_v30 = vld [vmem:[%s10339_s7 + $0x8] sm:$0xff]   ;;  %7470 = vmatprep.subr.bf16.mxu1 %v8128_v1 }
 0x48e   : > { %v3719_v22 = vadd.f32 %v3718_v15, %v3711_v14  ;;  %v7974_v14 = vld [vmem:[%s10339_s7 + $0x50] sm:$0xff]  }
 0x48f   : > { %7435 = vmatpush3.bf16.msra.mxu0 %v7971_v31  ;;  %v7975_v15 = vld [vmem:[%s10339_s7 + $0x10] sm:$0xff]  }
 0x490   : > { %v3720_v27 = vadd.f32 %v3719_v22, %v3712_v4  ;;  %7471 = vmatpush3.bf16.msra.mxu1 %v7973_v30  ;;  %7436 = vmatprep.subr.bf16.mxu0 %v8128_v1  ;;  %v7976_v4 = vld [vmem:[%s10339_s7 + $0x58] sm:$0xff]  }
 0x491   : > { %7472 = vmatprep.subr.bf16.mxu1 %v8128_v1  ;;  %v7977_v22 = vld [vmem:[%s10339_s7 + $0x18] sm:$0xff]  }
 0x492   : > { %v3721_v24 = vadd.f32 %v3720_v27, %v3713_v5  ;;  %v7978_v5 = vld [vmem:[%s10339_s7 + $0x60] sm:$0xff]  }
 0x493   : > { %7437 = vmatpush3.bf16.msra.mxu0 %v7974_v14  ;;  %v7979_v27 = vld [vmem:[%s10339_s7 + $0x20] sm:$0xff]  }
 0x494   : > { %v3722_v19 = vadd.f32 %v3721_v24, %v3714_v29  ;;  %7473 = vmatpush3.bf16.msra.mxu1 %v7975_v15  ;;  %7438 = vmatprep.subr.bf16.mxu0 %v8128_v1  ;;  %v7980_v29 = vld [vmem:[%s10339_s7 + $0x68] sm:$0xff]  }
 0x495   : > { %7474 = vmatprep.subr.bf16.mxu1 %v8128_v1  ;;  %v7981_v24 = vld [vmem:[%s10339_s7 + $0x28] sm:$0xff]  }
 0x496   : > { %v3723_v12 = vadd.f32 %v3722_v19, %v3715_v0  ;;  %v7982_v0 = vld [vmem:[%s10339_s7 + $0x30] sm:$0xff]  }
 0x497   : > { %7439 = vmatpush3.bf16.msra.mxu0 %v7976_v4  ;;  %v7983_v19 = vld [vmem:[%s10339_s7 + $0x70] sm:$0xff]  }
 0x498   : > { %v3724_v55 = vadd.f32 %v3723_v12, %v3716_v34  ;;  %7475 = vmatpush3.bf16.msra.mxu1 %v7977_v22  ;;  %7440 = vmatprep.subr.bf16.mxu0 %v8128_v1  ;;  %v7984_v34 = vld [vmem:[%s10339_s7 + $0x38] sm:$0xff]  }
 0x499   : > { %7476 = vmatprep.subr.bf16.mxu1 %v8128_v1  ;;  %v7985_v12 = vld [vmem:[%s10339_s7 + $0x78] sm:$0xff]  }
 0x49a   : > { %v3725_v36 = vrot.slane %v3724_v55, 4 }
 0x49b   : > { %7441 = vmatpush3.bf16.msra.mxu0 %v7978_v5 }
 0x49c   : > { %v3726_v40 = vadd.f32 %v3725_v36, %v3724_v55  ;;  %7477 = vmatpush3.bf16.msra.mxu1 %v7979_v27  ;;  %7442 = vmatprep.subr.bf16.mxu0 %v8128_v1 }
 0x49d   : > { %7478 = vmatprep.subr.bf16.mxu1 %v8128_v1 }
 0x49e   : > { %v3727_v49 = vrot.slane %v3726_v40, 2 }
 0x49f   : > { %7443 = vmatpush3.bf16.msra.mxu0 %v7980_v29 }
 0x4a0   : > { %v3728_v11 = vadd.f32 %v3727_v49, %v3726_v40  ;;  %7479 = vmatpush3.bf16.msra.mxu1 %v7981_v24  ;;  %7444 = vmatprep.subr.bf16.mxu0 %v8128_v1  ;;  %v3637_v49 = vld [vmem:[%s10337_s5] sm:$0x1] }
 0x4a1   : > { %7480 = vmatprep.subr.bf16.mxu1 %v8128_v1 }
 0x4a2   : > { %v3729_v10 = vrot.slane %v3728_v11, 1 }
 0x4a3   : > { %7445 = vmatpush3.bf16.msra.mxu0 %v7983_v19 }
 0x4a4   : > { %v3730_v28 = vadd.f32 %v3729_v10, %v3728_v11  ;;  %7481 = vmatpush3.bf16.msra.mxu1 %v7982_v0  ;;  %7446 = vmatprep.subr.bf16.mxu0 %v8128_v1 }
 0x4a5   : > { %7482 = vmatprep.subr.bf16.mxu1 %v8128_v1 }
 0x4a6   : > { %v3731_v43 = vsel %vm3665_vm13, %v3730_v28, 0.0 }
 0x4a7   : > { %3732 = vadd.xlane.f32.xlu1 %v3731_v43  ;;  %7447 = vmatpush3.bf16.msra.mxu0 %v7985_v12 }
 0x4a8   : > { %7483 = vmatpush3.bf16.msra.mxu1 %v7984_v34  ;;  %7504 = vmatprep.subr.bf16.mxu0 %v8128_v1 }
 0x4a9   : > { %7540 = vmatprep.subr.bf16.mxu1 %v8128_v1 }
 0x4b8   : > { %3753 = vrot.lane.b32.xlu1 %v3730_v28, %s8131_s19  ;;  %v3780_v28 = vsub.s32 0, %v8721_v7 }
 0x534   : > { %v3733_v47 = vpop.xlane.xlu1 %3732 }
 0x535   : > { %v3734_v37 = vrot.slane %v3733_v47, 4 }
 0x537   : > { %v3735_v9 = vadd.f32 %v3734_v37, %v3733_v47 }
 0x538   : > { %v3754_v32 = vpop.permute.xlu1 %3753 }
 0x539   : > { %v3736_v41 = vrot.slane %v3735_v9, 2  ;;  %v3756_v57 = vsel %vm3665_vm13, %v3754_v32, 0.0 }
 0x53a   : > { %3757 = vadd.xlane.f32.xlu1 %v3756_v57 }
 0x53b   : > { %v3737_v52 = vadd.f32 %v3736_v41, %v3735_v9  ;;  %v6255_v9 = vld [vmem:[%s10338_s6] ss:$0 sm:$0xff] }
 0x53d   : > { %v3738_v56 = vrot.slane %v3737_v52, 1 }
 0x53f   : > { %v3739_v58 = vadd.f32 %v3738_v56, %v3737_v52 }
 0x541   : > { %7782 = vpush %v3739_v58 }
 0x572   : > { %s7783_s26 = spop %7782 }
 0x573   : > { %s3743_s27 = ssub.f32 %s7783_s26, %s3742_s25 }
 0x575   : > { %s3744_s28 = smul.f32 0.00390625, %s3743_s27 }
 0x577   : > { %s3745_s30 = smax.f32 %s8132_s29, %s3744_s28 }
 0x578   : > { %s3746_s12 = sadd.f32 1e-05, %s3745_s30  ;;  %s3767_s30 = smul.f32 %s3766_s22, %s9549_s23 }
 0x57a   : > { %v3747_v3 = vstv %s3746_s12 }
 0x57b   : > { %8076 = vrsqrt.f32 %v3747_v3 }
 0x585   : > { %v8077_v18 = vpop.eup %8076 }
 0x586   : > { %7784 = vpush %v8077_v18 }
 0x5b7   : > { %s7785_s28 = spop %7784 }
 0x5b8   : > { %v3750_v40 = vstv %s7785_s28 }
 0x5b9   : > { %v3751_v11 = vsel %vm3663_vm4, %v3750_v40, 0.0 }
 0x5c7   : > { %v3758_v33 = vpop.xlane.xlu1 %3757 }
 0x5c8   : > { %v3759_v16 = vrot.slane %v3758_v33, 4 }
 0x5ca   : > { %v3760_v53 = vadd.f32 %v3759_v16, %v3758_v33 }
 0x5cc   : > { %v3761_v50 = vrot.slane %v3760_v53, 2 }
 0x5ce   : > { %v3762_v6 = vadd.f32 %v3761_v50, %v3760_v53 }
 0x5d0   : > { %v3763_v54 = vrot.slane %v3762_v6, 1 }
 0x5d2   : > { %v3764_v45 = vadd.f32 %v3763_v54, %v3762_v6 }
 0x5d4   : > { %7786 = vpush %v3764_v45 }
 0x605   : > { %s7787_s12 = spop %7786 }
 0x606   : > { %s3768_s13 = ssub.f32 %s7787_s12, %s3767_s30 }
 0x608   : > { %s3769_s21 = smul.f32 0.00390625, %s3768_s13 }
 0x60a   : > { %s3770_s24 = smax.f32 %s8132_s29, %s3769_s21 }
 0x60b   : > { %s3771_s27 = sadd.f32 1e-05, %s3770_s24 }
 0x60d   : > { %v3772_v55 = vstv %s3771_s27 }
 0x60e   : > { %8078 = vrsqrt.f32 %v3772_v55 }
 0x618   : > { %v8079_v36 = vpop.eup %8078 }
 0x619   : > { %7788 = vpush %v8079_v36 }
 0x64a   : > { %s7789_s13 = spop %7788 }
 0x64b   : > { %v3775_v10 = vstv %s7789_s13 }
 0x64c   : > { %v3776_v43 = vsel %vm9545_vm1, %v3775_v10, %v3751_v11 }
 0x64d   : > { %v3777_v47 = vmul.f32 %v3776_v43, %v3637_v49 }
 0x64f   : > { %v3781_v37 = vrot.slane %v3777_v47, %v3780_v28 }
 0x651   : > { %v3782_v32 = vmul.f32 %v3781_v37, %v9557_v20  ;;  %v3783_v41 = vmul.f32 %v3781_v37, %v9560_v8  ;;  %v3784_v57 = vmul.f32 %v3781_v37, %v9563_v2  ;;  %v3785_v52 = vmul.f32 %v3781_v37, %v9566_v51 }
 0x652   : > { %v3786_v56 = vmul.f32 %v3781_v37, %v9573_v63  ;;  %v3787_v58 = vmul.f32 %v3781_v37, %v9578_v60  ;;  %v3788_v3 = vmul.f32 %v3781_v37, %v9583_v61  ;;  %v3789_v18 = vmul.f32 %v3781_v37, %v9588_v39 }
 0x653   : > { %v3790_v33 = vmul.f32 %v3781_v37, %v9593_v48  ;;  %v3797_v16 = vadd.f32 %v6255_v9, %v3782_v32  ;;  %v3798_v53 = vadd.f32 %v6255_v9, %v3783_v41  ;;  %v3799_v50 = vadd.f32 %v6255_v9, %v3784_v57 }
 0x654   : > { %v9696_v20 = vadd.f32 %v6255_v9, %v3785_v52  ;;  %v9698_v8 = vadd.f32 %v6255_v9, %v3786_v56  ;;  %v9700_v2 = vadd.f32 %v6255_v9, %v3787_v58  ;;  %v9705_v54 = vadd.f32 %v6255_v9, %v3788_v3  ;;  %v3924_v58 = vld [vmem:[#allocation3] sm:$0x8]  ;;  %v9718_v3 = vld [vmem:[#allocation3 + $0x4] sm:$0xf] }
 0x655   : > { %v9702_v51 = vadd.f32 %v6255_v9, %v3790_v33  ;;  %v6256_v63 = vmul.f32 -1.442695, %v3797_v16  ;;  %v6257_v6 = vmul.f32 -1.442695, %v3798_v53  ;;  %v6258_v60 = vmul.f32 -1.442695, %v3799_v50 }
 0x656   : > { %v6259_v61 = vmul.f32 -1.442695, %v9696_v20  ;;  %v6260_v39 = vmul.f32 -1.442695, %v9698_v8  ;;  %v9708_v48 = vadd.f32 %v6255_v9, %v3789_v18  ;;  %v6261_v45 = vmul.f32 -1.442695, %v9700_v2 }
 0x657   : > { %8080 = vpow2.f32 %v6256_v63  ;;  %v6264_v44 = vmul.f32 -1.442695, %v9702_v51  ;;  %v6262_v26 = vmul.f32 -1.442695, %v9705_v54 }
 0x658   : > { %8082 = vpow2.f32 %v6257_v6  ;;  %v6263_v31 = vmul.f32 -1.442695, %v9708_v48 }
 0x659   : > { %8084 = vpow2.f32 %v6258_v60 }
 0x65a   : > { %8086 = vpow2.f32 %v6259_v61 }
 0x65b   : > { %8088 = vpow2.f32 %v6260_v39  ;;  %v6290_v39 = vcombine.low %v3924_v58, %v9718_v3 }
 0x65c   : > { %8090 = vpow2.f32 %v6261_v45 }
 0x65d   : > { %8092 = vpow2.f32 %v6264_v44 }
 0x65e   : > { %8094 = vpow2.f32 %v6262_v26 }
 0x65f   : > { %8096 = vpow2.f32 %v6263_v31 }
 0x661   : > { %v8081_v30 = vpop.eup %8080 }
 0x662   : > { %v8083_v14 = vpop.eup %8082  ;;  %v3833_v15 = vadd.f32 1.0, %v8081_v30 }
 0x663   : > { %v8085_v4 = vpop.eup %8084  ;;  %v3834_v22 = vadd.f32 1.0, %v8083_v14 }
 0x664   : > { %v8087_v5 = vpop.eup %8086  ;;  %v3835_v27 = vadd.f32 1.0, %v8085_v4  ;;  %8098 = vrcp.f32 %v3833_v15 }
 0x665   : > { %v8089_v29 = vpop.eup %8088  ;;  %v3836_v24 = vadd.f32 1.0, %v8087_v5  ;;  %8100 = vrcp.f32 %v3834_v22  ;;  %v3994_v22 = vshrl.u32 %v6290_v39, 16  ;;  %v3997_v5 = vshll.u32 %v6290_v39, 16 }
 0x666   : > { %v8091_v0 = vpop.eup %8090  ;;  %v3837_v19 = vadd.f32 1.0, %v8089_v29  ;;  %8102 = vrcp.f32 %v3835_v27 }
 0x667   : > { %v8093_v34 = vpop.eup %8092  ;;  %v3838_v12 = vadd.f32 1.0, %v8091_v0  ;;  %8104 = vrcp.f32 %v3836_v24  ;;  %v4165_v24 = vrot.slane %v6290_v39, 3  ;;  %v3996_v0 = vrot.slane %v3994_v22, 3  ;;  %v7996_v22 = vld [vmem:[%s10339_s7 + $0x98] sm:$0xff]  }
 0x668   : > { %v8095_v55 = vpop.eup %8094  ;;  %v3841_v36 = vadd.f32 1.0, %v8093_v34  ;;  %8106 = vrcp.f32 %v3837_v19  ;;  %v3999_v19 = vrot.slane %v3997_v5, 4 }
 0x669   : > { %v8097_v40 = vpop.eup %8096  ;;  %8108 = vrcp.f32 %v3838_v12  ;;  %v3839_v49 = vadd.f32 1.0, %v8095_v55 }
 0x66a   : > { %8110 = vrcp.f32 %v3841_v36  ;;  %v3840_v11 = vadd.f32 1.0, %v8097_v40 }
 0x66b   : > { %8112 = vrcp.f32 %v3839_v49 }
 0x66c   : > { %8114 = vrcp.f32 %v3840_v11  ;;  %v7991_v11 = vld [vmem:[%s10339_s7 + $0xc0] sm:$0xff]  }
 0x66e   : > { %v8099_v10 = vpop.eup %8098 }
 0x66f   : > { %v8101_v43 = vpop.eup %8100  ;;  %v3860_v47 = vmul.f32 %v8099_v10, %v3797_v16 }
 0x670   : > { %v8103_v37 = vpop.eup %8102  ;;  %v3861_v9 = vmul.f32 %v8101_v43, %v3798_v53  ;;  %v4000_v43 = vor.u32 %v3999_v19, %v3996_v0  ;;  %v7999_v19 = vld [vmem:[%s10339_s7 + $0xa0] sm:$0xff]  }
 0x671   : > { %v8105_v32 = vpop.eup %8104  ;;  %v3869_v41 = vsel %vm8820_vm12, %v3860_v47, 0.0  ;;  %v3862_v57 = vmul.f32 %v8103_v37, %v3799_v50 }
 0x672   : > { %v8107_v52 = vpop.eup %8106  ;;  %v3870_v56 = vsel %vm8832_vm15, %v3861_v9, 0.0  ;;  %v3863_v18 = vmul.f32 %v8105_v32, %v9696_v20 }
 0x673   : > { %v8109_v33 = vpop.eup %8108  ;;  %v6574_v63 = vpack.c.bf16 %v3870_v56, %v3869_v41  ;;  %v3871_v16 = vsel %vm8891_vm6, %v3862_v57, 0.0  ;;  %v3864_v53 = vmul.f32 %v8107_v52, %v9698_v8  ;;  %v7988_v56 = vld [vmem:[%s10339_s7 + $0x80] sm:$0xff]  }
 0x674   : > { %v8111_v6 = vpop.eup %8110  ;;  %v3872_v50 = vsel %vm8909_vm7, %v3863_v18, 0.0  ;;  %v3865_v60 = vmul.f32 %v8109_v33, %v9700_v2  ;;  %v7992_v18 = vld [vmem:[%s10339_s7 + $0xc8] sm:$0xff]  }
 0x675   : > { %v8113_v61 = vpop.eup %8112  ;;  %6615 = vst [vmem:[#allocation3 + $0x8] sm:$0xff] %v6574_v63   ;;  %v6579_v45 = vpack.c.bf16 %v3872_v50, %v3871_v16  ;;  %v3873_v20 = vsel %vm8918_vm8, %v3864_v53, 0.0  ;;  %v3868_v44 = vmul.f32 %v8111_v6, %v9702_v51  ;;  %v7990_v6 = vld [vmem:[%s10339_s7 + $0x88] sm:$0xff]   ;;  %v7995_v50 = vld [vmem:[%s10339_s7 + $0xd0] sm:$0xff]  }
 0x676   : > { %v8115_v26 = vpop.eup %8114  ;;  %v3874_v8 = vsel %vm8922_vm9, %v3865_v60, 0.0  ;;  %v3866_v31 = vmul.f32 %v8113_v61, %v9705_v54 }
 0x677   : > { %6616 = vst [vmem:[#allocation3 + $0x10] sm:$0xff] %v6579_v45   ;;  %v6584_v30 = vpack.c.bf16 %v3874_v8, %v3873_v20  ;;  %v3867_v2 = vmul.f32 %v8115_v26, %v9708_v48  ;;  %v3877_v14 = vsel %vm9066_vm11, %v3868_v44, 0.0  ;;  %v7993_v26 = vld [vmem:[%s10339_s7 + $0x90] sm:$0xff]  }
 0x678   : > { %v3875_v15 = vsel %vm9013_vm14, %v3866_v31, 0.0  ;;  %v6541_v4 = vpack.c.bf16 %v3877_v14, %v3877_v14 }
 0x679   : > { %6617 = vst [vmem:[#allocation3 + $0x18] sm:$0xff] %v6584_v30   ;;  %v3876_v51 = vsel %vm9019_vm2, %v3867_v2, 0.0  ;;  %v7997_v30 = vld [vmem:[%s10339_s7 + $0xd8] sm:$0xff]  }
 0x67a   : > { %v6589_v27 = vpack.c.bf16 %v3876_v51, %v3875_v15  ;;  %3923 = vst [vmem:[#allocation3 + $0x28] sm:$0xf] %v6541_v4  ;;  %v8000_v51 = vld [vmem:[%s10339_s7 + $0xe0] sm:$0xff]  }
 0x67c   : > { %v9741_v54 = vld [vmem:[#allocation3 + $0x8] sm:$0xf]  ;;  %v9743_v29 = vld [vmem:[#allocation3 + $0xc] sm:$0xf]  ;;  %6618 = vst [vmem:[#allocation3 + $0x20] sm:$0xff] %v6589_v27  }
 0x67d   : > { %v6291_v48 = vcombine.low %v9741_v54, %v9743_v29 }
 0x67e   : > { %v9747_v34 = vld [vmem:[#allocation3 + $0x10] sm:$0xf]  ;;  %v9749_v12 = vld [vmem:[#allocation3 + $0x14] sm:$0xf] }
 0x67f   : > { %v4166_v55 = vrot.slane %v6291_v48, 3  ;;  %v4002_v36 = vshrl.u32 %v6291_v48, 16  ;;  %v4005_v40 = vshll.u32 %v6291_v48, 16  ;;  %v6292_v49 = vcombine.low %v9747_v34, %v9749_v12 }
 0x680   : > { %v9757_v41 = vld [vmem:[#allocation3 + $0x18] sm:$0xf]  ;;  %v9759_v57 = vld [vmem:[#allocation3 + $0x1c] sm:$0xf] }
 0x681   : > { %v4167_v10 = vsel %vm744_vm3, %v4165_v24, %v4166_v55  ;;  %v4004_v47 = vrot.slane %v4002_v36, 3  ;;  %v4007_v37 = vrot.slane %v4005_v40, 4  ;;  %v4011_v9 = vshrl.u32 %v6292_v49, 16  ;;  %v4455_v36 = vld [vmem:[#allocation3 + $0x4] sm:$0x8] }
 0x682   : > { %7485 = vmatmul.mubr.bf16.vlgmr.msra.gmra.mrb[188].mxu1 %v4167_v10  ;;  %v4014_v32 = vshll.u32 %v6292_v49, 16  ;;  %v4168_v58 = vrot.slane %v6292_v49, 3  ;;  %v9773_v53 = vcombine.low %v9757_v41, %v9759_v57 }
 0x683   : > { %v4008_v52 = vor.u32 %v4007_v37, %v4004_v47  ;;  %7488 = vmatprep.mubr.msk.bf16.mxu1 %vm8129_vm0, %v8128_v1  ;;  %7541 = vmatpush3.bf16.msra.mxu1 %v7991_v11  ;;  %v4013_v63 = vrot.slane %v4011_v9, 3  ;;  %v9788_v20 = vld [vmem:[#allocation3 + $0x20] sm:$0xf]  ;;  %v9790_v44 = vld [vmem:[#allocation3 + $0x24] sm:$0xf]  ;;  %v8002_v9 = vld [vmem:[%s10339_s7 + $0xa8] sm:$0xff]  }
 0x684   : > { %7542 = vmatprep.subr.bf16.mxu1 %v8128_v1  ;;  %v4016_v16 = vrot.slane %v4014_v32, 4  ;;  %v4169_v60 = vsel %vm744_vm3, %v4166_v55, %v4168_v58  ;;  %v4020_v39 = vshrl.u32 %v9773_v53, 16  ;;  %v4023_v45 = vshll.u32 %v9773_v53, 16  ;;  %v3933_v8 = vld [vmem:[#allocation3 + $0x24] sm:$0x7]  ;;  %v8003_v55 = vld [vmem:[%s10339_s7 + $0xe8] sm:$0xff]  }
 0x685   : > { %v4009_v33 = vsel %vm10385_vm5, %v4000_v43, %v4008_v52  ;;  %v4170_v31 = vrot.slane %v9773_v53, 3  ;;  %v6294_v4 = vcombine.low %v9788_v20, %v9790_v44  ;;  %v6303_v5 = vcombine.low %v9788_v20, %v3933_v8  ;;  %v9829_v43 = vld [vmem:[#allocation3 + $0x8] sm:$0xf]  ;;  %v9831_v47 = vld [vmem:[#allocation3 + $0xc] sm:$0xf]  ;;  %v8004_v32 = vld [vmem:[%s10339_s7 + $0xf0] sm:$0xff]  }
 0x686   : > { %7449 = vmatmul.mubr.bf16.vlgmr.msra.gmra.mrb[172].mxu0 %v4009_v33  ;;  %v4017_v61 = vor.u32 %v4016_v16, %v4013_v63  ;;  %v4022_v14 = vrot.slane %v4020_v39, 3  ;;  %v4025_v15 = vrot.slane %v4023_v45, 4  ;;  %v9833_v37 = vld [vmem:[#allocation3 + $0x10] sm:$0xf]  ;;  %v8005_v33 = vld [vmem:[%s10339_s7 + $0xb0] sm:$0xff]   ;;  %v8006_v63 = vld [vmem:[%s10339_s7 + $0xf8] sm:$0xff]  }
 0x687   : > { %7505 = vmatpush3.bf16.msra.mxu0 %v7988_v56  ;;  %7452 = vmatprep.mubr.msk.bf16.mxu0 %vm8129_vm0, %v8128_v1  ;;  %v4171_v27 = vsel %vm744_vm3, %v4168_v58, %v4170_v31  ;;  %v4029_v24 = vshrl.u32 %v6294_v4, 16  ;;  %v4032_v0 = vshll.u32 %v6294_v4, 16  ;;  %v4172_v49 = vrot.slane %v6303_v5, 3  ;;  %v9862_v39 = vld [vmem:[#allocation3 + $0x18] sm:$0xf]  ;;  %v8007_v45 = vld [vmem:[%s10339_s7 + $0xb8] sm:$0xff]  }
 0x688   : > { %7506 = vmatprep.subr.bf16.mxu0 %v8128_v1  ;;  %7543 = vmatpush3.bf16.msra.mxu1 %v7992_v18  ;;  %v4018_v2 = vsel %vm10386_vm10, %v4008_v52, %v4017_v61  ;;  %v4026_v48 = vor.u32 %v4025_v15, %v4022_v14  ;;  %v6357_v52 = vcombine.low %v4455_v36, %v9829_v43  ;;  %v9876_v5 = vld [vmem:[#allocation3 + $0x1c] sm:$0xf] }
 0x689   : > { %7544 = vmatprep.subr.bf16.mxu1 %v8128_v1  ;;  %v4031_v11 = vrot.slane %v4029_v24, 3  ;;  %v4034_v10 = vrot.slane %v4032_v0, 4  ;;  %v4173_v56 = vsel %vm744_vm3, %v4170_v31, %v4172_v49  ;;  %v6358_v18 = vcombine.low %v9831_v47, %v9833_v37  ;;  %vm10387_vm3 = vmmov %vm10385_vm5 }
 0x68a   : > { %7489 = vmatmul.mubr.bf16.gmra.mrb[192].mxu1 %v4169_v60  ;;  %v4027_v40 = vsel %vm10385_vm5, %v4017_v61, %v4026_v48  ;;  %v4508_v16 = vshrl.u32 %v6357_v52, 16  ;;  %v9860_v61 = vld [vmem:[#allocation3 + $0x14] sm:$0xf]  ;;  %vm10388_vm10 = vmmov %vm10387_vm3  ;;  %v6328_v36 = vcombine.low %v9718_v3, %v9741_v54  ;;  %v8018_v3 = vld [vmem:[%s10339_s7 + $0x150] sm:$0xff]  }
 0x68b   : > { %7507 = vmatpush3.bf16.msra.mxu0 %v7990_v6  ;;  %7492 = vmatprep.mubr.msk.bf16.mxu1 %vm8129_vm0, %v8128_v1  ;;  %v4035_v58 = vor.u32 %v4034_v10, %v4031_v11  ;;  %v4511_v6 = vshll.u32 %v6357_v52, 16  ;;  %v4519_v60 = vshll.u32 %v6358_v18, 16  ;;  %v8013_v52 = vld [vmem:[%s10339_s7 + $0x108] sm:$0xff]   ;;  %vm10389_vm5 = vmmov %vm10387_vm3 }
 0x68c   : > { %7508 = vmatprep.subr.bf16.mxu0 %v8128_v1  ;;  %7545 = vmatpush3.bf16.msra.mxu1 %v7995_v50  ;;  %v4516_v50 = vshrl.u32 %v6358_v18, 16 }
 0x68d   : > { %7546 = vmatprep.subr.bf16.mxu1 %v8128_v1  ;;  %v4036_v53 = vsel %vm10387_vm3, %v4026_v48, %v4035_v58  ;;  %v4513_v8 = vrot.slane %v4511_v6, 4 }
 0x68e   : > { %7453 = vmatmul.mubr.bf16.gmra.mrb[176].mxu0 %v4018_v2  ;;  %v4518_v31 = vrot.slane %v4516_v50, 3  ;;  %v6359_v2 = vcombine.low %v9860_v61, %v9862_v39 }
 0x68f   : > { %7509 = vmatpush3.bf16.msra.mxu0 %v7993_v26  ;;  %7456 = vmatprep.mubr.msk.bf16.mxu0 %vm8129_vm0, %v8128_v1  ;;  %v4510_v26 = vrot.slane %v4508_v16, 3  ;;  %v8020_v16 = vld [vmem:[%s10339_s7 + $0x158] sm:$0xff]  }
 0x690   : > { %7510 = vmatprep.subr.bf16.mxu0 %v8128_v1  ;;  %7547 = vmatpush3.bf16.msra.mxu1 %v7997_v30  ;;  %v4521_v30 = vrot.slane %v4519_v60, 4  ;;  %v4525_v4 = vshrl.u32 %v6359_v2, 16 }
 0x691   : > { %7548 = vmatprep.subr.bf16.mxu1 %v8128_v1  ;;  %v4514_v14 = vor.u32 %v4513_v8, %v4510_v26  ;;  %v8022_v8 = vld [vmem:[%s10339_s7 + $0x120] sm:$0xff]  }
 0x692   : > { %7493 = vmatmul.mubr.bf16.gmra.mrb[196].mxu1 %v4171_v27  ;;  %v4522_v15 = vor.u32 %v4521_v30, %v4518_v31  ;;  %v8014_v27 = vld [vmem:[%s10339_s7 + $0x140] sm:$0xff]   ;;  %v4527_v24 = vrot.slane %v4525_v4, 3  ;;  %v6330_v31 = vcombine.low %v9749_v12, %v9757_v41  ;;  %v8025_v30 = vld [vmem:[%s10339_s7 + $0x168] sm:$0xff]   ;;  %v8026_v41 = vld [vmem:[%s10339_s7 + $0x170] sm:$0xff]  }
 0x693   : > { %7511 = vmatpush3.bf16.msra.mxu0 %v7996_v22  ;;  %7496 = vmatprep.mubr.msk.bf16.mxu1 %vm8129_vm0, %v8128_v1  ;;  %v4528_v22 = vshll.u32 %v6359_v2, 16  ;;  %v8024_v12 = vld [vmem:[%s10339_s7 + $0x128] sm:$0xff]  }
 0x694   : > { %7512 = vmatprep.subr.bf16.mxu0 %v8128_v1  ;;  %7549 = vmatpush3.bf16.msra.mxu1 %v8000_v51  ;;  %v9878_v51 = vld [vmem:[#allocation3 + $0x20] sm:$0xf]  ;;  %v4523_v48 = vsel %vm10388_vm10, %v4514_v14, %v4522_v15  ;;  %v4841_v14 = vld [vmem:[#allocation3 + $0x8] sm:$0xf]  ;;  %vm10390_vm10 = vmmov %vm10387_vm3 }
 0x695   : > { %7550 = vmatprep.subr.bf16.mxu1 %v8128_v1  ;;  %v4530_v0 = vrot.slane %v4528_v22, 4 }
 0x696   : > { %7457 = vmatmul.mubr.bf16.gmra.mrb[180].mxu0 %v4027_v40  ;;  %v8015_v40 = vld [vmem:[%s10339_s7 + $0x148] sm:$0xff]  }
 0x697   : > { %7513 = vmatpush3.bf16.msra.mxu0 %v7999_v19  ;;  %7460 = vmatprep.mubr.msk.bf16.mxu0 %vm8129_vm0, %v8128_v1  ;;  %v6360_v19 = vcombine.low %v9876_v5, %v9878_v51 }
 0x698   : > { %7514 = vmatprep.subr.bf16.mxu0 %v8128_v1  ;;  %7551 = vmatpush3.bf16.msra.mxu1 %v8003_v55  ;;  %v8011_v55 = vld [vmem:[%s10339_s7 + $0x100] sm:$0xff]  }
 0x699   : > { %7552 = vmatprep.subr.bf16.mxu1 %v8128_v1  ;;  %v4534_v11 = vshrl.u32 %v6360_v19, 16  ;;  %v4537_v10 = vshll.u32 %v6360_v19, 16  ;;  %v9978_v19 = vld [vmem:[#allocation3 + $0x14] sm:$0xf] }
 0x69a   : > { %7497 = vmatmul.mubr.bf16.gmra.mrb[200].mxu1 %v4173_v56 }
 0x69b   : > { %7515 = vmatpush3.bf16.msra.mxu0 %v8002_v9  ;;  %7500 = vmatprep.mubr.msk.bf16.mxu1 %vm8129_vm0, %v8128_v1  ;;  %v9899_v9 = vld [vmem:[#allocation3 + $0x24] sm:$0xf]  ;;  %v4536_v56 = vrot.slane %v4534_v11, 3  ;;  %v6332_v11 = vcombine.low %v9790_v44, %v9790_v44 }
 0x69c   : > { %7516 = vmatprep.subr.bf16.mxu0 %v8128_v1  ;;  %7553 = vmatpush3.bf16.msra.mxu1 %v8004_v32  ;;  %v9901_v32 = vld [vmem:[#allocation3 + $0x28] sm:$0xf] }
 0x69d   : > { %7554 = vmatprep.subr.bf16.mxu1 %v8128_v1  ;;  %v6361_v18 = vcombine.low %v9899_v9, %v9901_v32 }
 0x69e   : > { %7461 = vmatmul.mubr.bf16.gmra.mrb[184].mxu0 %v4036_v53 }
 0x69f   : > { %7517 = vmatpush3.bf16.msra.mxu0 %v8005_v33  ;;  %7464 = vmatprep.mubr.msk.bf16.mxu0 %vm8129_vm0, %v8128_v1  ;;  %v8016_v33 = vld [vmem:[%s10339_s7 + $0x110] sm:$0xff]   ;;  %v4543_v6 = vshrl.u32 %v6361_v18, 16  ;;  %v4546_v50 = vshll.u32 %v6361_v18, 16  ;;  %v8034_v18 = vld [vmem:[%s10339_s7 + $0x180] sm:$0xff]  }
 0x6a0   : > { %7555 = vmatpush3.bf16.msra.mxu1 %v8006_v63  ;;  %7518 = vmatprep.subr.bf16.mxu0 %v8128_v1  ;;  %v6329_v63 = vcombine.low %v9743_v29, %v9747_v34  ;;  %v8019_v29 = vld [vmem:[%s10339_s7 + $0x118] sm:$0xff]   ;;  %v8023_v34 = vld [vmem:[%s10339_s7 + $0x160] sm:$0xff]  }
 0x6a1   : > { %7612 = vmatprep.subr.bf16.mxu1 %v8128_v1  ;;  %v4548_v26 = vrot.slane %v4546_v50, 4  ;;  %v10020_v50 = vld [vmem:[#allocation3 + $0x24] sm:$0xf] }
 0x6a2   : > { %7501 = vmatmul.mubr.bf16.gmra.mrb[204].mxu1 %v4172_v49  ;;  %v4531_v49 = vor.u32 %v4530_v0, %v4527_v24  ;;  %v8029_v24 = vld [vmem:[%s10339_s7 + $0x178] sm:$0xff]   ;;  %v9976_v0 = vld [vmem:[#allocation3 + $0x10] sm:$0xf] }
 0x6a3   : > { %7519 = vmatpush3.bf16.msra.mxu0 %v8007_v45  ;;  %7556 = vmatprep.mubr.msk.bf16.mxu1 %vm8129_vm0, %v8128_v1  ;;  %v4545_v45 = vrot.slane %v4543_v6, 3  ;;  %v10018_v6 = vld [vmem:[#allocation3 + $0x20] sm:$0xf] }
 0x6a4   : > { %7576 = vmatprep.subr.bf16.mxu0 %v8128_v1  ;;  %v4532_v54 = vsel %vm10389_vm5, %v4522_v15, %v4531_v49  ;;  %v9951_v15 = vld [vmem:[#allocation3 + $0xc] sm:$0xf]  ;;  %vm10391_vm5 = vsmask.f32 7424 }
 0x6a5   : > { %v4549_v2 = vor.u32 %v4548_v26, %v4545_v45  ;;  %v6415_v22 = vcombine.low %v4841_v14, %v9951_v15  ;;  %v8040_v26 = vld [vmem:[%s10339_s7 + $0x190] sm:$0xff]   ;;  %v10046_v14 = vld [vmem:[#allocation3 + $0x28] sm:$0xf] }
 0x6a6   : > { %7465 = vmatmul.mubr.bf16.gmra.mrb[188].mxu0 %v4035_v58  ;;  %v4539_v58 = vrot.slane %v4537_v10, 4  ;;  %v9995_v10 = vld [vmem:[#allocation3 + $0x18] sm:$0xf] }
 0x6a7   : > { %7520 = vmatprep.mubr.msk.bf16.mxu0 %vm8129_vm0, %v8128_v1 }
 0x6a8   : > { %v4540_v53 = vor.u32 %v4539_v58, %v4536_v56  ;;  %v8037_v58 = vld [vmem:[%s10339_s7 + $0x1c0] sm:$0xff]  }
 0x6aa   : > { %7557 = vmatmul.mubr.bf16.vlgmr.msra.gmra.mrb[208].mxu1 %v4523_v48  ;;  %v4541_v60 = vsel %vm10387_vm3, %v4531_v49, %v4540_v53  ;;  %v4550_v4 = vsel %vm10390_vm10, %v4540_v53, %v4549_v2  ;;  %v6331_v48 = vcombine.low %v9759_v57, %v9788_v20  ;;  %v8030_v57 = vld [vmem:[%s10339_s7 + $0x138] sm:$0xff]   ;;  %v6416_v20 = vcombine.low %v9976_v0, %v9978_v19  ;;  %v8039_v53 = vld [vmem:[%s10339_s7 + $0x1c8] sm:$0xff]   ;;  %vm10392_vm3 = vmmov %vm10391_vm5 }
 0x6ab   : > { %7560 = vmatprep.mubr.msk.bf16.mxu1 %vm8129_vm0, %v8128_v1  ;;  %7613 = vmatpush3.bf16.msra.mxu1 %v8014_v27  ;;  %v8027_v27 = vld [vmem:[%s10339_s7 + $0x130] sm:$0xff]   ;;  %vm10393_vm10 = vmmov %vm10392_vm3 }
 0x6ac   : > { %7614 = vmatprep.subr.bf16.mxu1 %v8128_v1  ;;  %v4901_v49 = vshll.u32 %v6416_v20, 16 }
 0x6ae   : > { %7521 = vmatmul.mubr.bf16.vlgmr.msra.gmra.mrb[192].mxu0 %v6328_v36 }
 0x6af   : > { %7577 = vmatpush3.bf16.msra.mxu0 %v8011_v55  ;;  %7524 = vmatprep.mubr.msk.bf16.mxu0 %vm8129_vm0, %v8128_v1  ;;  %v4896_v55 = vshll.u32 %v6415_v22, 16 }
 0x6b0   : > { %7578 = vmatprep.subr.bf16.mxu0 %v8128_v1  ;;  %7615 = vmatpush3.bf16.msra.mxu1 %v8015_v40  ;;  %v4894_v40 = vshrl.u32 %v6415_v22, 16  ;;  %v8048_v22 = vld [vmem:[%s10339_s7 + $0x1e0] sm:$0xff]  }
 0x6b1   : > { %7616 = vmatprep.subr.bf16.mxu1 %v8128_v1  ;;  %v4898_v36 = vrot.slane %v4896_v55, 1  ;;  %v8047_v55 = vld [vmem:[%s10339_s7 + $0x1a0] sm:$0xff]  }
 0x6b2   : > { %7561 = vmatmul.mubr.bf16.gmra.mrb[212].mxu1 %v4532_v54  ;;  %v4903_v54 = vrot.slane %v4901_v49, 1  ;;  %v10073_v49 = vld [vmem:[#allocation3 + $0x10] sm:$0xf] }
 0x6b3   : > { %7579 = vmatpush3.bf16.msra.mxu0 %v8013_v52  ;;  %7564 = vmatprep.mubr.msk.bf16.mxu1 %vm8129_vm0, %v8128_v1  ;;  %v9997_v52 = vld [vmem:[#allocation3 + $0x1c] sm:$0xf] }
 0x6b4   : > { %7580 = vmatprep.subr.bf16.mxu0 %v8128_v1  ;;  %7617 = vmatpush3.bf16.msra.mxu1 %v8018_v3  ;;  %v4899_v3 = vor.u32 %v4898_v36, %v4894_v40  ;;  %v6417_v56 = vcombine.low %v9995_v10, %v9997_v52  ;;  %v5225_v40 = vld [vmem:[#allocation3 + $0xc] sm:$0xf] }
 0x6b5   : > { %7618 = vmatprep.subr.bf16.mxu1 %v8128_v1 }
 0x6b6   : > { %7525 = vmatmul.mubr.bf16.gmra.mrb[196].mxu0 %v6329_v63  ;;  %v4904_v44 = vsel %vm10391_vm5, %v4899_v3, %v4903_v54  ;;  %v4909_v63 = vshll.u32 %v6417_v56, 16  ;;  %vm10394_vm5 = vmmov %vm10392_vm3 }
 0x6b7   : > { %7581 = vmatpush3.bf16.msra.mxu0 %v8016_v33  ;;  %7528 = vmatprep.mubr.msk.bf16.mxu0 %vm8129_vm0, %v8128_v1  ;;  %v4905_v33 = vshrl.u32 %v6416_v20, 16  ;;  %v8051_v20 = vld [vmem:[%s10339_s7 + $0x1e8] sm:$0xff]  }
 0x6b8   : > { %7582 = vmatprep.subr.bf16.mxu0 %v8128_v1  ;;  %7619 = vmatpush3.bf16.msra.mxu1 %v8020_v16  ;;  %v6386_v16 = vcombine.low %v9829_v43, %v9831_v47  ;;  %v6418_v43 = vcombine.low %v10018_v6, %v10020_v50  ;;  %v8042_v47 = vld [vmem:[%s10339_s7 + $0x1d0] sm:$0xff]  }
 0x6b9   : > { %7620 = vmatprep.subr.bf16.mxu1 %v8128_v1 }
 0x6ba   : > { %7565 = vmatmul.mubr.bf16.gmra.mrb[216].mxu1 %v4541_v60  ;;  %v8036_v60 = vld [vmem:[%s10339_s7 + $0x188] sm:$0xff]  }
 0x6bb   : > { %7583 = vmatpush3.bf16.msra.mxu0 %v8019_v29  ;;  %7568 = vmatprep.mubr.msk.bf16.mxu1 %vm8129_vm0, %v8128_v1  ;;  %v4907_v29 = vor.u32 %v4905_v33, %v4903_v54  ;;  %v6473_v54 = vcombine.low %v5225_v40, %v10073_v49 }
 0x6bc   : > { %7584 = vmatprep.subr.bf16.mxu0 %v8128_v1  ;;  %7621 = vmatpush3.bf16.msra.mxu1 %v8023_v34  ;;  %v4911_v34 = vrot.slane %v4909_v63, 1 }
 0x6bd   : > { %7622 = vmatprep.subr.bf16.mxu1 %v8128_v1 }
 0x6be   : > { %7529 = vmatmul.mubr.bf16.gmra.mrb[200].mxu0 %v6330_v31  ;;  %v4912_v45 = vsel %vm10392_vm3, %v4907_v29, %v4911_v34  ;;  %v4917_v31 = vshll.u32 %v6418_v43, 16 }
 0x6bf   : > { %7585 = vmatpush3.bf16.msra.mxu0 %v8022_v8  ;;  %7532 = vmatprep.mubr.msk.bf16.mxu0 %vm8129_vm0, %v8128_v1  ;;  %v4913_v8 = vshrl.u32 %v6417_v56, 16  ;;  %v8053_v56 = vld [vmem:[%s10339_s7 + $0x1b0] sm:$0xff]  }
 0x6c0   : > { %7586 = vmatprep.subr.bf16.mxu0 %v8128_v1  ;;  %7623 = vmatpush3.bf16.msra.mxu1 %v8025_v30  ;;  %v6387_v30 = vcombine.low %v9833_v37, %v9860_v61  ;;  %v8043_v37 = vld [vmem:[%s10339_s7 + $0x198] sm:$0xff]  }
 0x6c1   : > { %7624 = vmatprep.subr.bf16.mxu1 %v8128_v1 }
 0x6c2   : > { %7569 = vmatmul.mubr.bf16.gmra.mrb[220].mxu1 %v4550_v4  ;;  %v4919_v4 = vrot.slane %v4917_v31, 1  ;;  %v6444_v31 = vcombine.low %v9951_v15, %v9976_v0  ;;  %v8064_v0 = vld [vmem:[%s10339_s7 + $0x210] sm:$0xff]  }
 0x6c3   : > { %7587 = vmatpush3.bf16.msra.mxu0 %v8024_v12  ;;  %7572 = vmatprep.mubr.msk.bf16.mxu1 %vm8129_vm0, %v8128_v1  ;;  %v4850_v12 = vld [vmem:[#allocation3 + $0x2c] sm:$0x1] }
 0x6c4   : > { %7588 = vmatprep.subr.bf16.mxu0 %v8128_v1  ;;  %7625 = vmatpush3.bf16.msra.mxu1 %v8026_v41  ;;  %v4915_v41 = vor.u32 %v4913_v8, %v4911_v34  ;;  %v6419_v61 = vcombine.low %v10046_v14, %v4850_v12  ;;  %v6390_v34 = vcombine.low %v9901_v32, %v9901_v32  ;;  %v8062_v12 = vld [vmem:[%s10339_s7 + $0x208] sm:$0xff]  }
 0x6c5   : > { %7626 = vmatprep.subr.bf16.mxu1 %v8128_v1 }
 0x6c6   : > { %7533 = vmatmul.mubr.bf16.gmra.mrb[204].mxu0 %v6331_v48  ;;  %v4921_v48 = vshrl.u32 %v6418_v43, 16  ;;  %v4929_v33 = vshrl.u32 %v6419_v61, 16 }
 0x6c7   : > { %7589 = vmatpush3.bf16.msra.mxu0 %v8027_v27  ;;  %7536 = vmatprep.mubr.msk.bf16.mxu0 %vm8129_vm0, %v8128_v1  ;;  %v4920_v27 = vsel %vm10393_vm10, %v4915_v41, %v4919_v4  ;;  %v10132_v41 = vld [vmem:[#allocation3 + $0x24] sm:$0xff]   ;;  %vm10395_vm10 = vmmov %vm10392_vm3 }
 0x6c8   : > { %7627 = vmatpush3.bf16.msra.mxu1 %v8029_v24  ;;  %7590 = vmatprep.subr.bf16.mxu0 %v8128_v1  ;;  %v4925_v24 = vshll.u32 %v6419_v61, 16  ;;  %v4923_v36 = vor.u32 %v4921_v48, %v4919_v4  ;;  %v6445_v61 = vcombine.low %v9978_v19, %v9995_v10  ;;  %v8066_v48 = vld [vmem:[%s10339_s7 + $0x218] sm:$0xff]   ;;  %v5305_v19 = vshrl.u32 %v10132_v41, 16  ;;  %v8069_v10 = vld [vmem:[%s10339_s7 + $0x220] sm:$0xff]  }
 0x6c9   : > { %7684 = vmatprep.subr.bf16.mxu1 %v8128_v1 }
 0x6ca   : > { %7573 = vmatmul.mubr.bf16.gmra.mrb[224].mxu1 %v4549_v2  ;;  %v8045_v2 = vld [vmem:[%s10339_s7 + $0x1d8] sm:$0xff]  }
 0x6cb   : > { %7591 = vmatpush3.bf16.msra.mxu0 %v8030_v57  ;;  %7628 = vmatprep.mubr.msk.bf16.mxu1 %vm8129_vm0, %v8128_v1  ;;  %v6388_v57 = vcombine.low %v9862_v39, %v9876_v5  ;;  %v8050_v39 = vld [vmem:[%s10339_s7 + $0x1a8] sm:$0xff]   ;;  %v8052_v5 = vld [vmem:[%s10339_s7 + $0x1f0] sm:$0xff]  }
 0x6cc   : > { %7648 = vmatprep.subr.bf16.mxu0 %v8128_v1 }
 0x6ce   : > { %7537 = vmatmul.mubr.bf16.gmra.mrb[208].mxu0 %v6332_v11  ;;  %v4927_v11 = vrot.slane %v4925_v24, 1  ;;  %v8068_v24 = vld [vmem:[#allocation3 + $0x2c] sm:$0x1f]  }
 0x6cf   : > { %7592 = vmatprep.mubr.msk.bf16.mxu0 %vm8129_vm0, %v8128_v1 }
 0x6d0   : > { %v4928_v3 = vsel %vm10394_vm5, %v4923_v36, %v4927_v11  ;;  %v4931_v63 = vor.u32 %v4929_v33, %v4927_v11  ;;  %vm10396_vm5 = vmmov %vm10392_vm3  ;;  %v8071_v11 = vld [vmem:[%s10339_s7 + $0x228] sm:$0xff]  }
 0x6d2   : > { %7629 = vmatmul.mubr.bf16.vlgmr.msra.gmra.mrb[228].mxu1 %v4904_v44  ;;  %v8055_v44 = vld [vmem:[%s10339_s7 + $0x1f8] sm:$0xff]  }
 0x6d3   : > { %7632 = vmatprep.mubr.msk.bf16.mxu1 %vm8129_vm0, %v8128_v1  ;;  %7685 = vmatpush3.bf16.msra.mxu1 %v8037_v58  ;;  %v6389_v58 = vcombine.low %v9878_v51, %v9899_v9  ;;  %v8056_v51 = vld [vmem:[%s10339_s7 + $0x1b8] sm:$0xff]   ;;  %v10104_v9 = vld [vmem:[#allocation3 + $0x14] sm:$0xff]  }
 0x6d4   : > { %7686 = vmatprep.subr.bf16.mxu1 %v8128_v1  ;;  %v5285_v29 = vshll.u32 %v10104_v9, 16  ;;  %v5289_v32 = vshrl.u32 %v10104_v9, 16 }
 0x6d6   : > { %7593 = vmatmul.mubr.bf16.vlgmr.msra.gmra.mrb[212].mxu0 %v6386_v16  ;;  %v5287_v43 = vrot.slane %v5285_v29, 1 }
 0x6d7   : > { %7649 = vmatpush3.bf16.msra.mxu0 %v8034_v18  ;;  %7596 = vmatprep.mubr.msk.bf16.mxu0 %vm8129_vm0, %v8128_v1  ;;  %v5280_v18 = vshll.u32 %v6473_v54, 16 }
 0x6d8   : > { %7650 = vmatprep.subr.bf16.mxu0 %v8128_v1  ;;  %7687 = vmatpush3.bf16.msra.mxu1 %v8039_v53  ;;  %v5278_v53 = vshrl.u32 %v6473_v54, 16  ;;  %v8074_v54 = vld [vmem:[%s10339_s7 + $0x238] sm:$0xff]  }
 0x6d9   : > { %7688 = vmatprep.subr.bf16.mxu1 %v8128_v1  ;;  %v5282_v16 = vrot.slane %v5280_v18, 1 }
 0x6da   : > { %7633 = vmatmul.mubr.bf16.gmra.mrb[232].mxu1 %v4912_v45 }
 0x6db   : > { %7651 = vmatpush3.bf16.msra.mxu0 %v8036_v60  ;;  %7636 = vmatprep.mubr.msk.bf16.mxu1 %vm8129_vm0, %v8128_v1  ;;  %v5283_v60 = vor.u32 %v5282_v16, %v5278_v53 }
 0x6dc   : > { %7652 = vmatprep.subr.bf16.mxu0 %v8128_v1  ;;  %7689 = vmatpush3.bf16.msra.mxu1 %v8042_v47  ;;  %v10115_v47 = vld [vmem:[#allocation3 + $0x1c] sm:$0xff]  }
 0x6dd   : > { %7690 = vmatprep.subr.bf16.mxu1 %v8128_v1  ;;  %v5288_v45 = vsel %vm10392_vm3, %v5283_v60, %v5287_v43  ;;  %v5293_v8 = vshll.u32 %v10115_v47, 16  ;;  %v5297_v15 = vshrl.u32 %v10115_v47, 16  ;;  %v5474_v33 = vrot.slane %v10115_v47, 1 }
 0x6de   : > { %7597 = vmatmul.mubr.bf16.gmra.mrb[216].mxu0 %v6387_v30  ;;  %v5291_v30 = vor.u32 %v5289_v32, %v5287_v43 }
 0x6df   : > { %7653 = vmatpush3.bf16.msra.mxu0 %v8040_v26  ;;  %7600 = vmatprep.mubr.msk.bf16.mxu0 %vm8129_vm0, %v8128_v1  ;;  %v8060_v26 = vld [vmem:[%s10339_s7 + $0x200] sm:$0xff]  }
 0x6e0   : > { %7654 = vmatprep.subr.bf16.mxu0 %v8128_v1  ;;  %7691 = vmatpush3.bf16.msra.mxu1 %v8045_v2  ;;  %v5295_v2 = vrot.slane %v5293_v8, 1 }
 0x6e1   : > { %7692 = vmatprep.subr.bf16.mxu1 %v8128_v1 }
 0x6e2   : > { %7637 = vmatmul.mubr.bf16.gmra.mrb[236].mxu1 %v4920_v27  ;;  %v5296_v4 = vsel %vm10395_vm10, %v5291_v30, %v5295_v2  ;;  %vm10397_vm10 = vcmask 1046528  }
 0x6e3   : > { %7655 = vmatpush3.bf16.msra.mxu0 %v8043_v37  ;;  %7640 = vmatprep.mubr.msk.bf16.mxu1 %vm8129_vm0, %v8128_v1  ;;  %v5301_v37 = vshll.u32 %v10132_v41, 16 }
 0x6e4   : > { %7656 = vmatprep.subr.bf16.mxu0 %v8128_v1  ;;  %7693 = vmatpush3.bf16.msra.mxu1 %v8048_v22  ;;  %v5299_v22 = vor.u32 %v5297_v15, %v5295_v2 }
 0x6e5   : > { %7694 = vmatprep.subr.bf16.mxu1 %v8128_v1  ;;  %v5303_v27 = vrot.slane %v5301_v37, 1 }
 0x6e6   : > { %7601 = vmatmul.mubr.bf16.gmra.mrb[220].mxu0 %v6388_v57  ;;  %v5309_v57 = vshll.u32 %v8068_v24, 16 }
 0x6e7   : > { %7657 = vmatpush3.bf16.msra.mxu0 %v8047_v55  ;;  %7604 = vmatprep.mubr.msk.bf16.mxu0 %vm8129_vm0, %v8128_v1  ;;  %v5304_v55 = vsel %vm10396_vm5, %v5299_v22, %v5303_v27  ;;  %v5307_v36 = vor.u32 %v5305_v19, %v5303_v27  ;;  %vm10398_vm5 = vmmov %vm10397_vm10 }
 0x6e8   : > { %7658 = vmatprep.subr.bf16.mxu0 %v8128_v1  ;;  %7695 = vmatpush3.bf16.msra.mxu1 %v8051_v20  ;;  %v6446_v20 = vcombine.low %v9997_v52, %v10018_v6  ;;  %v5311_v40 = vrot.slane %v5309_v57, 1  ;;  %v8072_v52 = vld [vmem:[%s10339_s7 + $0x230] sm:$0xff]   ;;  %v6447_v6 = vcombine.low %v10020_v50, %v10046_v14 }
 0x6e9   : > { %7696 = vmatprep.subr.bf16.mxu1 %v8128_v1 }
 0x6ea   : > { %7641 = vmatmul.mubr.bf16.gmra.mrb[240].mxu1 %v4928_v3 }
 0x6eb   : > { %7659 = vmatpush3.bf16.msra.mxu0 %v8050_v39  ;;  %7644 = vmatprep.mubr.msk.bf16.mxu1 %vm8129_vm0, %v8128_v1  ;;  %v5312_v39 = vsel %vm10392_vm3, %v5307_v36, %v5311_v40  ;;  %vm10399_vm3 = vmmov %vm10398_vm5 }
 0x6ec   : > { %7660 = vmatprep.subr.bf16.mxu0 %v8128_v1  ;;  %7697 = vmatpush3.bf16.msra.mxu1 %v8052_v5  ;;  %v5313_v5 = vshrl.u32 %v8068_v24, 16 }
 0x6ed   : > { %7698 = vmatprep.subr.bf16.mxu1 %v8128_v1 }
 0x6ee   : > { %7605 = vmatmul.mubr.bf16.gmra.mrb[224].mxu0 %v6389_v58  ;;  %v5315_v3 = vor.u32 %v5313_v5, %v5311_v40  ;;  %v5450_v58 = vld [vmem:[#allocation3 + $0xc] sm:$0xe] }
 0x6ef   : > { %7661 = vmatpush3.bf16.msra.mxu0 %v8053_v56  ;;  %7608 = vmatprep.mubr.msk.bf16.mxu0 %vm8129_vm0, %v8128_v1  ;;  %v8073_v56 = vld [vmem:[#allocation3 + $0x2c] ss:$0 sps:$4 sm:$0xff]   ;;  %v6502_v50 = vcombine.low %v5450_v58, %v10073_v49  ;;  %v5476_v49 = vrot.slane %v10132_v41, 1 }
 0x6f0   : > { %7699 = vmatpush3.bf16.msra.mxu1 %v8055_v44  ;;  %7662 = vmatprep.subr.bf16.mxu0 %v8128_v1  ;;  %v5472_v44 = vrot.slane %v10104_v9, 1  ;;  %v5478_v9 = vrot.slane %v8068_v24, 1 }
 0x6f1   : > { %v5471_v14 = vrot.slane %v6502_v50, 1 }
 0x6f2   : > { %7645 = vmatmul.mubr.bf16.gmra.mrb[244].mxu1 %v4931_v63  ;;  %v5477_v63 = vsel %vm10399_vm3, %v5474_v33, %v5476_v49 }
 0x6f3   : > { %7663 = vmatpush3.bf16.msra.mxu0 %v8056_v51  ;;  %7700 = vmatprep.mubr.msk.bf16.mxu1 %vm8129_vm0, %v8128_v1  ;;  %v5473_v18 = vsel %vm10397_vm10, %v5471_v14, %v5472_v44  ;;  %v5475_v51 = vsel %vm10398_vm5, %v5472_v44, %v5474_v33  ;;  %vm10400_vm10 = vmmov %vm10399_vm3 }
 0x6f4   : > { %7720 = vmatprep.subr.bf16.mxu0 %v8128_v1  ;;  %v5479_v16 = vsel %vm10400_vm10, %v5476_v49, %v5478_v9 }
 0x6f6   : > { %7609 = vmatmul.mubr.bf16.gmra.mrb[228].mxu0 %v6390_v34 }
 0x6f7   : > { %7664 = vmatprep.mubr.msk.bf16.mxu0 %vm8129_vm0, %v8128_v1 }
 0x6fa   : > { %7701 = vmatmul.mubr.bf16.vlgmr.msra.gmra.mrb[248].mxu1 %v5288_v45 }
 0x6fb   : > { %7704 = vmatprep.mubr.msk.bf16.mxu1 %vm8129_vm0, %v8128_v1 }
 0x6fe   : > { %7665 = vmatmul.mubr.bf16.vlgmr.msra.gmra.mrb[232].mxu0 %v6444_v31 }
 0x6ff   : > { %7721 = vmatpush3.bf16.msra.mxu0 %v8060_v26  ;;  %7668 = vmatprep.mubr.msk.bf16.mxu0 %vm8129_vm0, %v8128_v1 }
 0x700   : > { %7722 = vmatprep.subr.bf16.mxu0 %v8128_v1 }
 0x702   : > { %7705 = vmatmul.mubr.bf16.gmra.mrb[252].mxu1 %v5296_v4 }
 0x703   : > { %7723 = vmatpush3.bf16.msra.mxu0 %v8062_v12  ;;  %7708 = vmatprep.mubr.msk.bf16.mxu1 %vm8129_vm0, %v8128_v1 }
 0x704   : > { %7724 = vmatprep.subr.bf16.mxu0 %v8128_v1 }
 0x706   : > { %7669 = vmatmul.mubr.bf16.gmra.mrb[236].mxu0 %v6445_v61 }
 0x707   : > { %7725 = vmatpush3.bf16.msra.mxu0 %v8064_v0  ;;  %7672 = vmatprep.mubr.msk.bf16.mxu0 %vm8129_vm0, %v8128_v1 }
 0x708   : > { %7726 = vmatprep.subr.bf16.mxu0 %v8128_v1 }
 0x70a   : > { %7709 = vmatmul.mubr.bf16.gmra.mrb[0].mxu1 %v5304_v55 }
 0x70b   : > { %7727 = vmatpush3.bf16.msra.mxu0 %v8066_v48  ;;  %7712 = vmatprep.mubr.msk.bf16.mxu1 %vm8129_vm0, %v8128_v1 }
 0x70c   : > { %7728 = vmatprep.subr.bf16.mxu0 %v8128_v1 }
 0x70e   : > { %7673 = vmatmul.mubr.bf16.gmra.mrb[240].mxu0 %v6446_v20 }
 0x70f   : > { %7729 = vmatpush3.bf16.msra.mxu0 %v8069_v10  ;;  %7676 = vmatprep.mubr.msk.bf16.mxu0 %vm8129_vm0, %v8128_v1 }
 0x710   : > { %7730 = vmatprep.subr.bf16.mxu0 %v8128_v1 }
 0x712   : > { %7713 = vmatmul.mubr.bf16.gmra.mrb[4].mxu1 %v5312_v39 }
 0x713   : > { %7731 = vmatpush3.bf16.msra.mxu0 %v8071_v11  ;;  %7716 = vmatprep.mubr.msk.bf16.mxu1 %vm8129_vm0, %v8128_v1 }
 0x714   : > { %7732 = vmatprep.subr.bf16.mxu0 %v8128_v1 }
 0x716   : > { %7677 = vmatmul.mubr.bf16.gmra.mrb[244].mxu0 %v6447_v6 }
 0x717   : > { %7733 = vmatpush3.bf16.msra.mxu0 %v8072_v52  ;;  %7680 = vmatprep.mubr.msk.bf16.mxu0 %vm8129_vm0, %v8128_v1 }
 0x718   : > { %7734 = vmatprep.subr.bf16.mxu0 %v8128_v1 }
 0x71a   : > { %7717 = vmatmul.mubr.bf16.gmra.mrb[8].mxu1 %v5315_v3 }
 0x71b   : > { %7735 = vmatpush3.bf16.msra.mxu0 %v8074_v54 }
 0x71e   : > { %7681 = vmatmul.mubr.bf16.gmra.mrb[248].mxu0 %v8073_v56 }
 0x71f   : > { %7736 = vmatprep.mubr.msk.bf16.mxu0 %vm8129_vm0, %v8128_v1 }
 0x726   : > { %7737 = vmatmul.mubr.bf16.vlgmr.msra.gmra.mrb[252].mxu0 %v5473_v18 }
 0x727   : > { %7740 = vmatprep.mubr.msk.bf16.mxu0 %vm8129_vm0, %v8128_v1 }
 0x72e   : > { %7741 = vmatmul.mubr.bf16.gmra.mrb[0].mxu0 %v5475_v51 }
 0x72f   : > { %7744 = vmatprep.mubr.msk.bf16.mxu0 %vm8129_vm0, %v8128_v1 }
 0x736   : > { %7745 = vmatmul.mubr.bf16.gmra.mrb[4].mxu0 %v5477_v63 }
 0x737   : > { %7748 = vmatprep.mubr.msk.bf16.mxu0 %vm8129_vm0, %v8128_v1 }
 0x73e   : > { %7749 = vmatmul.mubr.bf16.gmra.mrb[8].mxu0 %v5479_v16 }
 0x73f   : > { %7752 = vmatprep.mubr.msk.bf16.mxu0 %vm8129_vm0, %v8128_v1 }
 0x746   : > { %7753 = vmatmul.mubr.bf16.gmra.mrb[12].mxu0 %v5478_v9 }
 0x755   : > { %v4261_v53 = vpop.f32.mrb[188].mxu1 }
 0x756   : > { %v7486_v29 = vpop.f32.mrb[189].mxu1 }
 0x757   : > { %v4264_v34 = vpop.f32.mrb[190].mxu1 }
 0x758   : > { %v7487_v60 = vpop.f32.mrb[191].mxu1 }
 0x759   : > { %v4124_v43 = vpop.f32.mrb[172].mxu0 }
 0x75a   : > { %v4262_v47 = vadd.f32 %v4261_v53, %v4124_v43  ;;  %v7450_v45 = vpop.f32.mrb[173].mxu0 }
 0x75b   : > { %v4127_v26 = vpop.f32.mrb[174].mxu0 }
 0x75c   : > { %v4265_v32 = vadd.f32 %v4264_v34, %v4127_v26  ;;  %v7451_v8 = vpop.f32.mrb[175].mxu0 }
 0x75d   : > { %v4269_v31 = vpop.f32.mrb[192].mxu1 }
 0x75e   : > { %v7490_v30 = vpop.f32.mrb[193].mxu1 }
 0x75f   : > { %v4272_v2 = vpop.f32.mrb[194].mxu1 }
 0x760   : > { %v7491_v12 = vpop.f32.mrb[195].mxu1 }
 0x761   : > { %v4132_v41 = vpop.f32.mrb[176].mxu0 }
 0x762   : > { %v4270_v4 = vadd.f32 %v4269_v31, %v4132_v41  ;;  %v7454_v15 = vpop.f32.mrb[177].mxu0 }
 0x763   : > { %v4135_v0 = vpop.f32.mrb[178].mxu0 }
 0x764   : > { %v4273_v1 = vadd.f32 %v4272_v2, %v4135_v0  ;;  %v7455_v37 = vpop.f32.mrb[179].mxu0 }
 0x765   : > { %v4277_v61 = vpop.f32.mrb[196].mxu1 }
 0x766   : > { %v7494_v22 = vpop.f32.mrb[197].mxu1 }
 0x767   : > { %v4280_v27 = vpop.f32.mrb[198].mxu1 }
 0x768   : > { %v7495_v48 = vpop.f32.mrb[199].mxu1 }
 0x769   : > { %v4140_v24 = vpop.f32.mrb[180].mxu0 }
 0x76a   : > { %v4278_v55 = vadd.f32 %v4277_v61, %v4140_v24  ;;  %v7458_v57 = vpop.f32.mrb[181].mxu0 }
 0x76b   : > { %v4143_v19 = vpop.f32.mrb[182].mxu0 }
 0x76c   : > { %v4281_v10 = vadd.f32 %v4280_v27, %v4143_v19  ;;  %v7459_v20 = vpop.f32.mrb[183].mxu0 }
 0x76d   : > { %v4285_v36 = vpop.f32.mrb[200].mxu1 }
 0x76e   : > { %v7498_v40 = vpop.f32.mrb[201].mxu1 }
 0x76f   : > { %v4288_v11 = vpop.f32.mrb[202].mxu1 }
 0x770   : > { %v7499_v39 = vpop.f32.mrb[203].mxu1 }
 0x771   : > { %v4148_v5 = vpop.f32.mrb[184].mxu0 }
 0x772   : > { %v4286_v52 = vadd.f32 %v4285_v36, %v4148_v5  ;;  %v7462_v6 = vpop.f32.mrb[185].mxu0 }
 0x773   : > { %v4151_v3 = vpop.f32.mrb[186].mxu0 }
 0x774   : > { %v4289_v54 = vadd.f32 %v4288_v11, %v4151_v3  ;;  %v7463_v56 = vpop.f32.mrb[187].mxu0 }
 0x775   : > { %v4293_v58 = vpop.f32.mrb[204].mxu1 }
 0x776   : > { %v7502_v50 = vpop.f32.mrb[205].mxu1 }
 0x777   : > { %v4296_v14 = vpop.f32.mrb[206].mxu1 }
 0x778   : > { %v7503_v44 = vpop.f32.mrb[207].mxu1 }
 0x779   : > { %v4156_v18 = vpop.f32.mrb[188].mxu0 }
 0x77a   : > { %v4294_v33 = vadd.f32 %v4293_v58, %v4156_v18  ;;  %v7466_v51 = vpop.f32.mrb[189].mxu0 }
 0x77b   : > { %v4159_v49 = vpop.f32.mrb[190].mxu0 }
 0x77c   : > { %v7467_v63 = vpop.f32.mrb[191].mxu0 }
 0x77d   : > { %v4638_v9 = vpop.f32.mrb[208].mxu1 }
 0x77e   : > { %v7558_v16 = vpop.f32.mrb[209].mxu1 }
 0x77f   : > { %v4641_v53 = vpop.f32.mrb[210].mxu1 }
 0x780   : > { %v7559_v29 = vpop.f32.mrb[211].mxu1 }
 0x781   : > { %v4408_v34 = vpop.f32.mrb[192].mxu0 }
 0x782   : > { %v4446_v60 = vadd.f32 %v4408_v34, %v4262_v47  ;;  %v7522_v43 = vpop.f32.mrb[193].mxu0 }
 0x783   : > { %v4411_v45 = vpop.f32.mrb[194].mxu0 }
 0x784   : > { %v4447_v26 = vadd.f32 %v4411_v45, %v4265_v32  ;;  %v7523_v8 = vpop.f32.mrb[195].mxu0  ;;  %v4676_v31 = vadd.f32 %v4638_v9, %v4446_v60 }
 0x785   : > { %v4646_v30 = vpop.f32.mrb[212].mxu1 }
 0x786   : > { %v7562_v2 = vpop.f32.mrb[213].mxu1  ;;  %v4677_v12 = vadd.f32 %v4641_v53, %v4447_v26 }
 0x787   : > { %v4649_v41 = vpop.f32.mrb[214].mxu1 }
 0x788   : > { %v7563_v15 = vpop.f32.mrb[215].mxu1 }
 0x789   : > { %v4416_v0 = vpop.f32.mrb[196].mxu0 }
 0x78a   : > { %v4448_v37 = vadd.f32 %v4416_v0, %v4270_v4  ;;  %v7526_v61 = vpop.f32.mrb[197].mxu0 }
 0x78b   : > { %v4419_v22 = vpop.f32.mrb[198].mxu0 }
 0x78c   : > { %v4449_v27 = vadd.f32 %v4419_v22, %v4273_v1  ;;  %v7527_v48 = vpop.f32.mrb[199].mxu0  ;;  %v4678_v24 = vadd.f32 %v4646_v30, %v4448_v37 }
 0x78d   : > { %v4654_v57 = vpop.f32.mrb[216].mxu1 }
 0x78e   : > { %v7566_v19 = vpop.f32.mrb[217].mxu1  ;;  %v4679_v47 = vadd.f32 %v4649_v41, %v4449_v27 }
 0x78f   : > { %v4657_v20 = vpop.f32.mrb[218].mxu1 }
 0x790   : > { %v7567_v36 = vpop.f32.mrb[219].mxu1 }
 0x791   : > { %v4424_v32 = vpop.f32.mrb[200].mxu0 }
 0x792   : > { %v4450_v40 = vadd.f32 %v4424_v32, %v4278_v55  ;;  %v7530_v11 = vpop.f32.mrb[201].mxu0 }
 0x793   : > { %v4427_v39 = vpop.f32.mrb[202].mxu0 }
 0x794   : > { %v4451_v5 = vadd.f32 %v4427_v39, %v4281_v10  ;;  %v7531_v6 = vpop.f32.mrb[203].mxu0  ;;  %v4680_v3 = vadd.f32 %v4654_v57, %v4450_v40 }
 0x795   : > { %v4662_v56 = vpop.f32.mrb[220].mxu1 }
 0x796   : > { %v7570_v58 = vpop.f32.mrb[221].mxu1  ;;  %v4681_v4 = vadd.f32 %v4657_v20, %v4451_v5 }
 0x797   : > { %v4665_v50 = vpop.f32.mrb[222].mxu1 }
 0x798   : > { %v7571_v14 = vpop.f32.mrb[223].mxu1 }
 0x799   : > { %v4432_v1 = vpop.f32.mrb[204].mxu0 }
 0x79a   : > { %v4452_v44 = vadd.f32 %v4432_v1, %v4286_v52  ;;  %v7534_v18 = vpop.f32.mrb[205].mxu0 }
 0x79b   : > { %v4435_v51 = vpop.f32.mrb[206].mxu0 }
 0x79c   : > { %v4453_v49 = vadd.f32 %v4435_v51, %v4289_v54  ;;  %v7535_v63 = vpop.f32.mrb[207].mxu0  ;;  %v4682_v9 = vadd.f32 %v4662_v56, %v4452_v44 }
 0x79d   : > { %v4670_v16 = vpop.f32.mrb[224].mxu1 }
 0x79e   : > { %v7574_v53 = vpop.f32.mrb[225].mxu1  ;;  %v4683_v55 = vadd.f32 %v4665_v50, %v4453_v49 }
 0x79f   : > { %v4673_v29 = vpop.f32.mrb[226].mxu1 }
 0x7a0   : > { %v7575_v34 = vpop.f32.mrb[227].mxu1 }
 0x7a1   : > { %v4440_v10 = vpop.f32.mrb[208].mxu0 }
 0x7a2   : > { %v4454_v60 = vadd.f32 %v4440_v10, %v4294_v33  ;;  %v7538_v43 = vpop.f32.mrb[209].mxu0 }
 0x7a3   : > { %v4443_v45 = vpop.f32.mrb[210].mxu0 }
 0x7a4   : > { %v7539_v26 = vpop.f32.mrb[211].mxu0  ;;  %v4684_v8 = vadd.f32 %v4670_v16, %v4454_v60 }
 0x7a5   : > { %v5019_v30 = vpop.f32.mrb[228].mxu1 }
 0x7a6   : > { %v7630_v2 = vpop.f32.mrb[229].mxu1 }
 0x7a7   : > { %v5022_v41 = vpop.f32.mrb[230].mxu1 }
 0x7a8   : > { %v7631_v52 = vpop.f32.mrb[231].mxu1 }
 0x7a9   : > { %v4794_v15 = vpop.f32.mrb[212].mxu0 }
 0x7aa   : > { %v4832_v0 = vadd.f32 %v4794_v15, %v4676_v31  ;;  %v7594_v54 = vpop.f32.mrb[213].mxu0 }
 0x7ab   : > { %v4797_v37 = vpop.f32.mrb[214].mxu0 }
 0x7ac   : > { %v4833_v61 = vadd.f32 %v4797_v37, %v4677_v12  ;;  %v7595_v22 = vpop.f32.mrb[215].mxu0  ;;  %v5057_v27 = vadd.f32 %v5019_v30, %v4832_v0 }
 0x7ad   : > { %v5027_v48 = vpop.f32.mrb[232].mxu1 }
 0x7ae   : > { %v7634_v57 = vpop.f32.mrb[233].mxu1  ;;  %v5058_v19 = vadd.f32 %v5022_v41, %v4833_v61 }
 0x7af   : > { %v5030_v20 = vpop.f32.mrb[234].mxu1 }
 0x7b0   : > { %v7635_v33 = vpop.f32.mrb[235].mxu1 }
 0x7b1   : > { %v4802_v36 = vpop.f32.mrb[216].mxu0 }
 0x7b2   : > { %v4834_v32 = vadd.f32 %v4802_v36, %v4678_v24  ;;  %v7598_v40 = vpop.f32.mrb[217].mxu0 }
 0x7b3   : > { %v4805_v11 = vpop.f32.mrb[218].mxu0 }
 0x7b4   : > { %v4835_v39 = vadd.f32 %v4805_v11, %v4679_v47  ;;  %v7599_v5 = vpop.f32.mrb[219].mxu0  ;;  %v5059_v6 = vadd.f32 %v5027_v48, %v4834_v32 }
 0x7b5   : > { %v5035_v56 = vpop.f32.mrb[236].mxu1 }
 0x7b6   : > { %v7638_v58 = vpop.f32.mrb[237].mxu1  ;;  %v5060_v31 = vadd.f32 %v5030_v20, %v4835_v39 }
 0x7b7   : > { %v5038_v50 = vpop.f32.mrb[238].mxu1 }
 0x7b8   : > { %v7639_v14 = vpop.f32.mrb[239].mxu1 }
 0x7b9   : > { %v4810_v12 = vpop.f32.mrb[220].mxu0 }
 0x7ba   : > { %v4836_v1 = vadd.f32 %v4810_v12, %v4680_v3  ;;  %v7602_v44 = vpop.f32.mrb[221].mxu0 }
 0x7bb   : > { %v4813_v18 = vpop.f32.mrb[222].mxu0 }
 0x7bc   : > { %v4837_v51 = vadd.f32 %v4813_v18, %v4681_v4  ;;  %v7603_v49 = vpop.f32.mrb[223].mxu0  ;;  %v5061_v63 = vadd.f32 %v5035_v56, %v4836_v1 }
 0x7bd   : > { %v5043_v16 = vpop.f32.mrb[240].mxu1 }
 0x7be   : > { %v7642_v53 = vpop.f32.mrb[241].mxu1  ;;  %v5062_v24 = vadd.f32 %v5038_v50, %v4837_v51 }
 0x7bf   : > { %v5046_v29 = vpop.f32.mrb[242].mxu1 }
 0x7c0   : > { %v7643_v34 = vpop.f32.mrb[243].mxu1 }
 0x7c1   : > { %v4818_v47 = vpop.f32.mrb[224].mxu0 }
 0x7c2   : > { %v4838_v10 = vadd.f32 %v4818_v47, %v4682_v9  ;;  %v7606_v60 = vpop.f32.mrb[225].mxu0 }
 0x7c3   : > { %v4821_v43 = vpop.f32.mrb[226].mxu0 }
 0x7c4   : > { %v4839_v45 = vadd.f32 %v4821_v43, %v4683_v55  ;;  %v7607_v26 = vpop.f32.mrb[227].mxu0  ;;  %v5063_v30 = vadd.f32 %v5043_v16, %v4838_v10 }
 0x7c5   : > { %v5051_v2 = vpop.f32.mrb[244].mxu1 }
 0x7c6   : > { %v7646_v41 = vpop.f32.mrb[245].mxu1  ;;  %v5064_v3 = vadd.f32 %v5046_v29, %v4839_v45 }
 0x7c7   : > { %v5054_v52 = vpop.f32.mrb[246].mxu1 }
 0x7c8   : > { %v7647_v15 = vpop.f32.mrb[247].mxu1 }
 0x7c9   : > { %v4826_v4 = vpop.f32.mrb[228].mxu0 }
 0x7ca   : > { %v4840_v0 = vadd.f32 %v4826_v4, %v4684_v8  ;;  %v7610_v54 = vpop.f32.mrb[229].mxu0 }
 0x7cb   : > { %v4829_v37 = vpop.f32.mrb[230].mxu0 }
 0x7cc   : > { %v7611_v61 = vpop.f32.mrb[231].mxu0  ;;  %v5065_v22 = vadd.f32 %v5051_v2, %v4840_v0 }
 0x7cd   : > { %v5403_v48 = vpop.f32.mrb[248].mxu1 }
 0x7ce   : > { %v7702_v57 = vpop.f32.mrb[249].mxu1 }
 0x7cf   : > { %v5406_v20 = vpop.f32.mrb[250].mxu1 }
 0x7d0   : > { %v7703_v9 = vpop.f32.mrb[251].mxu1 }
 0x7d1   : > { %v5178_v33 = vpop.f32.mrb[232].mxu0 }
 0x7d2   : > { %v5216_v36 = vadd.f32 %v5178_v33, %v5057_v27  ;;  %v7666_v55 = vpop.f32.mrb[233].mxu0 }
 0x7d3   : > { %v5181_v32 = vpop.f32.mrb[234].mxu0 }
 0x7d4   : > { %v5217_v40 = vadd.f32 %v5181_v32, %v5058_v19  ;;  %v7667_v11 = vpop.f32.mrb[235].mxu0  ;;  %v5441_v39 = vadd.f32 %v5403_v48, %v5216_v36 }
 0x7d5   : > { %v5411_v5 = vpop.f32.mrb[252].mxu1 }
 0x7d6   : > { %v7706_v56 = vpop.f32.mrb[253].mxu1  ;;  %v5442_v58 = vadd.f32 %v5406_v20, %v5217_v40 }
 0x7d7   : > { %v5414_v50 = vpop.f32.mrb[254].mxu1 }
 0x7d8   : > { %v7707_v8 = vpop.f32.mrb[255].mxu1 }
 0x7d9   : > { %v5186_v14 = vpop.f32.mrb[236].mxu0 }
 0x7da   : > { %v5218_v12 = vadd.f32 %v5186_v14, %v5059_v6  ;;  %v7670_v1 = vpop.f32.mrb[237].mxu0 }
 0x7db   : > { %v5189_v44 = vpop.f32.mrb[238].mxu0 }
 0x7dc   : > { %v5219_v18 = vadd.f32 %v5189_v44, %v5060_v31  ;;  %v7671_v51 = vpop.f32.mrb[239].mxu0  ;;  %v5443_v49 = vadd.f32 %v5411_v5, %v5218_v12  ;;  %v6511_v44 = vld [vmem:[%s10340_s8] ss:$0 sm:$0xff] }
 0x7dd   : > { %v5419_v16 = vpop.f32.mrb[0].mxu1 }
 0x7de   : > { %v7710_v53 = vpop.f32.mrb[1].mxu1  ;;  %v5444_v27 = vadd.f32 %v5414_v50, %v5219_v18 }
 0x7df   : > { %v5422_v29 = vpop.f32.mrb[2].mxu1 }
 0x7e0   : > { %v7711_v34 = vpop.f32.mrb[3].mxu1 }
 0x7e1   : > { %v5194_v19 = vpop.f32.mrb[240].mxu0 }
 0x7e2   : > { %v5220_v47 = vadd.f32 %v5194_v19, %v5061_v63  ;;  %v7674_v10 = vpop.f32.mrb[241].mxu0 }
 0x7e3   : > { %v5197_v60 = vpop.f32.mrb[242].mxu0 }
 0x7e4   : > { %v5221_v43 = vadd.f32 %v5197_v60, %v5062_v24  ;;  %v7675_v45 = vpop.f32.mrb[243].mxu0  ;;  %v5445_v26 = vadd.f32 %v5419_v16, %v5220_v47 }
 0x7e5   : > { %v5427_v2 = vpop.f32.mrb[4].mxu1 }
 0x7e6   : > { %v7714_v41 = vpop.f32.mrb[5].mxu1  ;;  %v5446_v6 = vadd.f32 %v5422_v29, %v5221_v43 }
 0x7e7   : > { %v5430_v52 = vpop.f32.mrb[6].mxu1 }
 0x7e8   : > { %v7715_v15 = vpop.f32.mrb[7].mxu1 }
 0x7e9   : > { %v5202_v31 = vpop.f32.mrb[244].mxu0 }
 0x7ea   : > { %v5222_v4 = vadd.f32 %v5202_v31, %v5063_v30  ;;  %v7678_v0 = vpop.f32.mrb[245].mxu0 }
 0x7eb   : > { %v5205_v54 = vpop.f32.mrb[246].mxu0 }
 0x7ec   : > { %v5223_v37 = vadd.f32 %v5205_v54, %v5064_v3  ;;  %v7679_v61 = vpop.f32.mrb[247].mxu0  ;;  %v5447_v48 = vadd.f32 %v5427_v2, %v5222_v4 }
 0x7ed   : > { %v5435_v57 = vpop.f32.mrb[8].mxu1 }
 0x7ee   : > { %v5448_v20 = vadd.f32 %v5430_v52, %v5223_v37  ;;  %v7718_v63 = vpop.f32.mrb[9].mxu1 }
 0x7ef   : > { %v5438_v9 = vpop.f32.mrb[10].mxu1 }
 0x7f0   : > { %v7719_v33 = vpop.f32.mrb[11].mxu1 }
 0x7f1   : > { %v5210_v24 = vpop.f32.mrb[248].mxu0 }
 0x7f2   : > { %v5224_v36 = vadd.f32 %v5210_v24, %v5065_v22  ;;  %v7682_v55 = vpop.f32.mrb[249].mxu0 }
 0x7f3   : > { %v5213_v32 = vpop.f32.mrb[250].mxu0 }
 0x7f4   : > { %v5449_v40 = vadd.f32 %v5435_v57, %v5224_v36  ;;  %v7683_v11 = vpop.f32.mrb[251].mxu0 }
 0x7f9   : > { %v5567_v5 = vpop.f32.mrb[252].mxu0 }
 0x7fa   : > { %v5605_v56 = vadd.f32 %v5567_v5, %v5441_v39  ;;  %v7738_v50 = vpop.f32.mrb[253].mxu0 }
 0x7fb   : > { %v5570_v30 = vpop.f32.mrb[254].mxu0 }
 0x7fc   : > { %v5606_v8 = vadd.f32 %v5570_v30, %v5442_v58  ;;  %v7739_v14 = vpop.f32.mrb[255].mxu0  ;;  %v5621_v53 = vadd.f32 %v6511_v44, %v5605_v56 }
 0x7fe   : > { %v5622_v51 = vadd.f32 %v6511_v44, %v5606_v8  ;;  %v10210_v58 = vsel %vm8820_vm12, %v5621_v53, 0.0 }
 0x800   : > { %v10206_v39 = vsel %vm8832_vm15, %v5622_v51, 0.0 }
 0x801   : > { %v5575_v3 = vpop.f32.mrb[0].mxu0 }
 0x802   : > { %v5607_v12 = vadd.f32 %v5575_v3, %v5443_v49  ;;  %v7742_v1 = vpop.f32.mrb[1].mxu0 }
 0x803   : > { %v5578_v18 = vpop.f32.mrb[2].mxu0 }
 0x804   : > { %v5608_v22 = vadd.f32 %v5578_v18, %v5444_v27  ;;  %v7743_v16 = vpop.f32.mrb[3].mxu0  ;;  %v5623_v29 = vadd.f32 %v6511_v44, %v5607_v12  ;;  %v5641_v27 = vadd.f32 %v10206_v39, %v10210_v58 }
 0x806   : > { %v10214_v49 = vsel %vm8891_vm6, %v5623_v29, 0.0  ;;  %v5624_v19 = vadd.f32 %v6511_v44, %v5608_v22 }
 0x807   : > { %v5642_v2 = vadd.f32 %v5641_v27, %v10214_v49 }
 0x808   : > { %v10221_v62 = vsel %vm8909_vm7, %v5624_v19, 0.0 }
 0x809   : > { %v5583_v34 = vpop.f32.mrb[4].mxu0 }
 0x80a   : > { %v5609_v47 = vadd.f32 %v5583_v34, %v5445_v26  ;;  %v7746_v10 = vpop.f32.mrb[5].mxu0  ;;  %v5643_v26 = vadd.f32 %v5642_v2, %v10221_v62 }
 0x80b   : > { %v5586_v60 = vpop.f32.mrb[6].mxu0 }
 0x80c   : > { %v5625_v43 = vadd.f32 %v6511_v44, %v5609_v47  ;;  %v5610_v38 = vadd.f32 %v5586_v60, %v5446_v6  ;;  %v7747_v45 = vpop.f32.mrb[7].mxu0 }
 0x80e   : > { %v10225_v23 = vsel %vm8918_vm8, %v5625_v43, 0.0  ;;  %v5626_v41 = vadd.f32 %v6511_v44, %v5610_v38 }
 0x80f   : > { %v5644_v4 = vadd.f32 %v5643_v26, %v10225_v23 }
 0x810   : > { %v10231_v0 = vsel %vm8922_vm9, %v5626_v41, 0.0 }
 0x811   : > { %v5591_v52 = vpop.f32.mrb[8].mxu0  ;;  %v5645_v57 = vadd.f32 %v5644_v4, %v10231_v0 }
 0x812   : > { %v5611_v15 = vadd.f32 %v5591_v52, %v5447_v48  ;;  %v7750_v31 = vpop.f32.mrb[9].mxu0 }
 0x813   : > { %v5594_v6 = vpop.f32.mrb[10].mxu0 }
 0x814   : > { %v5627_v59 = vadd.f32 %v6511_v44, %v5611_v15  ;;  %v5612_v54 = vadd.f32 %v5594_v6, %v5448_v20  ;;  %v7751_v37 = vpop.f32.mrb[11].mxu0 }
 0x816   : > { %v5638_v25 = vsel %vm9013_vm14, %v5627_v59, 0.0  ;;  %v5628_v61 = vadd.f32 %v6511_v44, %v5612_v54 }
 0x817   : > { %v5646_v63 = vadd.f32 %v5645_v57, %v5638_v25 }
 0x818   : > { %v5639_v48 = vsel %vm9019_vm2, %v5628_v61, 0.0 }
 0x819   : > { %v5599_v9 = vpop.f32.mrb[12].mxu0  ;;  %v5647_v32 = vadd.f32 %v5646_v63, %v5639_v48 }
 0x81a   : > { %v5613_v33 = vadd.f32 %v5599_v9, %v5449_v40  ;;  %v7754_v24 = vpop.f32.mrb[13].mxu0 }
 0x81b   : > { %v5602_v36 = vpop.f32.mrb[14].mxu0 }
 0x81c   : > { %v5629_v17 = vadd.f32 %v6511_v44, %v5613_v33  ;;  %v7755_v55 = vpop.f32.mrb[15].mxu0 }
 0x81e   : > { %v5640_v20 = vsel %vm9066_vm11, %v5629_v17, 0.0 }
 0x81f   : > { %v5648_v11 = vadd.f32 %v5647_v32, %v5640_v20 }
 0x821   : > { %v5649_v13 = vrot.slane %v5648_v11, 4 }
 0x823   : > { %v5650_v5 = vadd.f32 %v5649_v13, %v5648_v11 }
 0x825   : > { %v5651_v56 = vrot.slane %v5650_v5, 2 }
 0x827   : > { %v5652_v50 = vadd.f32 %v5651_v56, %v5650_v5 }
 0x829   : > { %v5653_v30 = vrot.slane %v5652_v50, 1 }
 0x82b   : > { %v5654_v8 = vadd.f32 %v5653_v30, %v5652_v50 }
 0x82d   : > { %5669 = vrot.lane.b32.xlu0 %v5654_v8, %s8131_s19  ;;  %v5655_v21 = vsel %vm3665_vm13, %v5654_v8, 0.0 }
 0x84c   : > { %5656 = vadd.xlane.f32.xlu0 %v5655_v21 }
 0x89f   : > { %v5670_v40 = vpop.permute.xlu0 %5669 }
 0x8a0   : > { %v5672_v14 = vsel %vm3665_vm13, %v5670_v40, 0.0 }
 0x8a1   : > { %5673 = vadd.xlane.f32.xlu1 %v5672_v14 }
 0x8d9   : > { %v5657_v3 = vpop.xlane.xlu0 %5656 }
 0x8da   : > { %v5658_v12 = vrot.slane %v5657_v3, 4 }
 0x8dc   : > { %v5659_v42 = vadd.f32 %v5658_v12, %v5657_v3 }
 0x8de   : > { %v5660_v1 = vrot.slane %v5659_v42, 2 }
 0x8e0   : > { %v5661_v44 = vadd.f32 %v5660_v1, %v5659_v42 }
 0x8e2   : > { %v5662_v18 = vrot.slane %v5661_v44, 1 }
 0x8e4   : > { %v5663_v51 = vadd.f32 %v5662_v18, %v5661_v44 }
 0x8e6   : > { %7790 = vpush %v5663_v51 }
 0x917   : > { %s7791_s27 = spop %7790 }
 0x918   : > { %s10243_s30 = smul.f32 0.00390625, %s7791_s27 }
 0x91a   : > { %v5666_v10 = vstv %s10243_s30  ;;  %s5727_s14 = smul.f32 32.0, %s10243_s30 }
 0x91b   : > { %v5667_v27 = vsel %vm3663_vm4, %v5666_v10, 0.0 }
 0x91c   : > { %s5728_s28 = smul.f32 %s5727_s14, %s10243_s30 }
 0x92e   : > { %v5674_v22 = vpop.xlane.xlu1 %5673 }
 0x92f   : > { %v5675_v16 = vrot.slane %v5674_v22, 4 }
 0x931   : > { %v5676_v53 = vadd.f32 %v5675_v16, %v5674_v22 }
 0x933   : > { %v5677_v29 = vrot.slane %v5676_v53, 2 }
 0x935   : > { %v5678_v34 = vadd.f32 %v5677_v29, %v5676_v53 }
 0x937   : > { %v5679_v19 = vrot.slane %v5678_v34, 1 }
 0x939   : > { %v5680_v47 = vadd.f32 %v5679_v19, %v5678_v34  ;;  %v5630_v19 = vld [vmem:[%s10341_s9] sm:$0x1] }
 0x93b   : > { %7792 = vpush %v5680_v47 }
 0x96c   : > { %s7793_s12 = spop %7792 }
 0x96d   : > { %s10246_s13 = smul.f32 0.00390625, %s7793_s12 }
 0x96f   : > { %v5683_v60 = vstv %s10246_s13  ;;  %s5752_s24 = smul.f32 32.0, %s10246_s13 }
 0x970   : > { %v5684_v43 = vsel %vm9545_vm1, %v5683_v60, %v5667_v27 }
 0x971   : > { %v10254_v38 = vsub.f32 %v10210_v58, %v5684_v43  ;;  %v10257_v45 = vsub.f32 %v10206_v39, %v5684_v43  ;;  %v10260_v2 = vsub.f32 %v10214_v49, %v5684_v43  ;;  %v10263_v41 = vsub.f32 %v10221_v62, %v5684_v43  ;;  %s5753_s22 = smul.f32 %s5752_s24, %s10246_s13 }
 0x972   : > { %v10270_v15 = vsub.f32 %v10225_v23, %v5684_v43  ;;  %v10275_v31 = vsub.f32 %v10231_v0, %v5684_v43  ;;  %v10279_v4 = vsub.f32 %v5638_v25, %v5684_v43  ;;  %v10283_v54 = vsub.f32 %v5639_v48, %v5684_v43 }
 0x973   : > { %v5694_v26 = vmul.f32 %v10254_v38, %v10254_v38  ;;  %v5695_v52 = vmul.f32 %v10257_v45, %v10257_v45  ;;  %v5696_v58 = vmul.f32 %v10260_v2, %v10260_v2  ;;  %v5697_v49 = vmul.f32 %v10263_v41, %v10263_v41 }
 0x974   : > { %v5698_v6 = vmul.f32 %v10270_v15, %v10270_v15  ;;  %v5699_v23 = vmul.f32 %v10275_v31, %v10275_v31  ;;  %v10287_v61 = vsub.f32 %v5640_v20, %v5684_v43  ;;  %v5700_v0 = vmul.f32 %v10279_v4, %v10279_v4 }
 0x975   : > { %v5703_v39 = vadd.f32 %v5695_v52, %v5694_v26  ;;  %v5701_v25 = vmul.f32 %v10283_v54, %v10283_v54  ;;  %v6512_v26 = vld [vmem:[%s10342_s10] ss:$0 sm:$0xff] }
 0x976   : > { %v5702_v9 = vmul.f32 %v10287_v61, %v10287_v61 }
 0x977   : > { %v5704_v62 = vadd.f32 %v5703_v39, %v5696_v58 }
 0x979   : > { %v5705_v59 = vadd.f32 %v5704_v62, %v5697_v49 }
 0x97b   : > { %v5706_v37 = vadd.f32 %v5705_v59, %v5698_v6 }
 0x97d   : > { %v5707_v57 = vadd.f32 %v5706_v37, %v5699_v23 }
 0x97f   : > { %v5708_v63 = vadd.f32 %v5707_v57, %v5700_v0 }
 0x981   : > { %v5709_v33 = vadd.f32 %v5708_v63, %v5701_v25 }
 0x983   : > { %v5710_v48 = vadd.f32 %v5709_v33, %v5702_v9 }
 0x985   : > { %v5711_v24 = vrot.slane %v5710_v48, 4 }
 0x987   : > { %v5712_v36 = vadd.f32 %v5711_v24, %v5710_v48 }
 0x989   : > { %v5713_v17 = vrot.slane %v5712_v36, 2 }
 0x98b   : > { %v5714_v55 = vadd.f32 %v5713_v17, %v5712_v36 }
 0x98d   : > { %v5715_v32 = vrot.slane %v5714_v55, 1 }
 0x98f   : > { %v5716_v20 = vadd.f32 %v5715_v32, %v5714_v55 }
 0x991   : > { %v5717_v11 = vsel %vm3665_vm13, %v5716_v20, 0.0 }
 0x992   : > { %5718 = vadd.xlane.f32.xlu1 %v5717_v11 }
 0x9a3   : > { %5739 = vrot.lane.b32.xlu1 %v5716_v20, %s8131_s19 }
 0xa1f   : > { %v5719_v13 = vpop.xlane.xlu1 %5718 }
 0xa20   : > { %v5720_v5 = vrot.slane %v5719_v13, 4 }
 0xa22   : > { %v5721_v56 = vadd.f32 %v5720_v5, %v5719_v13 }
 0xa23   : > { %v5740_v50 = vpop.permute.xlu1 %5739 }
 0xa24   : > { %v5722_v30 = vrot.slane %v5721_v56, 2  ;;  %v5742_v8 = vsel %vm3665_vm13, %v5740_v50, 0.0 }
 0xa25   : > { %5743 = vadd.xlane.f32.xlu1 %v5742_v8 }
 0xa26   : > { %v5723_v21 = vadd.f32 %v5722_v30, %v5721_v56 }
 0xa28   : > { %v5724_v40 = vrot.slane %v5723_v21, 1 }
 0xa2a   : > { %v5725_v14 = vadd.f32 %v5724_v40, %v5723_v21 }
 0xa2c   : > { %7794 = vpush %v5725_v14 }
 0xa5d   : > { %s7795_s15 = spop %7794 }
 0xa5e   : > { %s5729_s16 = ssub.f32 %s7795_s15, %s5728_s28 }
 0xa60   : > { %s5730_s20 = smul.f32 0.00390625, %s5729_s16 }
 0xa62   : > { %s5731_s19 = smax.f32 %s8132_s29, %s5730_s20 }
 0xa63   : > { %s5732_s21 = sadd.f32 1e-05, %s5731_s19 }
 0xa65   : > { %v5733_v3 = vstv %s5732_s21 }
 0xa66   : > { %8116 = vrsqrt.f32 %v5733_v3 }
 0xa70   : > { %v8117_v12 = vpop.eup %8116 }
 0xa71   : > { %7796 = vpush %v8117_v12 }
 0xaa2   : > { %s7797_s23 = spop %7796 }
 0xaa3   : > { %v5736_v34 = vstv %s7797_s23 }
 0xaa4   : > { %v5737_v47 = vsel %vm3663_vm4, %v5736_v34, 0.0 }
 0xab2   : > { %v5744_v42 = vpop.xlane.xlu1 %5743 }
 0xab3   : > { %v5745_v1 = vrot.slane %v5744_v42, 4 }
 0xab5   : > { %v5746_v44 = vadd.f32 %v5745_v1, %v5744_v42 }
 0xab7   : > { %v5747_v18 = vrot.slane %v5746_v44, 2 }
 0xab9   : > { %v5748_v51 = vadd.f32 %v5747_v18, %v5746_v44 }
 0xabb   : > { %v5749_v22 = vrot.slane %v5748_v51, 1 }
 0xabd   : > { %v5750_v16 = vadd.f32 %v5749_v22, %v5748_v51 }
 0xabf   : > { %7798 = vpush %v5750_v16 }
 0xaf0   : > { %s7799_s25 = spop %7798 }
 0xaf1   : > { %s5754_s26 = ssub.f32 %s7799_s25, %s5753_s22 }
 0xaf3   : > { %s5755_s27 = smul.f32 0.00390625, %s5754_s26 }
 0xaf5   : > { %s5756_s30 = smax.f32 %s8132_s29, %s5755_s27  ;;  %s7759_s29 = smul.u32 36, %s10402_s18 }
 0xaf6   : > { %s5757_s12 = sadd.f32 1e-05, %s5756_s30 }
 0xaf7   : > { %s386_s19 = scalar_lea.vmem %s10343_s11, %s7759_s29 }
 0xaf8   : > { %v5758_v53 = vstv %s5757_s12 }
 0xaf9   : > { %8118 = vrsqrt.f32 %v5758_v53 }
 0xb03   : > { %v8119_v29 = vpop.eup %8118 }
 0xb04   : > { %7800 = vpush %v8119_v29 }
 0xb35   : > { %s7801_s15 = spop %7800 }
 0xb36   : > { %v5761_v10 = vstv %s7801_s15 }
 0xb37   : > { %v5762_v27 = vsel %vm9545_vm1, %v5761_v10, %v5737_v47 }
 0xb38   : > { %v5763_v60 = vmul.f32 %v5762_v27, %v5630_v19 }
 0xb3a   : > { %v5767_v43 = vrot.slane %v5763_v60, %v3780_v28 }
 0xb3c   : > { %v5768_v52 = vmul.f32 %v5767_v43, %v10254_v38  ;;  %v5769_v58 = vmul.f32 %v5767_v43, %v10257_v45  ;;  %v5770_v35 = vmul.f32 %v5767_v43, %v10260_v2  ;;  %v5771_v39 = vmul.f32 %v5767_v43, %v10263_v41 }
 0xb3d   : > { %v5772_v46 = vmul.f32 %v5767_v43, %v10270_v15  ;;  %v5773_v49 = vmul.f32 %v5767_v43, %v10275_v31  ;;  %v5774_v7 = vmul.f32 %v5767_v43, %v10279_v4  ;;  %v5775_v28 = vmul.f32 %v5767_v43, %v10283_v54 }
 0xb3e   : > { %v5776_v62 = vmul.f32 %v5767_v43, %v10287_v61  ;;  %v5783_v6 = vadd.f32 %v6512_v26, %v5768_v52  ;;  %v5784_v59 = vadd.f32 %v6512_v26, %v5769_v58  ;;  %v5785_v23 = vadd.f32 %v6512_v26, %v5770_v35 }
 0xb3f   : > { %v5786_v38 = vadd.f32 %v6512_v26, %v5771_v39  ;;  %v5787_v45 = vadd.f32 %v6512_v26, %v5772_v46  ;;  %v5788_v2 = vadd.f32 %v6512_v26, %v5773_v49  ;;  %v5789_v41 = vadd.f32 %v6512_v26, %v5774_v7 }
 0xb40   : > { %v5790_v15 = vadd.f32 %v6512_v26, %v5775_v28  ;;  %v5791_v37 = vadd.f32 %v6512_v26, %v5776_v62  ;;  %v6594_v31 = vpack.c.bf16 %v5784_v59, %v5783_v6 }
 0xb41   : > { %v6599_v0 = vpack.c.bf16 %v5786_v38, %v5785_v23  ;;  %v6604_v4 = vpack.c.bf16 %v5788_v2, %v5787_v45 }
 0xb42   : > { %v6550_v57 = vpack.c.bf16 %v5791_v37, %v5791_v37  ;;  %6595 = vst [vmem:[%s386_s19] sm:$0xff] %v6594_v31   ;;  %v6609_v54 = vpack.c.bf16 %v5790_v15, %v5789_v41 }
 0xb43   : > { %6619 = vst [vmem:[%s386_s19 + $0x8] sm:$0xff] %v6599_v0   ;;  %6620 = vst [vmem:[%s386_s19 + $0x10] sm:$0xff] %v6604_v4  }
 0xb44   : > { %6621 = vst [vmem:[%s386_s19 + $0x18] sm:$0xff] %v6609_v54   ;;  %5837 = vst [vmem:[%s386_s19 + $0x20] sm:$0xf] %v6550_v57 }
 0xb45 PF: > { %s21_s17 = sadd.s32 1, %s8126_s17  }
 0xb46   : > { %p18_p4 = scmp.ge.s32.totalorder %s21_s17, 4  }
 0xb48   :  { %20 = sbr.rel (!%p18_p4) target bundleno = 1 (0x1), region = 118 }

</bundles_post_ra>
